<compile_context>
chip_gen: v6e
topology: v6e:2x2x1
jax: 0.10.0
libtpu: 0.0.40
codegen_flags: <defaults>
</compile_context>

<pallas_src>
import functools
import math

import jax
import jax.numpy as jnp
from jax.experimental import pallas as pl
from jax.experimental.pallas import tpu as pltpu

LN_EPS = 1e-5


# --------------------------- hardware / budget helpers ---------------------- #

def _tpu_vmem_bytes():
    """Per-core VMEM capacity; conservative 64 MiB (v7x) fallback."""
    try:
        cap = int(pltpu.get_tpu_info().vmem_capacity_bytes)
        if cap > 0:
            return cap
    except Exception:
        pass
    return 64 * 1024 * 1024


_VMEM_CAP = _tpu_vmem_bytes()
_VMEM_BUDGET = int(_VMEM_CAP * 0.6)      # used for row-tile sizing
_VMEM_LIMIT = int(_VMEM_CAP * 0.9)       # handed to the Mosaic compiler


def _compiler_params():
    return pltpu.CompilerParams(dimension_semantics=("parallel",),
                                vmem_limit_bytes=_VMEM_LIMIT)


def _probe_buffered1():
    """pl.Buffered(1) single-buffers grid-invariant (resident) weights, saving VMEM on
    v7x.  Probe once (compile + value check) and fall back cleanly if unsupported."""
    try:
        mode = pl.Buffered(1)

        def k(x_ref, w_ref, o_ref):
            o_ref[...] = x_ref[...] + w_ref[...]

        x = jnp.arange(16 * 128, dtype=jnp.float32).reshape(16, 128)
        w = jnp.ones((8, 128), jnp.float32)
        out = pl.pallas_call(
            k,
            out_shape=jax.ShapeDtypeStruct((16, 128), jnp.float32),
            grid=(2,),
            in_specs=[pl.BlockSpec((8, 128), lambda i: (i, 0)),
                      pl.BlockSpec((8, 128), lambda i: (0, 0), pipeline_mode=mode)],
            out_specs=pl.BlockSpec((8, 128), lambda i: (i, 0)),
        )(x, w)
        if bool(jnp.allclose(out, x + 1.0)):
            return mode
    except Exception:
        pass
    return None


_BUF1 = _probe_buffered1()


def _resident_spec(shape):
    """BlockSpec for a grid-invariant operand (weight / bias / LN param): whole array
    resident in VMEM, single-buffered when the installed Pallas supports it."""
    if _BUF1 is not None:
        return pl.BlockSpec(shape, lambda i: (0,) * len(shape), pipeline_mode=_BUF1)
    return pl.BlockSpec(shape, lambda i: (0,) * len(shape))


def _row_block(rows, per_row_bytes, resident_bytes, cap=1024):
    """Largest 8-aligned row tile that fits the VMEM budget; keeps >=2 grid steps so
    both v7x TensorCores get work; ragged final blocks rely on boundary masking."""
    if rows <= 8:
        return rows
    avail = max(_VMEM_BUDGET - resident_bytes, 1 << 20)
    rb = min(cap, rows, max(8, avail // max(per_row_bytes, 1)))
    rb = max(8, (rb // 8) * 8)
    if pl.cdiv(rows, rb) < 2:
        rb = max(8, ((pl.cdiv(rows, 2) + 7) // 8) * 8)
    return int(rb)


# ------------------------------ kernels ------------------------------------ #

def _ln_rows(x, g, b):
    mean = jnp.mean(x, axis=-1, keepdims=True)
    var = jnp.mean(jnp.square(x - mean), axis=-1, keepdims=True)
    return (x - mean) * jax.lax.rsqrt(var + LN_EPS) * g + b


def _ln_kernel(x_ref, g_ref, b_ref, o_ref):
    x = x_ref[...].astype(jnp.float32)
    o_ref[...] = _ln_rows(x, g_ref[...], b_ref[...]).astype(o_ref.dtype)


def _qkv_attn_kernel(x_ref, w_ref, b_ref, o_ref, *, n_heads, scale):
    # One batch element per grid step: x (1,T,E) -> packed QKV (stays in VMEM) -> MHA.
    x = x_ref[0].astype(jnp.bfloat16)                                   # (T, E)
    qkv = jnp.dot(x, w_ref[...], preferred_element_type=jnp.float32) + b_ref[...]
    t, e3 = qkv.shape
    e = e3 // 3
    d = e // n_heads

    def heads(a):                                                       # (T,E)->(H,T,d)
        return a.reshape(t, n_heads, d).transpose(1, 0, 2).astype(jnp.bfloat16)

    q = heads(qkv[:, :e])
    k = heads(qkv[:, e:2 * e])
    v = heads(qkv[:, 2 * e:])

    # All heads batched through a single dot_general stream (no per-head python loop,
    # no lane sub-slicing, no concat).
    s = jnp.einsum("htd,hsd->hts", q, k,
                   preferred_element_type=jnp.float32) * scale          # (H, T, T)
    s = s - jnp.max(s, axis=-1, keepdims=True)
    p = jnp.exp(s)
    p = p / jnp.sum(p, axis=-1, keepdims=True)                          # exact softmax
    o = jnp.einsum("hts,hsd->htd", p.astype(jnp.bfloat16), v,
                   preferred_element_type=jnp.float32)                  # (H, T, d)
    o_ref[...] = o.transpose(1, 0, 2).reshape(1, t, e).astype(o_ref.dtype)


def _proj_add_ln_kernel(res_ref, a_ref, w_ref, b_ref, g_ref, beta_ref, o_ref):
    # out_proj + residual add + LayerNorm1, fused.  Attention input is already bf16.
    y = jnp.dot(a_ref[...], w_ref[...], preferred_element_type=jnp.float32) + b_ref[...]
    x = res_ref[...].astype(jnp.float32) + y
    o_ref[...] = _ln_rows(x, g_ref[...], beta_ref[...]).astype(o_ref.dtype)


def _ffn_add_ln_kernel(x_ref, w1_ref, b1_ref, w2_ref, b2_ref, g_ref, beta_ref, o_ref):
    # linear1 -> ReLU -> linear2 -> residual add -> LayerNorm2, fused (FF stays in VMEM).
    x = x_ref[...].astype(jnp.float32)
    h = jnp.dot(x.astype(jnp.bfloat16), w1_ref[...],
                preferred_element_type=jnp.float32) + b1_ref[...]
    h = jnp.maximum(h, 0.0)
    y = jnp.dot(h.astype(jnp.bfloat16), w2_ref[...],
                preferred_element_type=jnp.float32) + b2_ref[...]
    o_ref[...] = _ln_rows(x + y, g_ref[...], beta_ref[...]).astype(o_ref.dtype)


# ------------------------------ wrappers ------------------------------------ #

def layer_norm(x2d, gamma, beta):
    rows, e = x2d.shape
    rb = _row_block(rows, per_row_bytes=16 * e, resident_bytes=8 * e)
    cost = pl.CostEstimate(flops=int(8 * rows * e), transcendentals=int(rows),
                           bytes_accessed=int(8 * rows * e))
    return pl.pallas_call(
        _ln_kernel,
        out_shape=jax.ShapeDtypeStruct((rows, e), x2d.dtype),
        grid=(pl.cdiv(rows, rb),),
        in_specs=[pl.BlockSpec((rb, e), lambda i: (i, 0)),
                  _resident_spec((1, e)),
                  _resident_spec((1, e))],
        out_specs=pl.BlockSpec((rb, e), lambda i: (i, 0)),
        compiler_params=_compiler_params(),
        cost_estimate=cost,
    )(x2d, gamma.reshape(1, e), beta.reshape(1, e))


def qkv_attention(x2d, w, b, *, n_heads, seq_len):
    """Fused packed-QKV projection + multi-head self attention.  Output is bf16 since
    it is only ever consumed as a bf16 matmul input (out_proj)."""
    rows, e = x2d.shape
    e3 = w.shape[1]
    n_batch = rows // seq_len
    d = e // n_heads
    scale = 1.0 / math.sqrt(d)
    x3 = x2d.reshape(n_batch, seq_len, e)                     # free reshape, per-batch blocks
    kernel = functools.partial(_qkv_attn_kernel, n_heads=n_heads, scale=scale)
    flops = 2 * rows * e * e3 + 4 * n_batch * n_heads * seq_len * seq_len * d
    cost = pl.CostEstimate(flops=int(flops),
                           transcendentals=int(n_batch * n_heads * seq_len * seq_len),
                           bytes_accessed=int(4 * rows * e + 2 * e * e3 + 2 * rows * e))
    out = pl.pallas_call(
        kernel,
        out_shape=jax.ShapeDtypeStruct((n_batch, seq_len, e), jnp.bfloat16),
        grid=(n_batch,),   # keep batch >= 2 per chip so both v7x TensorCores are busy
        in_specs=[pl.BlockSpec((1, seq_len, e), lambda i: (i, 0, 0)),
                  _resident_spec(w.shape),
                  _resident_spec((1, e3))],
        out_specs=pl.BlockSpec((1, seq_len, e), lambda i: (i, 0, 0)),
        compiler_params=_compiler_params(),
        cost_estimate=cost,
    )(x3, w, b.reshape(1, e3))
    return out.reshape(rows, e)


def proj_add_ln(res, attn_out, w, b, gamma, beta):
    rows, e = res.shape
    w_bytes = int(w.size) * 2 * (1 if _BUF1 is not None else 2)
    rb = _row_block(rows, per_row_bytes=20 * e, resident_bytes=w_bytes + 32 * e)
    cost = pl.CostEstimate(flops=int(2 * rows * e * e + 12 * rows * e),
                           transcendentals=int(rows),
                           bytes_accessed=int(10 * rows * e + w.size * 2))
    return pl.pallas_call(
        _proj_add_ln_kernel,
        out_shape=jax.ShapeDtypeStruct((rows, e), res.dtype),
        grid=(pl.cdiv(rows, rb),),
        in_specs=[pl.BlockSpec((rb, e), lambda i: (i, 0)),
                  pl.BlockSpec((rb, e), lambda i: (i, 0)),
                  _resident_spec(w.shape),
                  _resident_spec((1, e)),
                  _resident_spec((1, e)),
                  _resident_spec((1, e))],
        out_specs=pl.BlockSpec((rb, e), lambda i: (i, 0)),
        input_output_aliases={0: 0},        # residual slab buffer reused for the output
        compiler_params=_compiler_params(),
        cost_estimate=cost,
    )(res, attn_out, w, b.reshape(1, e), gamma.reshape(1, e), beta.reshape(1, e))


def ffn_add_ln(x2d, w1, b1, w2, b2, gamma, beta):
    rows, e = x2d.shape
    ff = w1.shape[1]
    bufs = 1 if _BUF1 is not None else 2
    resident = int(w1.size + w2.size) * 2 * bufs + 4 * ff + 32 * e
    rb = _row_block(rows, per_row_bytes=16 * e + 12 * ff, resident_bytes=resident)
    cost = pl.CostEstimate(flops=int(4 * rows * e * ff + 16 * rows * e),
                           transcendentals=int(rows),
                           bytes_accessed=int(8 * rows * e + (w1.size + w2.size) * 2))
    return pl.pallas_call(
        _ffn_add_ln_kernel,
        out_shape=jax.ShapeDtypeStruct((rows, e), x2d.dtype),
        grid=(pl.cdiv(rows, rb),),
        in_specs=[pl.BlockSpec((rb, e), lambda i: (i, 0)),
                  _resident_spec(w1.shape),
                  _resident_spec((1, ff)),
                  _resident_spec(w2.shape),
                  _resident_spec((1, e)),
                  _resident_spec((1, e)),
                  _resident_spec((1, e))],
        out_specs=pl.BlockSpec((rb, e), lambda i: (i, 0)),
        input_output_aliases={0: 0},        # residual slab buffer reused for the output
        compiler_params=_compiler_params(),
        cost_estimate=cost,
    )(x2d, w1, b1.reshape(1, ff), w2, b2.reshape(1, e),
      gamma.reshape(1, e), beta.reshape(1, e))


# ------------------------------- model glue --------------------------------- #

def encoder_layer(xr, p, n_heads, seq_len):
    att = qkv_attention(xr, p["in_proj_w"], p["in_proj_b"],
                        n_heads=n_heads, seq_len=seq_len)               # (N*T, E) bf16
    xr = proj_add_ln(xr, att, p["out_proj_w"], p["out_proj_b"],
                     p["ln1_g"], p["ln1_b"])
    xr = ffn_add_ln(xr, p["lin1_w"], p["lin1_b"], p["lin2_w"], p["lin2_b"],
                    p["ln2_g"], p["ln2_b"])
    return xr


def tds_transformer(x, params, n_heads):
    t, n, e = x.shape
    assert e % n_heads == 0
    # One transpose in, one out, for the whole model (batch-major internal layout).
    xr = jnp.transpose(x, (1, 0, 2)).reshape(n * t, e)                  # (N*T, E)
    # TODO(synk): this one-time pre-LN could also be folded into layer 0's attention
    # kernel (second output = normalized residual); kept separate since it is a single
    # slab pass per forward.
    xr = layer_norm(xr, params["ln_g"], params["ln_b"])
    for layer_params in params["layers"]:
        xr = encoder_layer(xr, layer_params, n_heads, seq_len=t)
    return jnp.transpose(xr.reshape(n, t, e), (1, 0, 2))                # (T, N, E)


# ----------------------------- parameter setup ------------------------------ #

def init_params(key, e, ff, n_layers):
    # Weights pre-transposed to (in, out) and pre-cast to bf16 (MXU inputs); biases and
    # LayerNorm params stay f32.
    def dense(k, shape, scale=0.05):
        return (scale * jax.random.normal(k, shape, dtype=jnp.float32)).astype(jnp.bfloat16)

    keys = jax.random.split(key, 1 + n_layers)
    params = {
        "ln_g": jnp.ones((e,), jnp.float32),
        "ln_b": jnp.zeros((e,), jnp.float32),
        "layers": [],
    }
    for li in range(n_layers):
        ks = jax.random.split(keys[1 + li], 6)
        params["layers"].append({
            "in_proj_w": dense(ks[0], (e, 3 * e)),
            "in_proj_b": jnp.zeros((3 * e,), jnp.float32),
            "out_proj_w": dense(ks[1], (e, e)),
            "out_proj_b": jnp.zeros((e,), jnp.float32),
            "lin1_w": dense(ks[2], (e, ff)),
            "lin1_b": 0.01 * jax.random.normal(ks[3], (ff,), dtype=jnp.float32),
            "lin2_w": dense(ks[4], (ff, e)),
            "lin2_b": 0.01 * jax.random.normal(ks[5], (e,), dtype=jnp.float32),
            "ln1_g": jnp.ones((e,), jnp.float32),
            "ln1_b": jnp.zeros((e,), jnp.float32),
            "ln2_g": jnp.ones((e,), jnp.float32),
            "ln2_b": jnp.zeros((e,), jnp.float32),
        })
    return params


if __name__ == "__main__":
    # num_features=128 keeps every BlockSpec last dim a multiple of 128 (lane-dense);
    # dim_feedforward matches the module default (512).  seq=16, batch=2, layers=2.
    T, N, E, H, FF, L = 16, 2, 128, 8, 512, 2
    key = jax.random.PRNGKey(0)
    kx, kp = jax.random.split(key)
    x = jax.random.normal(kx, (T, N, E), dtype=jnp.float32)
    params = init_params(kp, E, FF, L)

    fwd = jax.jit(functools.partial(tds_transformer, n_heads=H))
    out = jax.block_until_ready(fwd(x, params))

    assert out.shape == (T, N, E), out.shape
    assert bool(jnp.all(jnp.isfinite(out)))
    print("KERNEL_OK")
</pallas_src>

<mosaic_0001>
module attributes {stable_mosaic.version = 11 : i64} {
  func.func @k(%arg0: i32, %arg1: memref<8x128xf32, #tpu.memory_space<vmem>>, %arg2: memref<8x128xf32, #tpu.memory_space<vmem>>, %arg3: memref<8x128xf32, #tpu.memory_space<vmem>>) attributes {dimension_semantics = [#tpu.dimension_semantics<arbitrary>], iteration_bounds = array<i64: 2>, scalar_prefetch = 0 : i64, scratch_operands = 0 : i64, tpu.core_type = #tpu.core_type<tc>, window_params = [{transform_indices = @transform_0, window_bounds = array<i64: 8, 128>}, {pipeline_mode = #tpu.pipeline_mode<synchronous>, transform_indices = @transform_1, window_bounds = array<i64: 8, 128>}, {transform_indices = @transform_2, window_bounds = array<i64: 8, 128>}]} {
    %c0 = arith.constant 0 : index
    %c0_0 = arith.constant 0 : index
    %0 = vector.load %arg1[%c0, %c0_0] : memref<8x128xf32, #tpu.memory_space<vmem>>, vector<8x128xf32>
    %c0_1 = arith.constant 0 : index
    %c0_2 = arith.constant 0 : index
    %1 = vector.load %arg2[%c0_1, %c0_2] : memref<8x128xf32, #tpu.memory_space<vmem>>, vector<8x128xf32>
    %2 = arith.addf %0, %1 : vector<8x128xf32>
    %c0_3 = arith.constant 0 : index
    %c0_4 = arith.constant 0 : index
    %3 = vector.load %arg3[%c0_3, %c0_4] : memref<8x128xf32, #tpu.memory_space<vmem>>, vector<8x128xf32>
    tpu.vector_store %arg3[%c0_3, %c0_4], %2 {strides = array<i32>} : memref<8x128xf32, #tpu.memory_space<vmem>>, vector<8x128xf32>,
    return
  }
  func.func @transform_0(%arg0: i32) -> (i32, i32) {
    %c0_i32 = arith.constant 0 : i32
    %c0_i32_0 = arith.constant 0 : i32
    return %arg0, %c0_i32 : i32, i32
  }
  func.func @transform_1(%arg0: i32) -> (i32, i32) {
    %c0_i32 = arith.constant 0 : i32
    %c0_i32_0 = arith.constant 0 : i32
    %c0_i32_1 = arith.constant 0 : i32
    return %c0_i32, %c0_i32_0 : i32, i32
  }
  func.func @transform_2(%arg0: i32) -> (i32, i32) {
    %c0_i32 = arith.constant 0 : i32
    %c0_i32_0 = arith.constant 0 : i32
    return %arg0, %c0_i32 : i32, i32
  }
}

module attributes {stable_mosaic.version = 11 : i64} {
  func.func @_qkv_attn_kernel(%arg0: i32, %arg1: memref<1x16x128xf32, #tpu.memory_space<vmem>>, %arg2: memref<128x384xbf16, #tpu.memory_space<vmem>>, %arg3: memref<1x384xf32, #tpu.memory_space<vmem>>, %arg4: memref<1x16x128xbf16, #tpu.memory_space<vmem>>) attributes {dimension_semantics = [#tpu.dimension_semantics<parallel>], iteration_bounds = array<i64: 2>, scalar_prefetch = 0 : i64, scratch_operands = 0 : i64, tpu.core_type = #tpu.core_type<tc>, window_params = [{transform_indices = @transform_0, window_bounds = array<i64: 1, 16, 128>}, {pipeline_mode = #tpu.pipeline_mode<synchronous>, transform_indices = @transform_1, window_bounds = array<i64: 128, 384>}, {pipeline_mode = #tpu.pipeline_mode<synchronous>, transform_indices = @transform_2, window_bounds = array<i64: 1, 384>}, {transform_indices = @transform_3, window_bounds = array<i64: 1, 16, 128>}]} {
    %c0 = arith.constant 0 : index
    %c0_0 = arith.constant 0 : index
    %c0_1 = arith.constant 0 : index
    %0 = vector.load %arg1[%c0, %c0_0, %c0_1] : memref<1x16x128xf32, #tpu.memory_space<vmem>>, vector<1x16x128xf32>
    %1 = vector.shape_cast %0 : vector<1x16x128xf32> to vector<16x128xf32>
    %2 = arith.truncf %1 : vector<16x128xf32> to vector<16x128xbf16>
    %c0_2 = arith.constant 0 : index
    %c0_3 = arith.constant 0 : index
    %3 = vector.load %arg2[%c0_2, %c0_3] : memref<128x384xbf16, #tpu.memory_space<vmem>>, vector<128x384xbf16>
    %cst = arith.constant dense<0.000000e+00> : vector<16x384xf32>
    %4 = tpu.matmul %2, %3, %cst {dimension_numbers = #tpu.dot_dimension_numbers<[1], [0], [0], [1], [0, 0, 1, 1], [], []>} : vector<16x128xbf16>, vector<128x384xbf16>, vector<16x384xf32> -> vector<16x384xf32>
    %c0_4 = arith.constant 0 : index
    %c0_5 = arith.constant 0 : index
    %5 = vector.load %arg3[%c0_4, %c0_5] : memref<1x384xf32, #tpu.memory_space<vmem>>, vector<1x384xf32>
    %6 = vector.broadcast %5 : vector<1x384xf32> to vector<16x384xf32>
    %7 = arith.addf %4, %6 : vector<16x384xf32>
    %8 = vector.extract_strided_slice %7 {offsets = [0, 0], sizes = [16, 128], strides = [1, 1]} : vector<16x384xf32> to vector<16x128xf32>
    %9 = vector.shape_cast %8 : vector<16x128xf32> to vector<16x8x16xf32>
    %10 = tpu.transpose %9, [1, 0, 2] : vector<16x8x16xf32> -> vector<8x16x16xf32>
    %11 = arith.truncf %10 : vector<8x16x16xf32> to vector<8x16x16xbf16>
    %12 = vector.extract_strided_slice %7 {offsets = [0, 128], sizes = [16, 128], strides = [1, 1]} : vector<16x384xf32> to vector<16x128xf32>
    %13 = vector.shape_cast %12 : vector<16x128xf32> to vector<16x8x16xf32>
    %14 = tpu.transpose %13, [1, 0, 2] : vector<16x8x16xf32> -> vector<8x16x16xf32>
    %15 = arith.truncf %14 : vector<8x16x16xf32> to vector<8x16x16xbf16>
    %16 = vector.extract_strided_slice %7 {offsets = [0, 256], sizes = [16, 128], strides = [1, 1]} : vector<16x384xf32> to vector<16x128xf32>
    %17 = vector.shape_cast %16 : vector<16x128xf32> to vector<16x8x16xf32>
    %18 = tpu.transpose %17, [1, 0, 2] : vector<16x8x16xf32> -> vector<8x16x16xf32>
    %19 = arith.truncf %18 : vector<8x16x16xf32> to vector<8x16x16xbf16>
    "tpu.trace_start"() <{level = 10 : i32, message = "htd,hsd->hts"}> : () -> ()
    %cst_6 = arith.constant dense<0.000000e+00> : vector<8x16x16xf32>
    %20 = tpu.matmul %11, %15, %cst_6 {dimension_numbers = #tpu.dot_dimension_numbers<[2], [2], [1], [1], [0, 0, 0, 1, 1, 1], [0], [0]>} : vector<8x16x16xbf16>, vector<8x16x16xbf16>, vector<8x16x16xf32> -> vector<8x16x16xf32>
    "tpu.trace_stop"() : () -> ()
    %cst_7 = arith.constant 2.500000e-01 : f32
    %21 = vector.broadcast %cst_7 : f32 to vector<8x16x16xf32>
    %22 = arith.mulf %20, %21 : vector<8x16x16xf32>
    %cst_8 = arith.constant dense<0xFF800000> : vector<8x16xf32>
    %23 = vector.multi_reduction <maximumf>, %22, %cst_8 [2] : vector<8x16x16xf32> to vector<8x16xf32>
    %24 = vector.shape_cast %23 : vector<8x16xf32> to vector<8x16x1xf32>
    %25 = vector.broadcast %24 : vector<8x16x1xf32> to vector<8x16x16xf32>
    %26 = arith.subf %22, %25 : vector<8x16x16xf32>
    %27 = math.exp %26 : vector<8x16x16xf32>
    %cst_9 = arith.constant dense<0.000000e+00> : vector<8x16xf32>
    %28 = vector.multi_reduction <add>, %27, %cst_9 [2] : vector<8x16x16xf32> to vector<8x16xf32>
    %29 = vector.shape_cast %28 : vector<8x16xf32> to vector<8x16x1xf32>
    %30 = vector.broadcast %29 : vector<8x16x1xf32> to vector<8x16x16xf32>
    %31 = arith.divf %27, %30 : vector<8x16x16xf32>
    %32 = arith.truncf %31 : vector<8x16x16xf32> to vector<8x16x16xbf16>
    "tpu.trace_start"() <{level = 10 : i32, message = "hts,hsd->htd"}> : () -> ()
    %cst_10 = arith.constant dense<0.000000e+00> : vector<8x16x16xf32>
    %33 = tpu.matmul %32, %19, %cst_10 {dimension_numbers = #tpu.dot_dimension_numbers<[2], [1], [1], [2], [0, 0, 0, 1, 1, 2], [0], [0]>} : vector<8x16x16xbf16>, vector<8x16x16xbf16>, vector<8x16x16xf32> -> vector<8x16x16xf32>
    "tpu.trace_stop"() : () -> ()
    %34 = tpu.transpose %33, [1, 0, 2] : vector<8x16x16xf32> -> vector<16x8x16xf32>
    %35 = vector.shape_cast %34 : vector<16x8x16xf32> to vector<1x16x128xf32>
    %36 = arith.truncf %35 : vector<1x16x128xf32> to vector<1x16x128xbf16>
    %c0_11 = arith.constant 0 : index
    %c0_12 = arith.constant 0 : index
    %c0_13 = arith.constant 0 : index
    %37 = vector.load %arg4[%c0_11, %c0_12, %c0_13] : memref<1x16x128xbf16, #tpu.memory_space<vmem>>, vector<1x16x128xbf16>
    tpu.vector_store %arg4[%c0_11, %c0_12, %c0_13], %36 {strides = array<i32>} : memref<1x16x128xbf16, #tpu.memory_space<vmem>>, vector<1x16x128xbf16>,
    return
  }
  func.func @transform_0(%arg0: i32) -> (i32, i32, i32) {
    %c0_i32 = arith.constant 0 : i32
    %c0_i32_0 = arith.constant 0 : i32
    %c0_i32_1 = arith.constant 0 : i32
    return %arg0, %c0_i32, %c0_i32_0 : i32, i32, i32
  }
  func.func @transform_1(%arg0: i32) -> (i32, i32) {
    %c0_i32 = arith.constant 0 : i32
    %c0_i32_0 = arith.constant 0 : i32
    %c0_i32_1 = arith.constant 0 : i32
    return %c0_i32, %c0_i32_0 : i32, i32
  }
  func.func @transform_2(%arg0: i32) -> (i32, i32) {
    %c0_i32 = arith.constant 0 : i32
    %c0_i32_0 = arith.constant 0 : i32
    %c0_i32_1 = arith.constant 0 : i32
    return %c0_i32, %c0_i32_0 : i32, i32
  }
  func.func @transform_3(%arg0: i32) -> (i32, i32, i32) {
    %c0_i32 = arith.constant 0 : i32
    %c0_i32_0 = arith.constant 0 : i32
    %c0_i32_1 = arith.constant 0 : i32
    return %arg0, %c0_i32, %c0_i32_0 : i32, i32, i32
  }
}

module attributes {stable_mosaic.version = 11 : i64} {
  func.func @_ln_kernel(%arg0: i32, %arg1: memref<16x128xf32, #tpu.memory_space<vmem>>, %arg2: memref<1x128xf32, #tpu.memory_space<vmem>>, %arg3: memref<1x128xf32, #tpu.memory_space<vmem>>, %arg4: memref<16x128xf32, #tpu.memory_space<vmem>>) attributes {dimension_semantics = [#tpu.dimension_semantics<parallel>], iteration_bounds = array<i64: 2>, scalar_prefetch = 0 : i64, scratch_operands = 0 : i64, tpu.core_type = #tpu.core_type<tc>, window_params = [{transform_indices = @transform_0, window_bounds = array<i64: 16, 128>}, {pipeline_mode = #tpu.pipeline_mode<synchronous>, transform_indices = @transform_1, window_bounds = array<i64: 1, 128>}, {pipeline_mode = #tpu.pipeline_mode<synchronous>, transform_indices = @transform_2, window_bounds = array<i64: 1, 128>}, {transform_indices = @transform_3, window_bounds = array<i64: 16, 128>}]} {
    %c0 = arith.constant 0 : index
    %c0_0 = arith.constant 0 : index
    %0 = vector.load %arg1[%c0, %c0_0] : memref<16x128xf32, #tpu.memory_space<vmem>>, vector<16x128xf32>
    %c0_1 = arith.constant 0 : index
    %c0_2 = arith.constant 0 : index
    %1 = vector.load %arg2[%c0_1, %c0_2] : memref<1x128xf32, #tpu.memory_space<vmem>>, vector<1x128xf32>
    %c0_3 = arith.constant 0 : index
    %c0_4 = arith.constant 0 : index
    %2 = vector.load %arg3[%c0_3, %c0_4] : memref<1x128xf32, #tpu.memory_space<vmem>>, vector<1x128xf32>
    %cst = arith.constant dense<0.000000e+00> : vector<16xf32>
    %3 = vector.multi_reduction <add>, %0, %cst [1] : vector<16x128xf32> to vector<16xf32>
    %4 = vector.shape_cast %3 : vector<16xf32> to vector<16x1xf32>
    %cst_5 = arith.constant 1.280000e+02 : f32
    %5 = vector.broadcast %cst_5 : f32 to vector<16x1xf32>
    %6 = arith.divf %4, %5 : vector<16x1xf32>
    %7 = vector.broadcast %6 : vector<16x1xf32> to vector<16x128xf32>
    %8 = arith.subf %0, %7 : vector<16x128xf32>
    %9 = arith.mulf %8, %8 : vector<16x128xf32>
    %cst_6 = arith.constant dense<0.000000e+00> : vector<16xf32>
    %10 = vector.multi_reduction <add>, %9, %cst_6 [1] : vector<16x128xf32> to vector<16xf32>
    %11 = vector.shape_cast %10 : vector<16xf32> to vector<16x1xf32>
    %cst_7 = arith.constant 1.280000e+02 : f32
    %12 = vector.broadcast %cst_7 : f32 to vector<16x1xf32>
    %13 = arith.divf %11, %12 : vector<16x1xf32>
    %14 = vector.broadcast %6 : vector<16x1xf32> to vector<16x128xf32>
    %15 = arith.subf %0, %14 : vector<16x128xf32>
    %cst_8 = arith.constant 9.99999974E-6 : f32
    %16 = vector.broadcast %cst_8 : f32 to vector<16x1xf32>
    %17 = arith.addf %13, %16 : vector<16x1xf32>
    %18 = math.rsqrt %17 : vector<16x1xf32>
    %19 = vector.broadcast %18 : vector<16x1xf32> to vector<16x128xf32>
    %20 = arith.mulf %15, %19 : vector<16x128xf32>
    %21 = vector.broadcast %1 : vector<1x128xf32> to vector<16x128xf32>
    %22 = arith.mulf %20, %21 : vector<16x128xf32>
    %23 = vector.broadcast %2 : vector<1x128xf32> to vector<16x128xf32>
    %24 = arith.addf %22, %23 : vector<16x128xf32>
    %c0_9 = arith.constant 0 : index
    %c0_10 = arith.constant 0 : index
    %25 = vector.load %arg4[%c0_9, %c0_10] : memref<16x128xf32, #tpu.memory_space<vmem>>, vector<16x128xf32>
    tpu.vector_store %arg4[%c0_9, %c0_10], %24 {strides = array<i32>} : memref<16x128xf32, #tpu.memory_space<vmem>>, vector<16x128xf32>,
    return
  }
  func.func @transform_0(%arg0: i32) -> (i32, i32) {
    %c0_i32 = arith.constant 0 : i32
    %c0_i32_0 = arith.constant 0 : i32
    return %arg0, %c0_i32 : i32, i32
  }
  func.func @transform_1(%arg0: i32) -> (i32, i32) {
    %c0_i32 = arith.constant 0 : i32
    %c0_i32_0 = arith.constant 0 : i32
    %c0_i32_1 = arith.constant 0 : i32
    return %c0_i32, %c0_i32_0 : i32, i32
  }
  func.func @transform_2(%arg0: i32) -> (i32, i32) {
    %c0_i32 = arith.constant 0 : i32
    %c0_i32_0 = arith.constant 0 : i32
    %c0_i32_1 = arith.constant 0 : i32
    return %c0_i32, %c0_i32_0 : i32, i32
  }
  func.func @transform_3(%arg0: i32) -> (i32, i32) {
    %c0_i32 = arith.constant 0 : i32
    %c0_i32_0 = arith.constant 0 : i32
    return %arg0, %c0_i32 : i32, i32
  }
}

module attributes {stable_mosaic.version = 11 : i64} {
  func.func @_proj_add_ln_kernel(%arg0: i32, %arg1: memref<16x128xf32, #tpu.memory_space<vmem>>, %arg2: memref<16x128xbf16, #tpu.memory_space<vmem>>, %arg3: memref<128x128xbf16, #tpu.memory_space<vmem>>, %arg4: memref<1x128xf32, #tpu.memory_space<vmem>>, %arg5: memref<1x128xf32, #tpu.memory_space<vmem>>, %arg6: memref<1x128xf32, #tpu.memory_space<vmem>>, %arg7: memref<16x128xf32, #tpu.memory_space<vmem>>) attributes {dimension_semantics = [#tpu.dimension_semantics<parallel>], iteration_bounds = array<i64: 2>, scalar_prefetch = 0 : i64, scratch_operands = 0 : i64, tpu.core_type = #tpu.core_type<tc>, window_params = [{transform_indices = @transform_0, window_bounds = array<i64: 16, 128>}, {transform_indices = @transform_1, window_bounds = array<i64: 16, 128>}, {pipeline_mode = #tpu.pipeline_mode<synchronous>, transform_indices = @transform_2, window_bounds = array<i64: 128, 128>}, {pipeline_mode = #tpu.pipeline_mode<synchronous>, transform_indices = @transform_3, window_bounds = array<i64: 1, 128>}, {pipeline_mode = #tpu.pipeline_mode<synchronous>, transform_indices = @transform_4, window_bounds = array<i64: 1, 128>}, {pipeline_mode = #tpu.pipeline_mode<synchronous>, transform_indices = @transform_5, window_bounds = array<i64: 1, 128>}, {transform_indices = @transform_6, window_bounds = array<i64: 16, 128>}]} {
    %c0 = arith.constant 0 : index
    %c0_0 = arith.constant 0 : index
    %0 = vector.load %arg2[%c0, %c0_0] : memref<16x128xbf16, #tpu.memory_space<vmem>>, vector<16x128xbf16>
    %c0_1 = arith.constant 0 : index
    %c0_2 = arith.constant 0 : index
    %1 = vector.load %arg3[%c0_1, %c0_2] : memref<128x128xbf16, #tpu.memory_space<vmem>>, vector<128x128xbf16>
    %cst = arith.constant dense<0.000000e+00> : vector<16x128xf32>
    %2 = tpu.matmul %0, %1, %cst {dimension_numbers = #tpu.dot_dimension_numbers<[1], [0], [0], [1], [0, 0, 1, 1], [], []>} : vector<16x128xbf16>, vector<128x128xbf16>, vector<16x128xf32> -> vector<16x128xf32>
    %c0_3 = arith.constant 0 : index
    %c0_4 = arith.constant 0 : index
    %3 = vector.load %arg4[%c0_3, %c0_4] : memref<1x128xf32, #tpu.memory_space<vmem>>, vector<1x128xf32>
    %4 = vector.broadcast %3 : vector<1x128xf32> to vector<16x128xf32>
    %5 = arith.addf %2, %4 : vector<16x128xf32>
    %c0_5 = arith.constant 0 : index
    %c0_6 = arith.constant 0 : index
    %6 = vector.load %arg1[%c0_5, %c0_6] : memref<16x128xf32, #tpu.memory_space<vmem>>, vector<16x128xf32>
    %7 = arith.addf %6, %5 : vector<16x128xf32>
    %c0_7 = arith.constant 0 : index
    %c0_8 = arith.constant 0 : index
    %8 = vector.load %arg5[%c0_7, %c0_8] : memref<1x128xf32, #tpu.memory_space<vmem>>, vector<1x128xf32>
    %c0_9 = arith.constant 0 : index
    %c0_10 = arith.constant 0 : index
    %9 = vector.load %arg6[%c0_9, %c0_10] : memref<1x128xf32, #tpu.memory_space<vmem>>, vector<1x128xf32>
    %cst_11 = arith.constant dense<0.000000e+00> : vector<16xf32>
    %10 = vector.multi_reduction <add>, %7, %cst_11 [1] : vector<16x128xf32> to vector<16xf32>
    %11 = vector.shape_cast %10 : vector<16xf32> to vector<16x1xf32>
    %cst_12 = arith.constant 1.280000e+02 : f32
    %12 = vector.broadcast %cst_12 : f32 to vector<16x1xf32>
    %13 = arith.divf %11, %12 : vector<16x1xf32>
    %14 = vector.broadcast %13 : vector<16x1xf32> to vector<16x128xf32>
    %15 = arith.subf %7, %14 : vector<16x128xf32>
    %16 = arith.mulf %15, %15 : vector<16x128xf32>
    %cst_13 = arith.constant dense<0.000000e+00> : vector<16xf32>
    %17 = vector.multi_reduction <add>, %16, %cst_13 [1] : vector<16x128xf32> to vector<16xf32>
    %18 = vector.shape_cast %17 : vector<16xf32> to vector<16x1xf32>
    %cst_14 = arith.constant 1.280000e+02 : f32
    %19 = vector.broadcast %cst_14 : f32 to vector<16x1xf32>
    %20 = arith.divf %18, %19 : vector<16x1xf32>
    %21 = vector.broadcast %13 : vector<16x1xf32> to vector<16x128xf32>
    %22 = arith.subf %7, %21 : vector<16x128xf32>
    %cst_15 = arith.constant 9.99999974E-6 : f32
    %23 = vector.broadcast %cst_15 : f32 to vector<16x1xf32>
    %24 = arith.addf %20, %23 : vector<16x1xf32>
    %25 = math.rsqrt %24 : vector<16x1xf32>
    %26 = vector.broadcast %25 : vector<16x1xf32> to vector<16x128xf32>
    %27 = arith.mulf %22, %26 : vector<16x128xf32>
    %28 = vector.broadcast %8 : vector<1x128xf32> to vector<16x128xf32>
    %29 = arith.mulf %27, %28 : vector<16x128xf32>
    %30 = vector.broadcast %9 : vector<1x128xf32> to vector<16x128xf32>
    %31 = arith.addf %29, %30 : vector<16x128xf32>
    %c0_16 = arith.constant 0 : index
    %c0_17 = arith.constant 0 : index
    %32 = vector.load %arg7[%c0_16, %c0_17] : memref<16x128xf32, #tpu.memory_space<vmem>>, vector<16x128xf32>
    tpu.vector_store %arg7[%c0_16, %c0_17], %31 {strides = array<i32>} : memref<16x128xf32, #tpu.memory_space<vmem>>, vector<16x128xf32>,
    return
  }
  func.func @transform_0(%arg0: i32) -> (i32, i32) {
    %c0_i32 = arith.constant 0 : i32
    %c0_i32_0 = arith.constant 0 : i32
    return %arg0, %c0_i32 : i32, i32
  }
  func.func @transform_1(%arg0: i32) -> (i32, i32) {
    %c0_i32 = arith.constant 0 : i32
    %c0_i32_0 = arith.constant 0 : i32
    return %arg0, %c0_i32 : i32, i32
  }
  func.func @transform_2(%arg0: i32) -> (i32, i32) {
    %c0_i32 = arith.constant 0 : i32
    %c0_i32_0 = arith.constant 0 : i32
    %c0_i32_1 = arith.constant 0 : i32
    return %c0_i32, %c0_i32_0 : i32, i32
  }
  func.func @transform_3(%arg0: i32) -> (i32, i32) {
    %c0_i32 = arith.constant 0 : i32
    %c0_i32_0 = arith.constant 0 : i32
    %c0_i32_1 = arith.constant 0 : i32
    return %c0_i32, %c0_i32_0 : i32, i32
  }
  func.func @transform_4(%arg0: i32) -> (i32, i32) {
    %c0_i32 = arith.constant 0 : i32
    %c0_i32_0 = arith.constant 0 : i32
    %c0_i32_1 = arith.constant 0 : i32
    return %c0_i32, %c0_i32_0 : i32, i32
  }
  func.func @transform_5(%arg0: i32) -> (i32, i32) {
    %c0_i32 = arith.constant 0 : i32
    %c0_i32_0 = arith.constant 0 : i32
    %c0_i32_1 = arith.constant 0 : i32
    return %c0_i32, %c0_i32_0 : i32, i32
  }
  func.func @transform_6(%arg0: i32) -> (i32, i32) {
    %c0_i32 = arith.constant 0 : i32
    %c0_i32_0 = arith.constant 0 : i32
    return %arg0, %c0_i32 : i32, i32
  }
}

module attributes {stable_mosaic.version = 11 : i64} {
  func.func @_ffn_add_ln_kernel(%arg0: i32, %arg1: memref<16x128xf32, #tpu.memory_space<vmem>>, %arg2: memref<128x512xbf16, #tpu.memory_space<vmem>>, %arg3: memref<1x512xf32, #tpu.memory_space<vmem>>, %arg4: memref<512x128xbf16, #tpu.memory_space<vmem>>, %arg5: memref<1x128xf32, #tpu.memory_space<vmem>>, %arg6: memref<1x128xf32, #tpu.memory_space<vmem>>, %arg7: memref<1x128xf32, #tpu.memory_space<vmem>>, %arg8: memref<16x128xf32, #tpu.memory_space<vmem>>) attributes {dimension_semantics = [#tpu.dimension_semantics<parallel>], iteration_bounds = array<i64: 2>, scalar_prefetch = 0 : i64, scratch_operands = 0 : i64, tpu.core_type = #tpu.core_type<tc>, window_params = [{transform_indices = @transform_0, window_bounds = array<i64: 16, 128>}, {pipeline_mode = #tpu.pipeline_mode<synchronous>, transform_indices = @transform_1, window_bounds = array<i64: 128, 512>}, {pipeline_mode = #tpu.pipeline_mode<synchronous>, transform_indices = @transform_2, window_bounds = array<i64: 1, 512>}, {pipeline_mode = #tpu.pipeline_mode<synchronous>, transform_indices = @transform_3, window_bounds = array<i64: 512, 128>}, {pipeline_mode = #tpu.pipeline_mode<synchronous>, transform_indices = @transform_4, window_bounds = array<i64: 1, 128>}, {pipeline_mode = #tpu.pipeline_mode<synchronous>, transform_indices = @transform_5, window_bounds = array<i64: 1, 128>}, {pipeline_mode = #tpu.pipeline_mode<synchronous>, transform_indices = @transform_6, window_bounds = array<i64: 1, 128>}, {transform_indices = @transform_7, window_bounds = array<i64: 16, 128>}]} {
    %c0 = arith.constant 0 : index
    %c0_0 = arith.constant 0 : index
    %0 = vector.load %arg1[%c0, %c0_0] : memref<16x128xf32, #tpu.memory_space<vmem>>, vector<16x128xf32>
    %1 = arith.truncf %0 : vector<16x128xf32> to vector<16x128xbf16>
    %c0_1 = arith.constant 0 : index
    %c0_2 = arith.constant 0 : index
    %2 = vector.load %arg2[%c0_1, %c0_2] : memref<128x512xbf16, #tpu.memory_space<vmem>>, vector<128x512xbf16>
    %cst = arith.constant dense<0.000000e+00> : vector<16x512xf32>
    %3 = tpu.matmul %1, %2, %cst {dimension_numbers = #tpu.dot_dimension_numbers<[1], [0], [0], [1], [0, 0, 1, 1], [], []>} : vector<16x128xbf16>, vector<128x512xbf16>, vector<16x512xf32> -> vector<16x512xf32>
    %c0_3 = arith.constant 0 : index
    %c0_4 = arith.constant 0 : index
    %4 = vector.load %arg3[%c0_3, %c0_4] : memref<1x512xf32, #tpu.memory_space<vmem>>, vector<1x512xf32>
    %5 = vector.broadcast %4 : vector<1x512xf32> to vector<16x512xf32>
    %6 = arith.addf %3, %5 : vector<16x512xf32>
    %cst_5 = arith.constant 0.000000e+00 : f32
    %7 = vector.broadcast %cst_5 : f32 to vector<16x512xf32>
    %8 = arith.maximumf %6, %7 : vector<16x512xf32>
    %9 = arith.truncf %8 : vector<16x512xf32> to vector<16x512xbf16>
    %c0_6 = arith.constant 0 : index
    %c0_7 = arith.constant 0 : index
    %10 = vector.load %arg4[%c0_6, %c0_7] : memref<512x128xbf16, #tpu.memory_space<vmem>>, vector<512x128xbf16>
    %cst_8 = arith.constant dense<0.000000e+00> : vector<16x128xf32>
    %11 = tpu.matmul %9, %10, %cst_8 {dimension_numbers = #tpu.dot_dimension_numbers<[1], [0], [0], [1], [0, 0, 1, 1], [], []>} : vector<16x512xbf16>, vector<512x128xbf16>, vector<16x128xf32> -> vector<16x128xf32>
    %c0_9 = arith.constant 0 : index
    %c0_10 = arith.constant 0 : index
    %12 = vector.load %arg5[%c0_9, %c0_10] : memref<1x128xf32, #tpu.memory_space<vmem>>, vector<1x128xf32>
    %13 = vector.broadcast %12 : vector<1x128xf32> to vector<16x128xf32>
    %14 = arith.addf %11, %13 : vector<16x128xf32>
    %15 = arith.addf %0, %14 : vector<16x128xf32>
    %c0_11 = arith.constant 0 : index
    %c0_12 = arith.constant 0 : index
    %16 = vector.load %arg6[%c0_11, %c0_12] : memref<1x128xf32, #tpu.memory_space<vmem>>, vector<1x128xf32>
    %c0_13 = arith.constant 0 : index
    %c0_14 = arith.constant 0 : index
    %17 = vector.load %arg7[%c0_13, %c0_14] : memref<1x128xf32, #tpu.memory_space<vmem>>, vector<1x128xf32>
    %cst_15 = arith.constant dense<0.000000e+00> : vector<16xf32>
    %18 = vector.multi_reduction <add>, %15, %cst_15 [1] : vector<16x128xf32> to vector<16xf32>
    %19 = vector.shape_cast %18 : vector<16xf32> to vector<16x1xf32>
    %cst_16 = arith.constant 1.280000e+02 : f32
    %20 = vector.broadcast %cst_16 : f32 to vector<16x1xf32>
    %21 = arith.divf %19, %20 : vector<16x1xf32>
    %22 = vector.broadcast %21 : vector<16x1xf32> to vector<16x128xf32>
    %23 = arith.subf %15, %22 : vector<16x128xf32>
    %24 = arith.mulf %23, %23 : vector<16x128xf32>
    %cst_17 = arith.constant dense<0.000000e+00> : vector<16xf32>
    %25 = vector.multi_reduction <add>, %24, %cst_17 [1] : vector<16x128xf32> to vector<16xf32>
    %26 = vector.shape_cast %25 : vector<16xf32> to vector<16x1xf32>
    %cst_18 = arith.constant 1.280000e+02 : f32
    %27 = vector.broadcast %cst_18 : f32 to vector<16x1xf32>
    %28 = arith.divf %26, %27 : vector<16x1xf32>
    %29 = vector.broadcast %21 : vector<16x1xf32> to vector<16x128xf32>
    %30 = arith.subf %15, %29 : vector<16x128xf32>
    %cst_19 = arith.constant 9.99999974E-6 : f32
    %31 = vector.broadcast %cst_19 : f32 to vector<16x1xf32>
    %32 = arith.addf %28, %31 : vector<16x1xf32>
    %33 = math.rsqrt %32 : vector<16x1xf32>
    %34 = vector.broadcast %33 : vector<16x1xf32> to vector<16x128xf32>
    %35 = arith.mulf %30, %34 : vector<16x128xf32>
    %36 = vector.broadcast %16 : vector<1x128xf32> to vector<16x128xf32>
    %37 = arith.mulf %35, %36 : vector<16x128xf32>
    %38 = vector.broadcast %17 : vector<1x128xf32> to vector<16x128xf32>
    %39 = arith.addf %37, %38 : vector<16x128xf32>
    %c0_20 = arith.constant 0 : index
    %c0_21 = arith.constant 0 : index
    %40 = vector.load %arg8[%c0_20, %c0_21] : memref<16x128xf32, #tpu.memory_space<vmem>>, vector<16x128xf32>
    tpu.vector_store %arg8[%c0_20, %c0_21], %39 {strides = array<i32>} : memref<16x128xf32, #tpu.memory_space<vmem>>, vector<16x128xf32>,
    return
  }
  func.func @transform_0(%arg0: i32) -> (i32, i32) {
    %c0_i32 = arith.constant 0 : i32
    %c0_i32_0 = arith.constant 0 : i32
    return %arg0, %c0_i32 : i32, i32
  }
  func.func @transform_1(%arg0: i32) -> (i32, i32) {
    %c0_i32 = arith.constant 0 : i32
    %c0_i32_0 = arith.constant 0 : i32
    %c0_i32_1 = arith.constant 0 : i32
    return %c0_i32, %c0_i32_0 : i32, i32
  }
  func.func @transform_2(%arg0: i32) -> (i32, i32) {
    %c0_i32 = arith.constant 0 : i32
    %c0_i32_0 = arith.constant 0 : i32
    %c0_i32_1 = arith.constant 0 : i32
    return %c0_i32, %c0_i32_0 : i32, i32
  }
  func.func @transform_3(%arg0: i32) -> (i32, i32) {
    %c0_i32 = arith.constant 0 : i32
    %c0_i32_0 = arith.constant 0 : i32
    %c0_i32_1 = arith.constant 0 : i32
    return %c0_i32, %c0_i32_0 : i32, i32
  }
  func.func @transform_4(%arg0: i32) -> (i32, i32) {
    %c0_i32 = arith.constant 0 : i32
    %c0_i32_0 = arith.constant 0 : i32
    %c0_i32_1 = arith.constant 0 : i32
    return %c0_i32, %c0_i32_0 : i32, i32
  }
  func.func @transform_5(%arg0: i32) -> (i32, i32) {
    %c0_i32 = arith.constant 0 : i32
    %c0_i32_0 = arith.constant 0 : i32
    %c0_i32_1 = arith.constant 0 : i32
    return %c0_i32, %c0_i32_0 : i32, i32
  }
  func.func @transform_6(%arg0: i32) -> (i32, i32) {
    %c0_i32 = arith.constant 0 : i32
    %c0_i32_0 = arith.constant 0 : i32
    %c0_i32_1 = arith.constant 0 : i32
    return %c0_i32, %c0_i32_0 : i32, i32
  }
  func.func @transform_7(%arg0: i32) -> (i32, i32) {
    %c0_i32 = arith.constant 0 : i32
    %c0_i32_0 = arith.constant 0 : i32
    return %arg0, %c0_i32 : i32, i32
  }
}

module attributes {stable_mosaic.version = 11 : i64} {
  func.func @_qkv_attn_kernel(%arg0: i32, %arg1: memref<1x16x128xf32, #tpu.memory_space<vmem>>, %arg2: memref<128x384xbf16, #tpu.memory_space<vmem>>, %arg3: memref<1x384xf32, #tpu.memory_space<vmem>>, %arg4: memref<1x16x128xbf16, #tpu.memory_space<vmem>>) attributes {dimension_semantics = [#tpu.dimension_semantics<parallel>], iteration_bounds = array<i64: 2>, scalar_prefetch = 0 : i64, scratch_operands = 0 : i64, tpu.core_type = #tpu.core_type<tc>, window_params = [{transform_indices = @transform_0, window_bounds = array<i64: 1, 16, 128>}, {pipeline_mode = #tpu.pipeline_mode<synchronous>, transform_indices = @transform_1, window_bounds = array<i64: 128, 384>}, {pipeline_mode = #tpu.pipeline_mode<synchronous>, transform_indices = @transform_2, window_bounds = array<i64: 1, 384>}, {transform_indices = @transform_3, window_bounds = array<i64: 1, 16, 128>}]} {
    %c0 = arith.constant 0 : index
    %c0_0 = arith.constant 0 : index
    %c0_1 = arith.constant 0 : index
    %0 = vector.load %arg1[%c0, %c0_0, %c0_1] : memref<1x16x128xf32, #tpu.memory_space<vmem>>, vector<1x16x128xf32>
    %1 = vector.shape_cast %0 : vector<1x16x128xf32> to vector<16x128xf32>
    %2 = arith.truncf %1 : vector<16x128xf32> to vector<16x128xbf16>
    %c0_2 = arith.constant 0 : index
    %c0_3 = arith.constant 0 : index
    %3 = vector.load %arg2[%c0_2, %c0_3] : memref<128x384xbf16, #tpu.memory_space<vmem>>, vector<128x384xbf16>
    %cst = arith.constant dense<0.000000e+00> : vector<16x384xf32>
    %4 = tpu.matmul %2, %3, %cst {dimension_numbers = #tpu.dot_dimension_numbers<[1], [0], [0], [1], [0, 0, 1, 1], [], []>} : vector<16x128xbf16>, vector<128x384xbf16>, vector<16x384xf32> -> vector<16x384xf32>
    %c0_4 = arith.constant 0 : index
    %c0_5 = arith.constant 0 : index
    %5 = vector.load %arg3[%c0_4, %c0_5] : memref<1x384xf32, #tpu.memory_space<vmem>>, vector<1x384xf32>
    %6 = vector.broadcast %5 : vector<1x384xf32> to vector<16x384xf32>
    %7 = arith.addf %4, %6 : vector<16x384xf32>
    %8 = vector.extract_strided_slice %7 {offsets = [0, 0], sizes = [16, 128], strides = [1, 1]} : vector<16x384xf32> to vector<16x128xf32>
    %9 = vector.shape_cast %8 : vector<16x128xf32> to vector<16x8x16xf32>
    %10 = tpu.transpose %9, [1, 0, 2] : vector<16x8x16xf32> -> vector<8x16x16xf32>
    %11 = arith.truncf %10 : vector<8x16x16xf32> to vector<8x16x16xbf16>
    %12 = vector.extract_strided_slice %7 {offsets = [0, 128], sizes = [16, 128], strides = [1, 1]} : vector<16x384xf32> to vector<16x128xf32>
    %13 = vector.shape_cast %12 : vector<16x128xf32> to vector<16x8x16xf32>
    %14 = tpu.transpose %13, [1, 0, 2] : vector<16x8x16xf32> -> vector<8x16x16xf32>
    %15 = arith.truncf %14 : vector<8x16x16xf32> to vector<8x16x16xbf16>
    %16 = vector.extract_strided_slice %7 {offsets = [0, 256], sizes = [16, 128], strides = [1, 1]} : vector<16x384xf32> to vector<16x128xf32>
    %17 = vector.shape_cast %16 : vector<16x128xf32> to vector<16x8x16xf32>
    %18 = tpu.transpose %17, [1, 0, 2] : vector<16x8x16xf32> -> vector<8x16x16xf32>
    %19 = arith.truncf %18 : vector<8x16x16xf32> to vector<8x16x16xbf16>
    "tpu.trace_start"() <{level = 10 : i32, message = "htd,hsd->hts"}> : () -> ()
    %cst_6 = arith.constant dense<0.000000e+00> : vector<8x16x16xf32>
    %20 = tpu.matmul %11, %15, %cst_6 {dimension_numbers = #tpu.dot_dimension_numbers<[2], [2], [1], [1], [0, 0, 0, 1, 1, 1], [0], [0]>} : vector<8x16x16xbf16>, vector<8x16x16xbf16>, vector<8x16x16xf32> -> vector<8x16x16xf32>
    "tpu.trace_stop"() : () -> ()
    %cst_7 = arith.constant 2.500000e-01 : f32
    %21 = vector.broadcast %cst_7 : f32 to vector<8x16x16xf32>
    %22 = arith.mulf %20, %21 : vector<8x16x16xf32>
    %cst_8 = arith.constant dense<0xFF800000> : vector<8x16xf32>
    %23 = vector.multi_reduction <maximumf>, %22, %cst_8 [2] : vector<8x16x16xf32> to vector<8x16xf32>
    %24 = vector.shape_cast %23 : vector<8x16xf32> to vector<8x16x1xf32>
    %25 = vector.broadcast %24 : vector<8x16x1xf32> to vector<8x16x16xf32>
    %26 = arith.subf %22, %25 : vector<8x16x16xf32>
    %27 = math.exp %26 : vector<8x16x16xf32>
    %cst_9 = arith.constant dense<0.000000e+00> : vector<8x16xf32>
    %28 = vector.multi_reduction <add>, %27, %cst_9 [2] : vector<8x16x16xf32> to vector<8x16xf32>
    %29 = vector.shape_cast %28 : vector<8x16xf32> to vector<8x16x1xf32>
    %30 = vector.broadcast %29 : vector<8x16x1xf32> to vector<8x16x16xf32>
    %31 = arith.divf %27, %30 : vector<8x16x16xf32>
    %32 = arith.truncf %31 : vector<8x16x16xf32> to vector<8x16x16xbf16>
    "tpu.trace_start"() <{level = 10 : i32, message = "hts,hsd->htd"}> : () -> ()
    %cst_10 = arith.constant dense<0.000000e+00> : vector<8x16x16xf32>
    %33 = tpu.matmul %32, %19, %cst_10 {dimension_numbers = #tpu.dot_dimension_numbers<[2], [1], [1], [2], [0, 0, 0, 1, 1, 2], [0], [0]>} : vector<8x16x16xbf16>, vector<8x16x16xbf16>, vector<8x16x16xf32> -> vector<8x16x16xf32>
    "tpu.trace_stop"() : () -> ()
    %34 = tpu.transpose %33, [1, 0, 2] : vector<8x16x16xf32> -> vector<16x8x16xf32>
    %35 = vector.shape_cast %34 : vector<16x8x16xf32> to vector<1x16x128xf32>
    %36 = arith.truncf %35 : vector<1x16x128xf32> to vector<1x16x128xbf16>
    %c0_11 = arith.constant 0 : index
    %c0_12 = arith.constant 0 : index
    %c0_13 = arith.constant 0 : index
    %37 = vector.load %arg4[%c0_11, %c0_12, %c0_13] : memref<1x16x128xbf16, #tpu.memory_space<vmem>>, vector<1x16x128xbf16>
    tpu.vector_store %arg4[%c0_11, %c0_12, %c0_13], %36 {strides = array<i32>} : memref<1x16x128xbf16, #tpu.memory_space<vmem>>, vector<1x16x128xbf16>,
    return
  }
  func.func @transform_0(%arg0: i32) -> (i32, i32, i32) {
    %c0_i32 = arith.constant 0 : i32
    %c0_i32_0 = arith.constant 0 : i32
    %c0_i32_1 = arith.constant 0 : i32
    return %arg0, %c0_i32, %c0_i32_0 : i32, i32, i32
  }
  func.func @transform_1(%arg0: i32) -> (i32, i32) {
    %c0_i32 = arith.constant 0 : i32
    %c0_i32_0 = arith.constant 0 : i32
    %c0_i32_1 = arith.constant 0 : i32
    return %c0_i32, %c0_i32_0 : i32, i32
  }
  func.func @transform_2(%arg0: i32) -> (i32, i32) {
    %c0_i32 = arith.constant 0 : i32
    %c0_i32_0 = arith.constant 0 : i32
    %c0_i32_1 = arith.constant 0 : i32
    return %c0_i32, %c0_i32_0 : i32, i32
  }
  func.func @transform_3(%arg0: i32) -> (i32, i32, i32) {
    %c0_i32 = arith.constant 0 : i32
    %c0_i32_0 = arith.constant 0 : i32
    %c0_i32_1 = arith.constant 0 : i32
    return %arg0, %c0_i32, %c0_i32_0 : i32, i32, i32
  }
}

module attributes {stable_mosaic.version = 11 : i64} {
  func.func @_proj_add_ln_kernel(%arg0: i32, %arg1: memref<16x128xf32, #tpu.memory_space<vmem>>, %arg2: memref<16x128xbf16, #tpu.memory_space<vmem>>, %arg3: memref<128x128xbf16, #tpu.memory_space<vmem>>, %arg4: memref<1x128xf32, #tpu.memory_space<vmem>>, %arg5: memref<1x128xf32, #tpu.memory_space<vmem>>, %arg6: memref<1x128xf32, #tpu.memory_space<vmem>>, %arg7: memref<16x128xf32, #tpu.memory_space<vmem>>) attributes {dimension_semantics = [#tpu.dimension_semantics<parallel>], iteration_bounds = array<i64: 2>, scalar_prefetch = 0 : i64, scratch_operands = 0 : i64, tpu.core_type = #tpu.core_type<tc>, window_params = [{transform_indices = @transform_0, window_bounds = array<i64: 16, 128>}, {transform_indices = @transform_1, window_bounds = array<i64: 16, 128>}, {pipeline_mode = #tpu.pipeline_mode<synchronous>, transform_indices = @transform_2, window_bounds = array<i64: 128, 128>}, {pipeline_mode = #tpu.pipeline_mode<synchronous>, transform_indices = @transform_3, window_bounds = array<i64: 1, 128>}, {pipeline_mode = #tpu.pipeline_mode<synchronous>, transform_indices = @transform_4, window_bounds = array<i64: 1, 128>}, {pipeline_mode = #tpu.pipeline_mode<synchronous>, transform_indices = @transform_5, window_bounds = array<i64: 1, 128>}, {transform_indices = @transform_6, window_bounds = array<i64: 16, 128>}]} {
    %c0 = arith.constant 0 : index
    %c0_0 = arith.constant 0 : index
    %0 = vector.load %arg2[%c0, %c0_0] : memref<16x128xbf16, #tpu.memory_space<vmem>>, vector<16x128xbf16>
    %c0_1 = arith.constant 0 : index
    %c0_2 = arith.constant 0 : index
    %1 = vector.load %arg3[%c0_1, %c0_2] : memref<128x128xbf16, #tpu.memory_space<vmem>>, vector<128x128xbf16>
    %cst = arith.constant dense<0.000000e+00> : vector<16x128xf32>
    %2 = tpu.matmul %0, %1, %cst {dimension_numbers = #tpu.dot_dimension_numbers<[1], [0], [0], [1], [0, 0, 1, 1], [], []>} : vector<16x128xbf16>, vector<128x128xbf16>, vector<16x128xf32> -> vector<16x128xf32>
    %c0_3 = arith.constant 0 : index
    %c0_4 = arith.constant 0 : index
    %3 = vector.load %arg4[%c0_3, %c0_4] : memref<1x128xf32, #tpu.memory_space<vmem>>, vector<1x128xf32>
    %4 = vector.broadcast %3 : vector<1x128xf32> to vector<16x128xf32>
    %5 = arith.addf %2, %4 : vector<16x128xf32>
    %c0_5 = arith.constant 0 : index
    %c0_6 = arith.constant 0 : index
    %6 = vector.load %arg1[%c0_5, %c0_6] : memref<16x128xf32, #tpu.memory_space<vmem>>, vector<16x128xf32>
    %7 = arith.addf %6, %5 : vector<16x128xf32>
    %c0_7 = arith.constant 0 : index
    %c0_8 = arith.constant 0 : index
    %8 = vector.load %arg5[%c0_7, %c0_8] : memref<1x128xf32, #tpu.memory_space<vmem>>, vector<1x128xf32>
    %c0_9 = arith.constant 0 : index
    %c0_10 = arith.constant 0 : index
    %9 = vector.load %arg6[%c0_9, %c0_10] : memref<1x128xf32, #tpu.memory_space<vmem>>, vector<1x128xf32>
    %cst_11 = arith.constant dense<0.000000e+00> : vector<16xf32>
    %10 = vector.multi_reduction <add>, %7, %cst_11 [1] : vector<16x128xf32> to vector<16xf32>
    %11 = vector.shape_cast %10 : vector<16xf32> to vector<16x1xf32>
    %cst_12 = arith.constant 1.280000e+02 : f32
    %12 = vector.broadcast %cst_12 : f32 to vector<16x1xf32>
    %13 = arith.divf %11, %12 : vector<16x1xf32>
    %14 = vector.broadcast %13 : vector<16x1xf32> to vector<16x128xf32>
    %15 = arith.subf %7, %14 : vector<16x128xf32>
    %16 = arith.mulf %15, %15 : vector<16x128xf32>
    %cst_13 = arith.constant dense<0.000000e+00> : vector<16xf32>
    %17 = vector.multi_reduction <add>, %16, %cst_13 [1] : vector<16x128xf32> to vector<16xf32>
    %18 = vector.shape_cast %17 : vector<16xf32> to vector<16x1xf32>
    %cst_14 = arith.constant 1.280000e+02 : f32
    %19 = vector.broadcast %cst_14 : f32 to vector<16x1xf32>
    %20 = arith.divf %18, %19 : vector<16x1xf32>
    %21 = vector.broadcast %13 : vector<16x1xf32> to vector<16x128xf32>
    %22 = arith.subf %7, %21 : vector<16x128xf32>
    %cst_15 = arith.constant 9.99999974E-6 : f32
    %23 = vector.broadcast %cst_15 : f32 to vector<16x1xf32>
    %24 = arith.addf %20, %23 : vector<16x1xf32>
    %25 = math.rsqrt %24 : vector<16x1xf32>
    %26 = vector.broadcast %25 : vector<16x1xf32> to vector<16x128xf32>
    %27 = arith.mulf %22, %26 : vector<16x128xf32>
    %28 = vector.broadcast %8 : vector<1x128xf32> to vector<16x128xf32>
    %29 = arith.mulf %27, %28 : vector<16x128xf32>
    %30 = vector.broadcast %9 : vector<1x128xf32> to vector<16x128xf32>
    %31 = arith.addf %29, %30 : vector<16x128xf32>
    %c0_16 = arith.constant 0 : index
    %c0_17 = arith.constant 0 : index
    %32 = vector.load %arg7[%c0_16, %c0_17] : memref<16x128xf32, #tpu.memory_space<vmem>>, vector<16x128xf32>
    tpu.vector_store %arg7[%c0_16, %c0_17], %31 {strides = array<i32>} : memref<16x128xf32, #tpu.memory_space<vmem>>, vector<16x128xf32>,
    return
  }
  func.func @transform_0(%arg0: i32) -> (i32, i32) {
    %c0_i32 = arith.constant 0 : i32
    %c0_i32_0 = arith.constant 0 : i32
    return %arg0, %c0_i32 : i32, i32
  }
  func.func @transform_1(%arg0: i32) -> (i32, i32) {
    %c0_i32 = arith.constant 0 : i32
    %c0_i32_0 = arith.constant 0 : i32
    return %arg0, %c0_i32 : i32, i32
  }
  func.func @transform_2(%arg0: i32) -> (i32, i32) {
    %c0_i32 = arith.constant 0 : i32
    %c0_i32_0 = arith.constant 0 : i32
    %c0_i32_1 = arith.constant 0 : i32
    return %c0_i32, %c0_i32_0 : i32, i32
  }
  func.func @transform_3(%arg0: i32) -> (i32, i32) {
    %c0_i32 = arith.constant 0 : i32
    %c0_i32_0 = arith.constant 0 : i32
    %c0_i32_1 = arith.constant 0 : i32
    return %c0_i32, %c0_i32_0 : i32, i32
  }
  func.func @transform_4(%arg0: i32) -> (i32, i32) {
    %c0_i32 = arith.constant 0 : i32
    %c0_i32_0 = arith.constant 0 : i32
    %c0_i32_1 = arith.constant 0 : i32
    return %c0_i32, %c0_i32_0 : i32, i32
  }
  func.func @transform_5(%arg0: i32) -> (i32, i32) {
    %c0_i32 = arith.constant 0 : i32
    %c0_i32_0 = arith.constant 0 : i32
    %c0_i32_1 = arith.constant 0 : i32
    return %c0_i32, %c0_i32_0 : i32, i32
  }
  func.func @transform_6(%arg0: i32) -> (i32, i32) {
    %c0_i32 = arith.constant 0 : i32
    %c0_i32_0 = arith.constant 0 : i32
    return %arg0, %c0_i32 : i32, i32
  }
}

module attributes {stable_mosaic.version = 11 : i64} {
  func.func @_ffn_add_ln_kernel(%arg0: i32, %arg1: memref<16x128xf32, #tpu.memory_space<vmem>>, %arg2: memref<128x512xbf16, #tpu.memory_space<vmem>>, %arg3: memref<1x512xf32, #tpu.memory_space<vmem>>, %arg4: memref<512x128xbf16, #tpu.memory_space<vmem>>, %arg5: memref<1x128xf32, #tpu.memory_space<vmem>>, %arg6: memref<1x128xf32, #tpu.memory_space<vmem>>, %arg7: memref<1x128xf32, #tpu.memory_space<vmem>>, %arg8: memref<16x128xf32, #tpu.memory_space<vmem>>) attributes {dimension_semantics = [#tpu.dimension_semantics<parallel>], iteration_bounds = array<i64: 2>, scalar_prefetch = 0 : i64, scratch_operands = 0 : i64, tpu.core_type = #tpu.core_type<tc>, window_params = [{transform_indices = @transform_0, window_bounds = array<i64: 16, 128>}, {pipeline_mode = #tpu.pipeline_mode<synchronous>, transform_indices = @transform_1, window_bounds = array<i64: 128, 512>}, {pipeline_mode = #tpu.pipeline_mode<synchronous>, transform_indices = @transform_2, window_bounds = array<i64: 1, 512>}, {pipeline_mode = #tpu.pipeline_mode<synchronous>, transform_indices = @transform_3, window_bounds = array<i64: 512, 128>}, {pipeline_mode = #tpu.pipeline_mode<synchronous>, transform_indices = @transform_4, window_bounds = array<i64: 1, 128>}, {pipeline_mode = #tpu.pipeline_mode<synchronous>, transform_indices = @transform_5, window_bounds = array<i64: 1, 128>}, {pipeline_mode = #tpu.pipeline_mode<synchronous>, transform_indices = @transform_6, window_bounds = array<i64: 1, 128>}, {transform_indices = @transform_7, window_bounds = array<i64: 16, 128>}]} {
    %c0 = arith.constant 0 : index
    %c0_0 = arith.constant 0 : index
    %0 = vector.load %arg1[%c0, %c0_0] : memref<16x128xf32, #tpu.memory_space<vmem>>, vector<16x128xf32>
    %1 = arith.truncf %0 : vector<16x128xf32> to vector<16x128xbf16>
    %c0_1 = arith.constant 0 : index
    %c0_2 = arith.constant 0 : index
    %2 = vector.load %arg2[%c0_1, %c0_2] : memref<128x512xbf16, #tpu.memory_space<vmem>>, vector<128x512xbf16>
    %cst = arith.constant dense<0.000000e+00> : vector<16x512xf32>
    %3 = tpu.matmul %1, %2, %cst {dimension_numbers = #tpu.dot_dimension_numbers<[1], [0], [0], [1], [0, 0, 1, 1], [], []>} : vector<16x128xbf16>, vector<128x512xbf16>, vector<16x512xf32> -> vector<16x512xf32>
    %c0_3 = arith.constant 0 : index
    %c0_4 = arith.constant 0 : index
    %4 = vector.load %arg3[%c0_3, %c0_4] : memref<1x512xf32, #tpu.memory_space<vmem>>, vector<1x512xf32>
    %5 = vector.broadcast %4 : vector<1x512xf32> to vector<16x512xf32>
    %6 = arith.addf %3, %5 : vector<16x512xf32>
    %cst_5 = arith.constant 0.000000e+00 : f32
    %7 = vector.broadcast %cst_5 : f32 to vector<16x512xf32>
    %8 = arith.maximumf %6, %7 : vector<16x512xf32>
    %9 = arith.truncf %8 : vector<16x512xf32> to vector<16x512xbf16>
    %c0_6 = arith.constant 0 : index
    %c0_7 = arith.constant 0 : index
    %10 = vector.load %arg4[%c0_6, %c0_7] : memref<512x128xbf16, #tpu.memory_space<vmem>>, vector<512x128xbf16>
    %cst_8 = arith.constant dense<0.000000e+00> : vector<16x128xf32>
    %11 = tpu.matmul %9, %10, %cst_8 {dimension_numbers = #tpu.dot_dimension_numbers<[1], [0], [0], [1], [0, 0, 1, 1], [], []>} : vector<16x512xbf16>, vector<512x128xbf16>, vector<16x128xf32> -> vector<16x128xf32>
    %c0_9 = arith.constant 0 : index
    %c0_10 = arith.constant 0 : index
    %12 = vector.load %arg5[%c0_9, %c0_10] : memref<1x128xf32, #tpu.memory_space<vmem>>, vector<1x128xf32>
    %13 = vector.broadcast %12 : vector<1x128xf32> to vector<16x128xf32>
    %14 = arith.addf %11, %13 : vector<16x128xf32>
    %15 = arith.addf %0, %14 : vector<16x128xf32>
    %c0_11 = arith.constant 0 : index
    %c0_12 = arith.constant 0 : index
    %16 = vector.load %arg6[%c0_11, %c0_12] : memref<1x128xf32, #tpu.memory_space<vmem>>, vector<1x128xf32>
    %c0_13 = arith.constant 0 : index
    %c0_14 = arith.constant 0 : index
    %17 = vector.load %arg7[%c0_13, %c0_14] : memref<1x128xf32, #tpu.memory_space<vmem>>, vector<1x128xf32>
    %cst_15 = arith.constant dense<0.000000e+00> : vector<16xf32>
    %18 = vector.multi_reduction <add>, %15, %cst_15 [1] : vector<16x128xf32> to vector<16xf32>
    %19 = vector.shape_cast %18 : vector<16xf32> to vector<16x1xf32>
    %cst_16 = arith.constant 1.280000e+02 : f32
    %20 = vector.broadcast %cst_16 : f32 to vector<16x1xf32>
    %21 = arith.divf %19, %20 : vector<16x1xf32>
    %22 = vector.broadcast %21 : vector<16x1xf32> to vector<16x128xf32>
    %23 = arith.subf %15, %22 : vector<16x128xf32>
    %24 = arith.mulf %23, %23 : vector<16x128xf32>
    %cst_17 = arith.constant dense<0.000000e+00> : vector<16xf32>
    %25 = vector.multi_reduction <add>, %24, %cst_17 [1] : vector<16x128xf32> to vector<16xf32>
    %26 = vector.shape_cast %25 : vector<16xf32> to vector<16x1xf32>
    %cst_18 = arith.constant 1.280000e+02 : f32
    %27 = vector.broadcast %cst_18 : f32 to vector<16x1xf32>
    %28 = arith.divf %26, %27 : vector<16x1xf32>
    %29 = vector.broadcast %21 : vector<16x1xf32> to vector<16x128xf32>
    %30 = arith.subf %15, %29 : vector<16x128xf32>
    %cst_19 = arith.constant 9.99999974E-6 : f32
    %31 = vector.broadcast %cst_19 : f32 to vector<16x1xf32>
    %32 = arith.addf %28, %31 : vector<16x1xf32>
    %33 = math.rsqrt %32 : vector<16x1xf32>
    %34 = vector.broadcast %33 : vector<16x1xf32> to vector<16x128xf32>
    %35 = arith.mulf %30, %34 : vector<16x128xf32>
    %36 = vector.broadcast %16 : vector<1x128xf32> to vector<16x128xf32>
    %37 = arith.mulf %35, %36 : vector<16x128xf32>
    %38 = vector.broadcast %17 : vector<1x128xf32> to vector<16x128xf32>
    %39 = arith.addf %37, %38 : vector<16x128xf32>
    %c0_20 = arith.constant 0 : index
    %c0_21 = arith.constant 0 : index
    %40 = vector.load %arg8[%c0_20, %c0_21] : memref<16x128xf32, #tpu.memory_space<vmem>>, vector<16x128xf32>
    tpu.vector_store %arg8[%c0_20, %c0_21], %39 {strides = array<i32>} : memref<16x128xf32, #tpu.memory_space<vmem>>, vector<16x128xf32>,
    return
  }
  func.func @transform_0(%arg0: i32) -> (i32, i32) {
    %c0_i32 = arith.constant 0 : i32
    %c0_i32_0 = arith.constant 0 : i32
    return %arg0, %c0_i32 : i32, i32
  }
  func.func @transform_1(%arg0: i32) -> (i32, i32) {
    %c0_i32 = arith.constant 0 : i32
    %c0_i32_0 = arith.constant 0 : i32
    %c0_i32_1 = arith.constant 0 : i32
    return %c0_i32, %c0_i32_0 : i32, i32
  }
  func.func @transform_2(%arg0: i32) -> (i32, i32) {
    %c0_i32 = arith.constant 0 : i32
    %c0_i32_0 = arith.constant 0 : i32
    %c0_i32_1 = arith.constant 0 : i32
    return %c0_i32, %c0_i32_0 : i32, i32
  }
  func.func @transform_3(%arg0: i32) -> (i32, i32) {
    %c0_i32 = arith.constant 0 : i32
    %c0_i32_0 = arith.constant 0 : i32
    %c0_i32_1 = arith.constant 0 : i32
    return %c0_i32, %c0_i32_0 : i32, i32
  }
  func.func @transform_4(%arg0: i32) -> (i32, i32) {
    %c0_i32 = arith.constant 0 : i32
    %c0_i32_0 = arith.constant 0 : i32
    %c0_i32_1 = arith.constant 0 : i32
    return %c0_i32, %c0_i32_0 : i32, i32
  }
  func.func @transform_5(%arg0: i32) -> (i32, i32) {
    %c0_i32 = arith.constant 0 : i32
    %c0_i32_0 = arith.constant 0 : i32
    %c0_i32_1 = arith.constant 0 : i32
    return %c0_i32, %c0_i32_0 : i32, i32
  }
  func.func @transform_6(%arg0: i32) -> (i32, i32) {
    %c0_i32 = arith.constant 0 : i32
    %c0_i32_0 = arith.constant 0 : i32
    %c0_i32_1 = arith.constant 0 : i32
    return %c0_i32, %c0_i32_0 : i32, i32
  }
  func.func @transform_7(%arg0: i32) -> (i32, i32) {
    %c0_i32 = arith.constant 0 : i32
    %c0_i32_0 = arith.constant 0 : i32
    return %arg0, %c0_i32 : i32, i32
  }
}

</mosaic_0001>

<bundles_post_ra>
// kernel: tpu_custom_call.1
= control target key start
LH: loop header
LB: loop body
LE: loop exit
PB: predicated region body
PF: predicated region fallthrough
CT: control target
= control target key end

     0   :  { %7 = vsyncpa [#allocation3], 0  ;;  %s649_s0 = inlined_call_operand.hbm [shape: f32[16,128], index: 0, kind: input, shape index: {}]   ;;  %s650_s1 = inlined_call_operand.hbm [shape: f32[8,128], index: 1, kind: input, shape index: {}]   ;;  %s651_s2 = inlined_call_operand.hbm [shape: f32[16,128], index: 2, kind: output, shape index: {}]  }
   0x1   :  { %9 = vsyncpa [#allocation3 + $0x1], 0 }
   0x2   :  { %10 = vsyncpa [#allocation6], 0 }
   0x3   :  { %11 = vsyncpa [#allocation4], 0 }
   0x4   :  { %13 = vsyncpa [#allocation4 + $0x1], 0  ;;  %s483_s9 = smov 0   ;;  %s485_s10 = smov 0  }
   0x5   :  { %s487_s11 = smov 0   ;;  %s489_s12 = smov 0  }
   0x6 LB: > { %s504_s13 = sadd.s32 4294967295, %s463_s12   ;;  %s270_s14 = sadd.s32 4294967294, %s463_s12   ;;  %s463_s12 = sphi %s489_s12, %s674_s12   ;;  %s459_s11 = sphi %s487_s11, %s673_s11   ;;  %s455_s10 = sphi %s485_s10, %s672_s10   ;;  %s451_s9 = sphi %s483_s9, %s671_s9  }
   0x7   : > { %p39_p0 = scmp.ne.s32.totalorder %s455_s10, %s451_s9  ;;  %p652_p1 = scmp.eq.s32.totalorder %s504_s13, 0 }
   0x8   : > { %p90_p3 = scmp.eq.s32.totalorder %s270_s14, 1  ;;  %p271_p5 = scmp.ge.s32.totalorder %s463_s12, 1 }
   0x9   : > { %p513_p4 = por %p652_p1, %p39_p0  ;;  %p97_p7 = scmp.lt.s32.totalorder %s463_s12, 3 }
   0xa   : > { %p518_p6 = por %p90_p3, %p39_p0  ;;  %s465_s18 = smov [#allocation5]  }
   0xb   : > { %s656_s15 = scalar_select %p513_p4, 1, 0 }
   0xc   : > { %s657_s16 = scalar_select %p518_p6, 1, 0 }
   0xd   : > { %p523_p8 = pnand %p271_p5, %p97_p7  ;;  %s110_s19 = sshll.u32 %s465_s18, 4  ;;  %s111_s19 = int_to_ptr.vmem [resolvable:$true] %s110_s19 }
   0xe   : > { %s531_s20 = sadd.s32 1, %s463_s12   ;;  %s26_s24 = sadd.s32 1, %s459_s11 }
   0xf   : > { %s658_s17 = scalar_select %p523_p8, 1, 0 }
  0x10   : > { %p292_p10 = pneg %p523_p8  ;;  %s23_s22 = ssub.s32 %s463_s12, %s531_s20 }
  0x11   : > { %p541_p12 = scmp.eq.s32.totalorder %s23_s22, 0  ;;  %p33_p13 = scmp.ne.s32.totalorder %s459_s11, %s455_s10 }
  0x12   : > { %p535_p11 = pnand %p292_p10, %p652_p1  ;;  %s352_s25 = scalar_lea.vmem %s111_s19, 128 }
  0x13   : > { %p353_p3 = scmp.ne.s32.totalorder %s111_s19, %s352_s25  ;;  %p360_p9 = scmp.lt.s32.totalorder %s111_s19, %s111_s19 }
  0x14   : > { %p343_p0 = pneg %p535_p11  ;;  %p361_p2 = scmp.lt.s32.totalorder %s352_s25, %s352_s25 }
  0x16   : > { %p355_p5 = pnand %p353_p3, %p343_p0  ;;  %p362_p10 = por %p361_p2, %p360_p9 }
  0x18   : > { %p356_p7 = pneg %p355_p5 }
  0x1a   : > { %p363_p1 = pnand %p362_p10, %p356_p7 }
  0x1c   : > { %366 = shalt.err (!%p363_p1)
}
  0x1d   : > { %295 = dma.hbm_to_vmem [thread:$0]  (!%p535_p11), %s650_s1, 128, %s111_s19, [#allocation6]  }
  0x1e   : > { %s558_s28 = scalar_select %p541_p12, %s459_s11, %s26_s24  }
  0x1f   : > { %p34_p1 = scmp.eq.s32.totalorder %s463_s12, 0  ;;  %p661_p2 = scmp.eq.s32.totalorder %s504_s13, 1 }
  0x20   : > { %p305_p0 = scmp.lt.s32.totalorder %s463_s12, 2  ;;  %s121_s30 = sand.u32 1, %s459_s11  }
  0x21   : > { %p566_p9 = por %p661_p2, %p33_p13  ;;  %p35_p3 = por %p34_p1, %p33_p13 }
  0x22   : > { %s274_s3 = sshll.u32 %s121_s30, 3  ;;  %s275_s4 = sshll.u32 %s463_s12, 7 }
  0x23   : > { %s662_s29 = scalar_select %p566_p9, 1, 0 }
  0x24   : > { %s579_s7 = scalar_lea.hbm %s649_s0, %s275_s4  ;;  %s125_s8 = scalar_lea.vmem [#allocation2], %s274_s3 }
  0x25   : > { %s132_s14 = sshll.u32 %s125_s8, 4  ;;  %p581_p11 = pnand %p305_p0, %p35_p3  ;;  %s133_s14 = int_to_ptr.vmem [resolvable:$true] %s132_s14 }
  0x26   : > { %s122_s19 = scalar_lea.sflag [#allocation3], %s121_s30  ;;  %s367_s21 = scalar_lea.hbm %s579_s7, 128 }
  0x27   : > { %p368_p12 = scmp.ne.s32.totalorder %s579_s7, %s367_s21  ;;  %p369_p13 = pneg %p581_p11 }
  0x28   : > { %s372_s24 = scalar_lea.hbm %s649_s0, 256  ;;  %p373_p10 = scmp.lt.s32.totalorder %s579_s7, %s649_s0 }
  0x29   : > { %p370_p5 = pnand %p369_p13, %p368_p12  ;;  %p374_p1 = scmp.lt.s32.totalorder %s372_s24, %s367_s21 }
  0x2b   : > { %p371_p7 = pneg %p370_p5  ;;  %p375_p2 = por %p374_p1, %p373_p10 }
  0x2d   : > { %p376_p0 = pnand %p375_p2, %p371_p7 }
  0x2f   : > { %379 = shalt.err (!%p376_p0)
}
  0x30   : > { %s380_s27 = scalar_lea.vmem %s133_s14, 128  ;;  %s466_s30 = smov [#allocation2]  }
  0x31   : > { %p381_p3 = scmp.ne.s32.totalorder %s133_s14, %s380_s27  ;;  %s385_s3 = sshll.u32 %s466_s30, 4  ;;  %s386_s3 = int_to_ptr.vmem [resolvable:$false] %s385_s3 }
  0x32   : > { %s387_s4 = scalar_lea.vmem %s386_s3, 256  ;;  %p388_p12 = scmp.lt.s32.totalorder %s133_s14, %s386_s3 }
  0x33   : > { %p383_p6 = pnand %p381_p3, %p369_p13  ;;  %p389_p5 = scmp.lt.s32.totalorder %s387_s4, %s380_s27 }
  0x35   : > { %p384_p9 = pneg %p383_p6  ;;  %p390_p4 = por %p389_p5, %p388_p12 }
  0x37   : > { %p391_p8 = pnand %p390_p4, %p384_p9 }
  0x39   : > { %394 = shalt.err (!%p391_p8)
}
  0x3a   : > { %299 = dma.hbm_to_vmem [thread:$0]  (!%p581_p11), %s579_s7, 128, %s133_s14, %s122_s19  }
  0x3b   : > { %p664_p7 = scmp.ne.s32.totalorder %s658_s17, 0 }
  0x3c   : > { %s602_s5 = sand.u32 (!%p664_p7), 1, %s455_s10   ;;  %p665_p6 = scmp.ne.s32.totalorder (!%p664_p7), %s656_s15, 0 }
  0x3d   : > { %141 = sbr.rel (%p664_p7) target bundleno = 95 (0x5f), region = 28  ;;  %s277_s6 = sshll.u32 (!%p664_p7), %s602_s5, 3 }
  0x3e   : > { %s144_s8 = scalar_lea.sflag (!%p664_p7), [#allocation3], %s602_s5  ;;  %s147_s21 = scalar_lea.vmem (!%p664_p7), [#allocation2], %s277_s6 }
  0x42   : > { %438 = dma.done.wait (%p665_p6), %s144_s8, 128  }
  0x43   : > { %440 = vsyncadd (%p665_p6), %s144_s8, 4294967168  ;;  %p666_p4 = scmp.eq.s32.totalorder %s504_s13, 0 }
  0x45   : > { %442 = dma.done.wait (%p666_p4), [#allocation6], 128   ;;  %p667_p8 = pmov %p666_p4 }
  0x46   : > { %s171_s17 = scalar_lea.vmem [#allocation7], %s277_s6  ;;  %s281_s14 = sshll.u32 %s504_s13, 7  ;;  %v172_v0 = vld [vmem:[%s147_s21] sm:$0xff]  ;;  %v173_v1 = vld [vmem:[#allocation5] sm:$0xff] }
  0x47   : > { %444 = vsyncadd (%p667_p8), [#allocation6], 4294967168  ;;  %s190_s7 = sshll.u32 %s171_s17, 4  ;;  %v174_v2 = vadd.f32 %v173_v1, %v172_v0  ;;  %s188_s15 = scalar_lea.hbm %s651_s2, %s281_s14  ;;  %s191_s7 = int_to_ptr.vmem [resolvable:$true] %s190_s7 }
  0x48   : > { %s177_s22 = scalar_lea.sflag [#allocation4], %s602_s5  ;;  %s395_s23 = scalar_lea.vmem %s191_s7, 128 }
  0x49   : > { %175 = vst [vmem:[%s171_s17] sm:$0xff] %v174_v2  ;;  %p396_p9 = scmp.ne.s32.totalorder %s191_s7, %s395_s23  ;;  %p668_p11 = scmp.ne.s32.totalorder %s662_s29, 0 }
  0x4a   : > { %s467_s24 = smov [#allocation7]  }
  0x4b   : > { %p397_p13 = pnand %p396_p9, %p668_p11  ;;  %s399_s25 = sshll.u32 %s467_s24, 4  ;;  %s400_s25 = int_to_ptr.vmem [resolvable:$false] %s399_s25 }
  0x4c   : > { %s401_s26 = scalar_lea.vmem %s400_s25, 256  ;;  %p402_p1 = scmp.lt.s32.totalorder %s191_s7, %s400_s25 }
  0x4d   : > { %p398_p10 = pneg %p397_p13  ;;  %p403_p2 = scmp.lt.s32.totalorder %s401_s26, %s395_s23 }
  0x4f   : > { %p404_p0 = por %p403_p2, %p402_p1 }
  0x51   : > { %p405_p3 = pnand %p404_p0, %p398_p10 }
  0x53   : > { %408 = shalt.err (!%p405_p3)
}
  0x54   : > { %s409_s13 = scalar_lea.hbm %s188_s15, 128  ;;  %s413_s3 = scalar_lea.hbm %s651_s2, 256 }
  0x55   : > { %p410_p12 = scmp.ne.s32.totalorder %s188_s15, %s409_s13  ;;  %p414_p6 = scmp.lt.s32.totalorder %s188_s15, %s651_s2 }
  0x56   : > { %p415_p4 = scmp.lt.s32.totalorder %s413_s3, %s409_s13 }
  0x57   : > { %p411_p5 = pnand %p410_p12, %p668_p11 }
  0x58   : > { %p416_p8 = por %p415_p4, %p414_p6 }
  0x59   : > { %p412_p7 = pneg %p411_p5 }
  0x5b   : > { %p417_p9 = pnand %p416_p8, %p412_p7 }
  0x5d   : > { %420 = shalt.err (!%p417_p9)
}
  0x5e   : > { %290 = dma.vmem_to_hbm [thread:$0]  (%p668_p11), %s191_s7, 128, %s188_s15, %s177_s22  }
  0x5f PF: > { %s202_s6 = sand.u32 1, %s451_s9   ;;  %p669_p13 = scmp.ne.s32.totalorder %s657_s16, 0 }
  0x60   : > { %p670_p10 = scmp.ge.s32.totalorder %s463_s12, 2  ;;  %s203_s8 = scalar_lea.sflag [#allocation4], %s202_s6 }
  0x62   : > { %p301_p1 = pnand %p670_p10, %p669_p13 }
  0x64   : > { %p302_p2 = pneg %p301_p1 }
  0x66   : > { %446 = dma.done.wait (%p302_p2), %s203_s8, 128  }
  0x67   : > { %448 = vsyncadd (%p302_p2), %s203_s8, 4294967168  ;;  %p16_p0 = scmp.ge.s32.totalorder %s531_s20, 4   ;;  %s671_s9 = smov %s455_s10 }
  0x68   : > { %s672_s10 = smov %s459_s11  ;;  %s673_s11 = smov %s558_s28 }
  0x69   : > { %s674_s12 = smov %s531_s20  ;;  %18 = sbr.rel (!%p16_p0) target bundleno = 6 (0x6), region = 77 }
  0x6e   :  { %208 = vsyncpa [#allocation3], 1 }
  0x6f   :  { %210 = vsyncpa [#allocation3 + $0x1], 1 }
  0x70   :  { %211 = vsyncpa [#allocation6], 1 }
  0x71   :  { %212 = vsyncpa [#allocation4], 1 }
  0x72   :  { %214 = vsyncpa [#allocation4 + $0x1], 1 }

// kernel: tds_transformer.7
= control target key start
LH: loop header
LB: loop body
LE: loop exit
PB: predicated region body
PF: predicated region fallthrough
CT: control target
= control target key end

     0   :  { %s328_s12 = smov 0   ;;  %s358_s0 = inlined_call_operand.vmem [shape: f32[32,128], index: 0, kind: input, shape index: {}]   ;;  %s359_s1 = inlined_call_operand.vmem [shape: f32[1,128], index: 1, kind: input, shape index: {}]   ;;  %s360_s2 = inlined_call_operand.vmem [shape: f32[1,128], index: 2, kind: input, shape index: {}]   ;;  %s361_s3 = inlined_call_operand.vmem [shape: f32[32,128], index: 3, kind: output, shape index: {}]  }
   0x1 LB: > { %s275_s13 = sadd.s32 4294967295, %s306_s12   ;;  %p279_p0 = scmp.ge.s32.totalorder %s306_s12, 1  ;;  %s306_s12 = sphi %s328_s12, %s13_s12  }
   0x2   : > { %p138_p1 = scmp.lt.s32.totalorder %s306_s12, 3 }
   0x4   : > { %p139_p2 = pnand %p279_p0, %p138_p1 }
   0x5   : > { %s280_s14 = sshll.u32 (!%p139_p2), %s275_s13, 1 }
   0x6   : > { %142 = sbr.rel (%p139_p2) target bundleno = 326 (0x146), region = 32  ;;  %p163_p3 = scmp.lt.s32.totalorder (!%p139_p2), %s280_s14, 3 }
   0xb   : > { %s363_s14 = smov (!%p163_p3, %s280_s14), 3  ;;  %v284_v17 = vld [vmem:[%s359_s1] ss:$0 sm:$0xff] }
   0xc   : > { %s281_s15 = sshll.u32 %s363_s14, 3  ;;  %v285_v19 = vld [vmem:[%s360_s2] ss:$0 sm:$0xff] }
   0xd   : > { %s166_s18 = scalar_lea.vmem %s358_s0, %s281_s15  ;;  %s172_s25 = scalar_lea.vmem %s361_s3, %s281_s15 }
   0xe   : > { %v174_v0 = vld [vmem:[%s166_s18] sm:$0xff]  ;;  %v175_v1 = vld [vmem:[%s166_s18 + $0x8] sm:$0xff] }
   0xf   : > { %178 = vadd.xlane.f32.xlu0 %v174_v0 }
  0x13   : > { %180 = vadd.xlane.f32.xlu0 %v175_v1 }
  0x98   : > { %v179_v2 = vpop.xlane.xlu0 %178 }
  0x99   : > { %v183_v3 = vmul.f32 0.0078125, %v179_v2 }
  0x9b   : > { %v185_v4 = vsub.f32 %v174_v0, %v183_v3 }
  0x9c   : > { %v181_v5 = vpop.xlane.xlu0 %180 }
  0x9d   : > { %v184_v6 = vmul.f32 0.0078125, %v181_v5  ;;  %v187_v7 = vmul.f32 %v185_v4, %v185_v4 }
  0x9f   : > { %v186_v8 = vsub.f32 %v175_v1, %v184_v6  ;;  %189 = vadd.xlane.f32.xlu1 %v187_v7 }
  0xa1   : > { %v188_v9 = vmul.f32 %v186_v8, %v186_v8 }
  0xa3   : > { %191 = vadd.xlane.f32.xlu1 %v188_v9 }
 0x128   : > { %v190_v10 = vpop.xlane.xlu1 %189 }
 0x129   : > { %v193_v11 = vmul.f32 0.0078125, %v190_v10 }
 0x12b   : > { %v195_v12 = vadd.f32 1e-05, %v193_v11 }
 0x12c   : > { %v192_v13 = vpop.xlane.xlu1 %191 }
 0x12d   : > { %296 = vrsqrt.f32 %v195_v12  ;;  %v194_v14 = vmul.f32 0.0078125, %v192_v13 }
 0x12f   : > { %v196_v15 = vadd.f32 1e-05, %v194_v14 }
 0x131   : > { %298 = vrsqrt.f32 %v196_v15 }
 0x13a   : > { %v297_v16 = vpop.eup %296 }
 0x13b   : > { %v199_v18 = vmul.f32 %v297_v16, %v185_v4 }
 0x13d   : > { %v207_v20 = vmul.f32 %v284_v17, %v199_v18 }
 0x13e   : > { %v299_v21 = vpop.eup %298 }
 0x13f   : > { %v215_v22 = vadd.f32 %v285_v19, %v207_v20  ;;  %v200_v23 = vmul.f32 %v299_v21, %v186_v8 }
 0x141   : > { %217 = vst [vmem:[%s172_s25] sm:$0xff] %v215_v22  ;;  %v208_v24 = vmul.f32 %v284_v17, %v200_v23 }
 0x143   : > { %v216_v25 = vadd.f32 %v285_v19, %v208_v24 }
 0x145   : > { %218 = vst [vmem:[%s172_s25 + $0x8] sm:$0xff] %v216_v25 }
 0x146 PF: > { %s13_s12 = sadd.s32 1, %s306_s12  }
 0x147   : > { %p10_p4 = scmp.ge.s32.totalorder %s13_s12, 4  }
 0x149   :  { %12 = sbr.rel (!%p10_p4) target bundleno = 1 (0x1), region = 62 }

// kernel: tds_transformer.9
= control target key start
LH: loop header
LB: loop body
LE: loop exit
PB: predicated region body
PF: predicated region fallthrough
CT: control target
= control target key end

     0   :  { %11 = vsyncpa [#allocation3], 0  ;;  %s704_s21 = smov 0   ;;  %s783_s0 = inlined_call_operand.vmem [shape: f32[32,128], index: 0, kind: input, shape index: {}, may-alias: {0,6}]   ;;  %s784_s1 = inlined_call_operand.vmem [shape: bf16[32,128], index: 1, kind: input, shape index: {}]   ;;  %s785_s2 = inlined_call_operand.vmem [shape: bf16[128,128], index: 2, kind: input, shape index: {}]   ;;  %s786_s3 = inlined_call_operand.vmem [shape: f32[1,128], index: 3, kind: input, shape index: {}]   ;;  %s787_s4 = inlined_call_operand.vmem [shape: f32[1,128], index: 4, kind: input, shape index: {}]   ;;  %s788_s5 = inlined_call_operand.hbm [shape: f32[1,128], index: 5, kind: input, shape index: {}]   ;;  %s789_s6 = inlined_call_operand.vmem [shape: f32[32,128], index: 6, kind: output, shape index: {}, may-alias: {0,6}]  }
   0x1 LB: > { %s538_s22 = sadd.s32 4294967295, %s664_s21   ;;  %p540_p0 = scmp.ge.s32.totalorder %s664_s21, 1  ;;  %s664_s21 = sphi %s704_s21, %s17_s21  }
   0x2   : > { %p184_p1 = scmp.lt.s32.totalorder %s664_s21, 3  ;;  %p716_p3 = scmp.eq.s32.totalorder %s538_s22, 0 }
   0x3   : > { %s666_s25 = smov [#allocation2]  }
   0x4   : > { %p712_p2 = pnand %p540_p0, %p184_p1  ;;  %s206_s26 = sshll.u32 %s666_s25, 4  ;;  %s207_s26 = int_to_ptr.vmem [resolvable:$true] %s206_s26 }
   0x5   : > { %s639_s27 = scalar_lea.vmem %s207_s26, 16  ;;  %s646_s28 = scalar_lea.vmem %s207_s26, 32 }
   0x6   : > { %p598_p4 = pneg %p712_p2  ;;  %p640_p7 = scmp.ne.s32.totalorder %s207_s26, %s639_s27 }
   0x7   : > { %p647_p10 = scmp.lt.s32.totalorder %s207_s26, %s207_s26  ;;  %p648_p11 = scmp.lt.s32.totalorder %s646_s28, %s639_s27 }
   0x8   : > { %p599_p5 = pnand %p716_p3, %p598_p4 }
   0x9   : > { %p649_p12 = por %p648_p11, %p647_p10 }
   0xa   : > { %p630_p6 = pneg %p599_p5 }
   0xc   : > { %p642_p8 = pnand %p640_p7, %p630_p6 }
   0xe   : > { %p643_p9 = pneg %p642_p8 }
  0x10   : > { %p650_p13 = pnand %p649_p12, %p643_p9 }
  0x12   : > { %653 = shalt.err (!%p650_p13)
}
  0x13   : > { %601 = dma.hbm_to_vmem [thread:$0]  (!%p599_p5), %s788_s5, 16, %s207_s26, [#allocation3]  }
  0x14   : > { %237 = sbr.rel (%p712_p2) target bundleno = 567 (0x237), region = 44 }
  0x19   : > { %659 = dma.done.wait (%p716_p3), [#allocation3], 16  }
  0x1a   : > { %661 = vsyncadd (%p716_p3), [#allocation3], 4294967280  ;;  %s545_s7 = sshll.u32 %s538_s22, 1  ;;  %v667_v0 = vmov 0.0   ;;  %vm668_vm0 = vmmov 0   ;;  %v615_v1 = vld [vmem:[%s785_s2 + $0x38] sm:$0xff]  }
  0x1b   : > { %574 = vmatprep.subr.bf16.mxu0 %v667_v0  ;;  %590 = vmatprep.mubr.msk.bf16.mxu0 %vm668_vm0, %v667_v0  ;;  %p273_p0 = scmp.lt.s32.totalorder %s545_s7, 3  ;;  %v616_v2 = vld [vmem:[%s785_s2 + $0x30] sm:$0xff]   ;;  %v617_v3 = vld [vmem:[%s785_s2 + $0x28] sm:$0xff]   ;;  %v618_v4 = vld [vmem:[%s785_s2 + $0x20] sm:$0xff]  }
  0x1c   : > { %575 = vmatpush3.bf16.msra.mxu0 %v615_v1  ;;  %v619_v5 = vld [vmem:[%s785_s2 + $0x18] sm:$0xff]   ;;  %v620_v6 = vld [vmem:[%s785_s2 + $0x10] sm:$0xff]   ;;  %v621_v7 = vld [vmem:[%s785_s2 + $0x8] sm:$0xff]  }
  0x1d   : > { %s793_s7 = smov (!%p273_p0, %s545_s7), 3  ;;  %576 = vmatprep.subr.bf16.mxu0 %v667_v0  ;;  %v622_v8 = vld [vmem:[%s785_s2] sm:$0xff]  }
  0x1e   : > { %s548_s12 = sshll.u32 %s793_s7, 2  ;;  %s546_s29 = sshll.u32 %s793_s7, 3  ;;  %v551_v10 = vld [vmem:[%s786_s3] ss:$0 sm:$0xff] }
  0x1f   : > { %s282_s17 = scalar_lea.vmem %s784_s1, %s548_s12  ;;  %s276_s9 = scalar_lea.vmem %s783_s0, %s546_s29  ;;  %v561_v36 = vld [vmem:[%s787_s4] ss:$0 sm:$0xff] }
  0x20   : > { %577 = vmatpush3.bf16.msra.mxu0 %v616_v2  ;;  %v623_v9 = vld [vmem:[%s282_s17] sm:$0xff]   ;;  %v412_v17 = vld [vmem:[%s276_s9 + $0x8] sm:$0xff]  ;;  %s288_s16 = scalar_lea.vmem %s789_s6, %s546_s29 }
  0x21   : > { %578 = vmatprep.subr.bf16.mxu0 %v667_v0  ;;  %v411_v12 = vld [vmem:[%s276_s9] sm:$0xff] }
  0x22   : > { %v562_v38 = vld [vmem:[#allocation2] ss:$0 sm:$0xff] }
  0x24   : > { %579 = vmatpush3.bf16.msra.mxu0 %v617_v3 }
  0x25   : > { %580 = vmatprep.subr.bf16.mxu0 %v667_v0 }
  0x28   : > { %581 = vmatpush3.bf16.msra.mxu0 %v618_v4 }
  0x29   : > { %582 = vmatprep.subr.bf16.mxu0 %v667_v0 }
  0x2c   : > { %583 = vmatpush3.bf16.msra.mxu0 %v619_v5 }
  0x2d   : > { %584 = vmatprep.subr.bf16.mxu0 %v667_v0 }
  0x30   : > { %585 = vmatpush3.bf16.msra.mxu0 %v620_v6 }
  0x31   : > { %586 = vmatprep.subr.bf16.mxu0 %v667_v0 }
  0x34   : > { %587 = vmatpush3.bf16.msra.mxu0 %v621_v7 }
  0x35   : > { %588 = vmatprep.subr.bf16.mxu0 %v667_v0 }
  0x38   : > { %589 = vmatpush3.bf16.msra.mxu0 %v622_v8 }
  0x3b   : > { %591 = vmatmul.mubr.bf16.vlgmr.msra.gmra.mxu0 %v623_v9 }
  0xfb   : > { %v404_v11 = vpop.f32.mrf.mxu0 }
  0xfc   : > { %v405_v13 = vadd.f32 %v551_v10, %v404_v11 }
  0xfd   : > { %v592_v14 = vpop.f32.mrf.mxu0 }
  0xfe   : > { %v413_v15 = vadd.f32 %v411_v12, %v405_v13 }
  0xff   : > { %v407_v16 = vpop.f32.mrf.mxu0 }
 0x100   : > { %v408_v18 = vadd.f32 %v551_v10, %v407_v16  ;;  %417 = vadd.xlane.f32.xlu0 %v413_v15 }
 0x101   : > { %v593_v19 = vpop.f32.mrf.mxu0 }
 0x102   : > { %v414_v20 = vadd.f32 %v412_v17, %v408_v18 }
 0x104   : > { %419 = vadd.xlane.f32.xlu0 %v414_v20 }
 0x189   : > { %v418_v21 = vpop.xlane.xlu0 %417 }
 0x18a   : > { %v422_v22 = vmul.f32 0.0078125, %v418_v21 }
 0x18c   : > { %v424_v23 = vsub.f32 %v413_v15, %v422_v22 }
 0x18d   : > { %v420_v24 = vpop.xlane.xlu0 %419 }
 0x18e   : > { %v423_v25 = vmul.f32 0.0078125, %v420_v24  ;;  %v426_v26 = vmul.f32 %v424_v23, %v424_v23 }
 0x190   : > { %v425_v27 = vsub.f32 %v414_v20, %v423_v25  ;;  %428 = vadd.xlane.f32.xlu1 %v426_v26 }
 0x192   : > { %v427_v28 = vmul.f32 %v425_v27, %v425_v27 }
 0x194   : > { %430 = vadd.xlane.f32.xlu1 %v427_v28 }
 0x219   : > { %v429_v29 = vpop.xlane.xlu1 %428 }
 0x21a   : > { %v432_v30 = vmul.f32 0.0078125, %v429_v29 }
 0x21c   : > { %v434_v31 = vadd.f32 1e-05, %v432_v30 }
 0x21d   : > { %v431_v32 = vpop.xlane.xlu1 %430 }
 0x21e   : > { %624 = vrsqrt.f32 %v434_v31  ;;  %v433_v33 = vmul.f32 0.0078125, %v431_v32 }
 0x220   : > { %v435_v34 = vadd.f32 1e-05, %v433_v33 }
 0x222   : > { %626 = vrsqrt.f32 %v435_v34 }
 0x22b   : > { %v625_v35 = vpop.eup %624 }
 0x22c   : > { %v438_v37 = vmul.f32 %v625_v35, %v424_v23 }
 0x22e   : > { %v446_v39 = vmul.f32 %v561_v36, %v438_v37 }
 0x22f   : > { %v627_v40 = vpop.eup %626 }
 0x230   : > { %v454_v41 = vadd.f32 %v562_v38, %v446_v39  ;;  %v439_v42 = vmul.f32 %v627_v40, %v425_v27 }
 0x232   : > { %456 = vst [vmem:[%s288_s16] sm:$0xff] %v454_v41  ;;  %v447_v43 = vmul.f32 %v561_v36, %v439_v42 }
 0x234   : > { %v455_v44 = vadd.f32 %v562_v38, %v447_v43 }
 0x236   : > { %457 = vst [vmem:[%s288_s16 + $0x8] sm:$0xff] %v455_v44 }
 0x237 PF: > { %s17_s21 = sadd.s32 1, %s664_s21  }
 0x238   : > { %p14_p1 = scmp.ge.s32.totalorder %s17_s21, 4  }
 0x23a   :  { %16 = sbr.rel (!%p14_p1) target bundleno = 1 (0x1), region = 82 }
 0x23f   :  { %480 = vsyncpa [#allocation3], 1 }
 0x240   :  { %482 = vsyncpa [#allocation3 + $0x1], 1 }

// kernel: tds_transformer.8
= control target key start
LH: loop header
LB: loop body
LE: loop exit
PB: predicated region body
PF: predicated region fallthrough
CT: control target
= control target key end

     0   :  { %8 = vsyncpa [#allocation3], 0  ;;  %s4387_s12 = smov 0   ;;  %s5362_s0 = inlined_call_operand.vmem [shape: f32[2,16,128], index: 0, kind: input, shape index: {}]   ;;  %s5363_s1 = inlined_call_operand.hbm [shape: bf16[128,384], index: 1, kind: input, shape index: {}]   ;;  %s5364_s2 = inlined_call_operand.vmem [shape: f32[1,384], index: 2, kind: input, shape index: {}]   ;;  %s5365_s3 = inlined_call_operand.vmem [shape: bf16[2,16,128], index: 3, kind: output, shape index: {}]  }
   0x1 LB: > { %s4393_s13 = sadd.s32 4294967295, %s4350_s12   ;;  %p3867_p0 = scmp.ge.s32.totalorder %s4350_s12, 1  ;;  %s4350_s12 = sphi %s4387_s12, %s14_s12  }
   0x2   : > { %p113_p1 = scmp.lt.s32.totalorder %s4350_s12, 3  ;;  %s4352_s14 = smov [#allocation2]  }
   0x3   : > { %s125_s15 = sshll.u32 %s4352_s14, 4  ;;  %p4158_p3 = scmp.eq.s32.totalorder %s4393_s13, 0  ;;  %s126_s15 = int_to_ptr.vmem [resolvable:$true] %s125_s15 }
   0x4   : > { %p4397_p2 = pnand %p3867_p0, %p113_p1  ;;  %s4325_s17 = scalar_lea.vmem %s126_s15, 3072 }
   0x5   : > { %p4326_p7 = scmp.ne.s32.totalorder %s126_s15, %s4325_s17  ;;  %p4333_p10 = scmp.lt.s32.totalorder %s126_s15, %s126_s15 }
   0x6   : > { %p4154_p4 = pneg %p4397_p2  ;;  %p4334_p11 = scmp.lt.s32.totalorder %s4325_s17, %s4325_s17 }
   0x8   : > { %p4155_p5 = pnand %p4158_p3, %p4154_p4  ;;  %p4335_p12 = por %p4334_p11, %p4333_p10 }
   0xa   : > { %p4316_p6 = pneg %p4155_p5 }
   0xc   : > { %p4328_p8 = pnand %p4326_p7, %p4316_p6 }
   0xe   : > { %p4329_p9 = pneg %p4328_p8 }
  0x10   : > { %p4336_p13 = pnand %p4335_p12, %p4329_p9 }
  0x12   : > { %4339 = shalt.err (!%p4336_p13)
}
  0x13   : > { %s4353_s18 = smov 192   ;;  %s4354_s19 = smov 12  }
  0x14   : > { %4157 = dma.hbm_to_vmem [thread:$0]  (!%p4155_p5), %s5363_s1, 3072, %s126_s15, [#allocation3], %s4353_s18, %s4353_s18, %s4354_s19  }
  0x15   : > { %152 = sbr.rel (%p4397_p2) target bundleno = 1375 (0x55f), region = 32 }
  0x1a   : > { %4345 = dma.done.wait (%p4158_p3), [#allocation3], 3072  }
  0x1b   : > { %4347 = vsyncadd (%p4158_p3), [#allocation3], 4294964224  ;;  %v4355_v0 = vmov 0   ;;  %v4356_v1 = vmov 0.0   ;;  %vm4357_vm0 = vmmov 0   ;;  %p176_p0 = scmp.lt.s32.totalorder %s4393_s13, 1  ;;  %v224_v29 = vlaneseq }
  0x1c   : > { %399 = vmatprep.mubr.bf16.mxu0 %v4355_v0  ;;  %4034 = vmatprep.subr.bf16.mxu1 %v4356_v1  ;;  %v4218_v2 = vld [vmem:[#allocation2 + $0xac] ss:$12 sps:$4 sm:$0xff]   ;;  %v4220_v3 = vld [vmem:[#allocation2 + $0xa8] ss:$12 sps:$4 sm:$0xff]   ;;  %v4223_v5 = vld [vmem:[#allocation2 + $0x90] ss:$12 sps:$4 sm:$0xff]  }
  0x1d   : > { %4050 = vmatprep.mubr.msk.bf16.mxu1 %vm4357_vm0, %v4356_v1  ;;  %367 = vmatprep.subr.bf16.mxu0 %v4218_v2  ;;  %v4221_v4 = vld [vmem:[#allocation2 + $0x94] ss:$12 sps:$4 sm:$0xff]   ;;  %v4224_v6 = vld [vmem:[#allocation2 + $0x7c] ss:$12 sps:$4 sm:$0xff]   ;;  %v4226_v7 = vld [vmem:[#allocation2 + $0x78] ss:$12 sps:$4 sm:$0xff]  }
  0x1e   : > { %368 = vmatpush1.bf16.msra.mxu0 %v4220_v3  ;;  %v4227_v8 = vld [vmem:[#allocation2 + $0x64] ss:$12 sps:$4 sm:$0xff]   ;;  %v4229_v9 = vld [vmem:[#allocation2 + $0x60] ss:$12 sps:$4 sm:$0xff]   ;;  %v4232_v13 = vld [vmem:[#allocation2 + $0x48] ss:$12 sps:$4 sm:$0xff]  }
  0x1f   : > { %369 = vmatprep.subr.bf16.mxu0 %v4221_v4  ;;  %v4230_v10 = vld [vmem:[#allocation2 + $0x4c] ss:$12 sps:$4 sm:$0xff]   ;;  %v4242_v11 = vld [vmem:[#allocation2 + $0xb0] ss:$12 sps:$4 sm:$0xff]   ;;  %v4233_v14 = vld [vmem:[#allocation2 + $0x34] ss:$12 sps:$4 sm:$0xff]  }
  0x20   : > { %4035 = vmatpush3.bf16.msra.mxu1 %v4242_v11  ;;  %v4243_v12 = vld [vmem:[#allocation2 + $0x98] ss:$12 sps:$4 sm:$0xff]   ;;  %s5368_s13 = smov (!%p176_p0, %s4393_s13), 1  ;;  %v4244_v15 = vld [vmem:[#allocation2 + $0x80] ss:$12 sps:$4 sm:$0xff]   ;;  %v4439_v30 = vshrl.u32 %v224_v29, 7 }
  0x21   : > { %4036 = vmatprep.subr.bf16.mxu1 %v4356_v1  ;;  %v4235_v16 = vld [vmem:[#allocation2 + $0x30] ss:$12 sps:$4 sm:$0xff]   ;;  %s3984_s22 = sshll.u32 %s5368_s13, 4  ;;  %v4245_v18 = vld [vmem:[#allocation2 + $0x68] ss:$12 sps:$4 sm:$0xff]   ;;  %s4358_s28 = smov 112  }
  0x22   : > { %370 = vmatpush1.bf16.msra.mxu0 %v4223_v5  ;;  %v4236_v17 = vld [vmem:[#allocation2 + $0x1c] ss:$12 sps:$4 sm:$0xff]   ;;  %v4238_v19 = vld [vmem:[#allocation2 + $0x18] ss:$12 sps:$4 sm:$0xff]   ;;  %s180_s25 = scalar_lea.vmem %s5362_s0, %s3984_s22  ;;  %v4241_v22 = vld [vmem:[#allocation2] ss:$12 sps:$4 sm:$0xff]  }
  0x23   : > { %371 = vmatprep.subr.bf16.mxu0 %v4224_v6  ;;  %v4239_v20 = vld [vmem:[#allocation2 + $0x4] ss:$12 sps:$4 sm:$0xff]   ;;  %v188_v24 = vld [vmem:[%s180_s25 + $0x8] sm:$0xff]  ;;  %v226_v31 = vsub.s32 0, %v4439_v30  ;;  %v222_v32 = vld [vmem:[%s5364_s2] sm:$0x7] }
  0x24   : > { %4037 = vmatpush3.bf16.msra.mxu1 %v4243_v12  ;;  %v4246_v21 = vld [vmem:[#allocation2 + $0x50] ss:$12 sps:$4 sm:$0xff]   ;;  %v187_v23 = vld [vmem:[%s180_s25] sm:$0xff]  ;;  %v4249_v28 = vld [vmem:[#allocation2 + $0x8] ss:$12 sps:$4 sm:$0xff]   ;;  %v230_v33 = vsub.s32 1, %v4439_v30 }
  0x25   : > { %4038 = vmatprep.subr.bf16.mxu1 %v4356_v1  ;;  %v189_v25 = vpack.c.bf16 %v188_v24, %v187_v23  ;;  %v4247_v26 = vld [vmem:[#allocation2 + $0x38] ss:$12 sps:$4 sm:$0xff]   ;;  %v4248_v27 = vld [vmem:[#allocation2 + $0x20] ss:$12 sps:$4 sm:$0xff]   ;;  %v227_v34 = vrot.slane %v222_v32, %v226_v31  ;;  %s4359_s29 = smov 96   ;;  %s4360_s30 = smov 80  }
  0x26   : > { %372 = vmatpush1.bf16.msra.mxu0 %v4226_v7  ;;  %v231_v35 = vrot.slane %v222_v32, %v230_v33  ;;  %s4361_s4 = smov 64   ;;  %s4362_s5 = smov 48   ;;  %v234_v44 = vsub.s32 2, %v4439_v30  ;;  %v4365_v53 = vmov 1983009808   ;;  %vm2239_vm1 = vcmask 130048  }
  0x27   : > { %373 = vmatprep.subr.bf16.mxu0 %v4227_v8  ;;  %s4363_s6 = smov 32   ;;  %s4364_s7 = smov 16   ;;  %v498_v54 = vunpack.c.l.s4 %v4365_v53  ;;  %v4366_v55 = vmov 1934713408   ;;  %vm3770_vm2 = vcmask 261120   ;;  %vm3773_vm3 = vcmask 392192  }
  0x28   : > { %4039 = vmatpush3.bf16.msra.mxu1 %v4244_v15  ;;  %v235_v46 = vrot.slane %v222_v32, %v234_v44  ;;  %v562_v56 = vunpack.c.l.s4 %v4366_v55  ;;  %vm3776_vm4 = vcmask 523264   ;;  %vm3779_vm5 = vcmask 654336   ;;  %s3985_s8 = sshll.u32 %s5368_s13, 3 }
  0x29   : > { %4040 = vmatprep.subr.bf16.mxu1 %v4356_v1  ;;  %v499_v59 = vunpack.c.0.s8 %v498_v54  ;;  %vm3782_vm6 = vcmask 785408   ;;  %vm3785_vm7 = vcmask 916480   ;;  %s185_s11 = scalar_lea.vmem %s5365_s3, %s3985_s8 }
  0x2a   : > { %374 = vmatpush1.bf16.msra.mxu0 %v4229_v9  ;;  %v563_v60 = vunpack.c.0.s8 %v562_v56 }
  0x2b   : > { %375 = vmatprep.subr.bf16.mxu0 %v4230_v10  ;;  %v4542_v2 = vsub.s32 %v499_v59, %v4439_v30 }
  0x2c   : > { %4041 = vmatpush3.bf16.msra.mxu1 %v4245_v18  ;;  %v4545_v5 = vsub.s32 %v563_v60, %v4439_v30 }
  0x2d   : > { %4042 = vmatprep.subr.bf16.mxu1 %v4356_v1 }
  0x2e   : > { %376 = vmatpush1.bf16.msra.mxu0 %v4232_v13 }
  0x2f   : > { %377 = vmatprep.subr.bf16.mxu0 %v4233_v14 }
  0x30   : > { %4043 = vmatpush3.bf16.msra.mxu1 %v4246_v21 }
  0x31   : > { %4044 = vmatprep.subr.bf16.mxu1 %v4356_v1 }
  0x32   : > { %378 = vmatpush1.bf16.msra.mxu0 %v4235_v16 }
  0x33   : > { %379 = vmatprep.subr.bf16.mxu0 %v4236_v17 }
  0x34   : > { %4045 = vmatpush3.bf16.msra.mxu1 %v4247_v26 }
  0x35   : > { %4046 = vmatprep.subr.bf16.mxu1 %v4356_v1 }
  0x36   : > { %380 = vmatpush1.bf16.msra.mxu0 %v4238_v19 }
  0x37   : > { %381 = vmatprep.subr.bf16.mxu0 %v4239_v20 }
  0x38   : > { %4047 = vmatpush3.bf16.msra.mxu1 %v4248_v27 }
  0x39   : > { %4048 = vmatprep.subr.bf16.mxu1 %v4356_v1 }
  0x3a   : > { %382 = vmatpush1.bf16.msra.mxu0 %v4241_v22 }
  0x3b   : > { %4054 = vmatprep.subr.bf16.mxu0 %v4356_v1 }
  0x3c   : > { %4049 = vmatpush3.bf16.msra.mxu1 %v4249_v28 }
  0x3d   : > { %400 = vmatmul.mubr.bf16.vlgmr.msra.gmra.mxu0 %v189_v25  ;;  %4060 = vmatprep.subr.bf16.mxu1 %v4356_v1 }
  0x3e   : > { %4056 = vmatprep.mubr.msk.bf16.mxu0 %vm4357_vm0, %v4356_v1 }
  0x3f   : > { %4051 = vmatmul.mubr.bf16.vlgmr.msra.gmra.mxu1 %v189_v25 }
  0x40   : > { %4062 = vmatprep.mubr.msk.bf16.mxu1 %vm4357_vm0, %v4356_v1 }
  0xfd   : > { %v401_v36 = vpop.f32.mrf.mxu0 }
  0xfe   : > { %v4446_v37 = vadd.f32 %v401_v36, %v227_v34 }
  0xff   : > { %v403_v38 = vpop.f32.mrf.mxu0  ;;  %v444_v45 = vpop.f32.mrf.mxu1 }
 0x100   : > { %v4448_v39 = vadd.f32 %v403_v38, %v231_v35  ;;  %453 = vrot.lane.b32.xlu0 %v4446_v37, %s4358_s28  ;;  %v4511_v48 = vadd.f32 %v444_v45, %v235_v46 }
 0x101   : > { %v405_v40 = vpop.f32.mrf.mxu0  ;;  %v4052_v47 = vpop.f32.mrf.mxu1 }
 0x102   : > { %1055 = vrot.lane.b32.xlu1 %v4448_v39, %s4359_s29  ;;  %v4454_v41 = vadd.f32 %v405_v40, %v227_v34 }
 0x103   : > { %v407_v42 = vpop.f32.mrf.mxu0  ;;  %v447_v49 = vpop.f32.mrf.mxu1 }
 0x104   : > { %459 = vrot.lane.b32.xlu0 %v4446_v37, %s4359_s29  ;;  %v4476_v43 = vadd.f32 %v407_v42, %v231_v35  ;;  %v4515_v50 = vadd.f32 %v447_v49, %v235_v46 }
 0x105   : > { %v4053_v51 = vpop.f32.mrf.mxu1 }
 0x106   : > { %455 = vrot.lane.b32.xlu1 %v4454_v41, %s4358_s28 }
 0x108   : > { %465 = vrot.lane.b32.xlu0 %v4446_v37, %s4360_s30 }
 0x10a   : > { %461 = vrot.lane.b32.xlu1 %v4454_v41, %s4359_s29 }
 0x10c   : > { %1049 = vrot.lane.b32.xlu0 %v4448_v39, %s4358_s28 }
 0x10e   : > { %467 = vrot.lane.b32.xlu1 %v4454_v41, %s4360_s30 }
 0x110   : > { %1061 = vrot.lane.b32.xlu0 %v4448_v39, %s4360_s30 }
 0x112   : > { %473 = vrot.lane.b32.xlu1 %v4454_v41, %s4361_s4 }
 0x114   : > { %1067 = vrot.lane.b32.xlu0 %v4448_v39, %s4361_s4 }
 0x116   : > { %479 = vrot.lane.b32.xlu1 %v4454_v41, %s4362_s5 }
 0x118   : > { %1073 = vrot.lane.b32.xlu0 %v4448_v39, %s4362_s5 }
 0x11a   : > { %1057 = vrot.lane.b32.xlu1 %v4476_v43, %s4359_s29 }
 0x11c   : > { %1051 = vrot.lane.b32.xlu0 %v4476_v43, %s4358_s28 }
 0x11e   : > { %1063 = vrot.lane.b32.xlu1 %v4476_v43, %s4360_s30 }
 0x120   : > { %1079 = vrot.lane.b32.xlu0 %v4448_v39, %s4363_s6 }
 0x122   : > { %1069 = vrot.lane.b32.xlu1 %v4476_v43, %s4361_s4 }
 0x124   : > { %1085 = vrot.lane.b32.xlu0 %v4448_v39, %s4364_s7 }
 0x126   : > { %1075 = vrot.lane.b32.xlu1 %v4476_v43, %s4362_s5 }
 0x128   : > { %471 = vrot.lane.b32.xlu0 %v4446_v37, %s4361_s4 }
 0x12a   : > { %1081 = vrot.lane.b32.xlu1 %v4476_v43, %s4363_s6 }
 0x12c   : > { %477 = vrot.lane.b32.xlu0 %v4446_v37, %s4362_s5 }
 0x12e   : > { %1087 = vrot.lane.b32.xlu1 %v4476_v43, %s4364_s7 }
 0x130   : > { %483 = vrot.lane.b32.xlu0 %v4446_v37, %s4363_s6 }
 0x132   : > { %485 = vrot.lane.b32.xlu1 %v4454_v41, %s4363_s6 }
 0x134   : > { %489 = vrot.lane.b32.xlu0 %v4446_v37, %s4364_s7 }
 0x136   : > { %491 = vrot.lane.b32.xlu1 %v4454_v41, %s4364_s7 }
 0x138   : > { %1647 = vrot.lane.b32.xlu0 %v4515_v50, %s4358_s28 }
 0x13a   : > { %1645 = vrot.lane.b32.xlu1 %v4511_v48, %s4358_s28 }
 0x13c   : > { %1657 = vrot.lane.b32.xlu0 %v4511_v48, %s4360_s30 }
 0x13e   : > { %1651 = vrot.lane.b32.xlu1 %v4511_v48, %s4359_s29 }
 0x140   : > { %1665 = vrot.lane.b32.xlu0 %v4515_v50, %s4361_s4 }
 0x142   : > { %1653 = vrot.lane.b32.xlu1 %v4515_v50, %s4359_s29 }
 0x144   : > { %1675 = vrot.lane.b32.xlu0 %v4511_v48, %s4363_s6 }
 0x146   : > { %1659 = vrot.lane.b32.xlu1 %v4515_v50, %s4360_s30 }
 0x14a   : > { %1663 = vrot.lane.b32.xlu1 %v4511_v48, %s4361_s4 }
 0x14e   : > { %1669 = vrot.lane.b32.xlu1 %v4511_v48, %s4362_s5 }
 0x152   : > { %1671 = vrot.lane.b32.xlu1 %v4515_v50, %s4362_s5 }
 0x172   : > { %v454_v52 = vpop.permute.xlu0 %453 }
 0x174   : > { %v4537_v57 = vpop.permute.xlu1 %1055 }
 0x175   : > { %v1091_v46 = vcombine.low %v4448_v39, %v4537_v57  ;;  %v1092_v47 = vcombine.high %v4448_v39, %v4537_v57 }
 0x176   : > { %v460_v58 = vpop.permute.xlu0 %459 }
 0x177   : > { %v495_v62 = vcombine.low %v4446_v37, %v460_v58  ;;  %v496_v63 = vcombine.high %v4446_v37, %v460_v58  ;;  %v1099_v39 = vrot.slane %v1091_v46, %v4542_v2  ;;  %v1106_v57 = vrot.slane %v1092_v47, %v4542_v2 }
 0x178   : > { %v456_v61 = vpop.permute.xlu1 %455 }
 0x179   : > { %v503_v7 = vrot.slane %v495_v62, %v4542_v2  ;;  %v510_v8 = vrot.slane %v496_v63, %v4542_v2 }
 0x17a   : > { %v466_v0 = vpop.permute.xlu0 %465 }
 0x17b   : > { %v511_v3 = vcombine.low %v454_v52, %v466_v0  ;;  %v512_v4 = vcombine.high %v454_v52, %v466_v0 }
 0x17c   : > { %v462_v6 = vpop.permute.xlu1 %461 }
 0x17d   : > { %v519_v9 = vrot.slane %v511_v3, %v4542_v2  ;;  %v526_v10 = vrot.slane %v512_v4, %v4542_v2  ;;  %v631_v16 = vcombine.low %v4454_v41, %v462_v6  ;;  %v632_v17 = vcombine.high %v4454_v41, %v462_v6 }
 0x17e   : > { %v1050_v11 = vpop.permute.xlu0 %1049 }
 0x17f   : > { %v559_v12 = vcombine.low %v503_v7, %v519_v9  ;;  %v560_v13 = vcombine.high %v503_v7, %v519_v9  ;;  %v575_v14 = vcombine.low %v510_v8, %v526_v10  ;;  %v576_v15 = vcombine.high %v510_v8, %v526_v10 }
 0x180   : > { %v468_v18 = vpop.permute.xlu1 %467  ;;  %v639_v30 = vrot.slane %v631_v16, %v4542_v2  ;;  %v646_v31 = vrot.slane %v632_v17, %v4542_v2 }
 0x181   : > { %v567_v19 = vrot.slane %v559_v12, %v4545_v5  ;;  %v574_v20 = vrot.slane %v560_v13, %v4545_v5  ;;  %v583_v21 = vrot.slane %v575_v14, %v4545_v5  ;;  %v590_v22 = vrot.slane %v576_v15, %v4545_v5 }
 0x182   : > { %v647_v23 = vcombine.low %v456_v61, %v468_v18  ;;  %v648_v24 = vcombine.high %v456_v61, %v468_v18  ;;  %v1062_v25 = vpop.permute.xlu0 %1061 }
 0x183   : > { %v3900_v26 = vcombine.low %v567_v19, %v574_v20  ;;  %v3902_v27 = vcombine.high %v567_v19, %v574_v20  ;;  %v3904_v28 = vcombine.low %v583_v21, %v590_v22  ;;  %v3906_v29 = vcombine.high %v583_v21, %v590_v22 }
 0x184   : > { %v655_v32 = vrot.slane %v647_v23, %v4542_v2  ;;  %v662_v33 = vrot.slane %v648_v24, %v4542_v2  ;;  %v4561_v34 = vpop.permute.xlu1 %473  ;;  %v1107_v49 = vcombine.low %v1050_v11, %v1062_v25  ;;  %v1108_v51 = vcombine.high %v1050_v11, %v1062_v25 }
 0x185   : > { %v775_v35 = vrot.slane %v3900_v26, %v4542_v2  ;;  %v791_v36 = vrot.slane %v3902_v27, %v4542_v2  ;;  %v807_v37 = vrot.slane %v3904_v28, %v4542_v2  ;;  %v823_v38 = vrot.slane %v3906_v29, %v4542_v2 }
 0x186   : > { %v695_v40 = vcombine.low %v639_v30, %v655_v32  ;;  %v696_v41 = vcombine.high %v639_v30, %v655_v32  ;;  %v711_v42 = vcombine.low %v646_v31, %v662_v33  ;;  %v712_v44 = vcombine.high %v646_v31, %v662_v33  ;;  %v4567_v45 = vpop.permute.xlu0 %1067 }
 0x187   : > { %v831_v58 = vcombine.low %v775_v35, %v791_v36  ;;  %v832_v59 = vcombine.high %v775_v35, %v791_v36  ;;  %v863_v60 = vcombine.low %v807_v37, %v823_v38  ;;  %v864_v61 = vcombine.high %v807_v37, %v823_v38 }
 0x188   : > { %v703_v52 = vrot.slane %v695_v40, %v4545_v5  ;;  %v710_v53 = vrot.slane %v696_v41, %v4545_v5  ;;  %v719_v54 = vrot.slane %v711_v42, %v4545_v5  ;;  %v726_v55 = vrot.slane %v712_v44, %v4545_v5  ;;  %v4577_v56 = vpop.permute.xlu1 %479 }
 0x189   : > { %v1115_v3 = vrot.slane %v1107_v49, %v4542_v2  ;;  %v1122_v4 = vrot.slane %v1108_v51, %v4542_v2  ;;  %v4592_v15 = vrot.slane %v831_v58, %v4545_v5  ;;  %v4595_v16 = vrot.slane %v832_v59, %v4545_v5 }
 0x18a   : > { %v3908_v62 = vcombine.low %v703_v52, %v710_v53  ;;  %v3910_v63 = vcombine.high %v703_v52, %v710_v53  ;;  %v4579_v0 = vpop.permute.xlu0 %1073  ;;  %v3912_v8 = vcombine.low %v719_v54, %v726_v55  ;;  %v3914_v9 = vcombine.high %v719_v54, %v726_v55 }
 0x18b   : > { %v1155_v11 = vcombine.low %v1099_v39, %v1115_v3  ;;  %v1156_v12 = vcombine.high %v1099_v39, %v1115_v3  ;;  %v1171_v13 = vcombine.low %v1106_v57, %v1122_v4  ;;  %v1172_v14 = vcombine.high %v1106_v57, %v1122_v4 }
 0x18c   : > { %v4586_v6 = vrot.slane %v3908_v62, %v4542_v2  ;;  %v4589_v7 = vrot.slane %v3910_v63, %v4542_v2  ;;  %v1058_v10 = vpop.permute.xlu1 %1057  ;;  %v4598_v17 = vrot.slane %v863_v60, %v4545_v5  ;;  %v4601_v18 = vrot.slane %v864_v61, %v4545_v5 }
 0x18d   : > { %v1163_v20 = vrot.slane %v1155_v11, %v4545_v5  ;;  %v1170_v21 = vrot.slane %v1156_v12, %v4545_v5  ;;  %v1179_v22 = vrot.slane %v1171_v13, %v4545_v5  ;;  %v1186_v23 = vrot.slane %v1172_v14, %v4545_v5 }
 0x18e   : > { %v1052_v19 = vpop.permute.xlu0 %1051  ;;  %v4608_v24 = vrot.slane %v3912_v8, %v4542_v2  ;;  %v4611_v25 = vrot.slane %v3914_v9, %v4542_v2  ;;  %v967_v26 = vcombine.low %v4586_v6, %v4589_v7  ;;  %v968_v27 = vcombine.high %v4586_v6, %v4589_v7 }
 0x18f   : > { %v3916_v29 = vcombine.low %v1163_v20, %v1170_v21  ;;  %v3918_v30 = vcombine.high %v1163_v20, %v1170_v21  ;;  %v3920_v31 = vcombine.low %v1179_v22, %v1186_v23  ;;  %v3922_v32 = vcombine.high %v1179_v22, %v1186_v23 }
 0x190   : > { %v1064_v28 = vpop.permute.xlu1 %1063  ;;  %v1227_v33 = vcombine.low %v4476_v43, %v1058_v10  ;;  %v1228_v35 = vcombine.high %v4476_v43, %v1058_v10  ;;  %v999_v52 = vcombine.low %v4608_v24, %v4611_v25  ;;  %v1000_v53 = vcombine.high %v4608_v24, %v4611_v25 }
 0x191   : > { %v1243_v36 = vcombine.low %v1052_v19, %v1064_v28  ;;  %v1244_v37 = vcombine.high %v1052_v19, %v1064_v28  ;;  %v4620_v40 = vrot.slane %v3916_v29, %v4542_v2  ;;  %v4623_v41 = vrot.slane %v3918_v30, %v4542_v2 }
 0x192   : > { %v1080_v38 = vpop.permute.xlu0 %1079  ;;  %v4626_v42 = vrot.slane %v3920_v31, %v4542_v2  ;;  %v4629_v44 = vrot.slane %v3922_v32, %v4542_v2  ;;  %v1235_v46 = vrot.slane %v1227_v33, %v4542_v2  ;;  %v1242_v47 = vrot.slane %v1228_v35, %v4542_v2 }
 0x193   : > { %v1251_v43 = vrot.slane %v1243_v36, %v4542_v2  ;;  %v1258_v49 = vrot.slane %v1244_v37, %v4542_v2  ;;  %v1123_v54 = vcombine.low %v4567_v45, %v1080_v38  ;;  %v1124_v55 = vcombine.high %v4567_v45, %v1080_v38 }
 0x194   : > { %v4635_v51 = vpop.permute.xlu1 %1069  ;;  %v1427_v57 = vcombine.low %v4620_v40, %v4623_v41  ;;  %v1459_v3 = vcombine.low %v4626_v42, %v4629_v44 }
 0x195   : > { %v1291_v58 = vcombine.low %v1235_v46, %v1251_v43  ;;  %v1292_v59 = vcombine.high %v1235_v46, %v1251_v43  ;;  %v1307_v60 = vcombine.low %v1242_v47, %v1258_v49  ;;  %v1308_v61 = vcombine.high %v1242_v47, %v1258_v49 }
 0x196   : > { %v1086_v62 = vpop.permute.xlu0 %1085  ;;  %v1131_v11 = vrot.slane %v1123_v54, %v4542_v2  ;;  %v1138_v12 = vrot.slane %v1124_v55, %v4542_v2  ;;  %v1435_v37 = vrot.slane %v1427_v57, %v4545_v5  ;;  %v1467_v38 = vrot.slane %v1459_v3, %v4545_v5 }
 0x197   : > { %v1139_v63 = vcombine.low %v4579_v0, %v1086_v62  ;;  %v1140_v39 = vcombine.high %v4579_v0, %v1086_v62  ;;  %v1299_v4 = vrot.slane %v1291_v58, %v4545_v5  ;;  %v1306_v8 = vrot.slane %v1292_v59, %v4545_v5 }
 0x198   : > { %v1315_v45 = vrot.slane %v1307_v60, %v4545_v5  ;;  %v1322_v9 = vrot.slane %v1308_v61, %v4545_v5  ;;  %v1076_v10 = vpop.permute.xlu1 %1075  ;;  %v895_v54 = vcombine.low %v4592_v15, %v4598_v17  ;;  %v4693_v55 = vrot.slane %v967_v26, %v4545_v5 }
 0x199   : > { %v1147_v0 = vrot.slane %v1139_v63, %v4542_v2  ;;  %v1154_v13 = vrot.slane %v1140_v39, %v4542_v2  ;;  %v3924_v14 = vcombine.low %v1299_v4, %v1306_v8  ;;  %v3926_v19 = vcombine.high %v1299_v4, %v1306_v8 }
 0x19a   : > { %v3928_v20 = vcombine.low %v1315_v45, %v1322_v9  ;;  %v3930_v21 = vcombine.high %v1315_v45, %v1322_v9  ;;  %v4657_v22 = vpop.permute.xlu0 %471  ;;  %v896_v60 = vcombine.high %v4592_v15, %v4598_v17  ;;  %v4703_v61 = vrot.slane %v968_v27, %v4545_v5 }
 0x19b   : > { %v1187_v23 = vcombine.low %v1131_v11, %v1147_v0  ;;  %v1188_v24 = vcombine.high %v1131_v11, %v1147_v0  ;;  %v1203_v25 = vcombine.low %v1138_v12, %v1154_v13  ;;  %v1204_v28 = vcombine.high %v1138_v12, %v1154_v13 }
 0x19c   : > { %v4660_v29 = vrot.slane %v3924_v14, %v4542_v2  ;;  %v4663_v30 = vrot.slane %v3926_v19, %v4542_v2  ;;  %v4666_v31 = vrot.slane %v3928_v20, %v4542_v2  ;;  %v4669_v32 = vrot.slane %v3930_v21, %v4542_v2  ;;  %v1082_v33 = vpop.permute.xlu1 %1081 }
 0x19d   : > { %v4672_v35 = vrot.slane %v1187_v23, %v4545_v5  ;;  %v4675_v36 = vrot.slane %v1188_v24, %v4545_v5  ;;  %v4680_v46 = vrot.slane %v1203_v25, %v4545_v5  ;;  %v4683_v47 = vrot.slane %v1204_v28, %v4545_v5 }
 0x19e   : > { %v478_v43 = vpop.permute.xlu0 %477  ;;  %v1563_v49 = vcombine.low %v4660_v29, %v4663_v30  ;;  %v1259_v58 = vcombine.low %v4635_v51, %v1082_v33  ;;  %v1260_v59 = vcombine.high %v4635_v51, %v1082_v33  ;;  %v4706_v62 = vrot.slane %v999_v52, %v4545_v5 }
 0x19f   : > { %v1595_v39 = vcombine.low %v4666_v31, %v4669_v32  ;;  %v4712_v51 = vrot.slane %v1000_v53, %v4545_v5  ;;  %v3917_v57 = vcombine.low %v4672_v35, %v4675_v36  ;;  %v3919_v6 = vcombine.high %v4672_v35, %v4675_v36 }
 0x1a0   : > { %v1088_v63 = vpop.permute.xlu1 %1087  ;;  %v1571_v26 = vrot.slane %v1563_v49, %v4545_v5  ;;  %v1491_v7 = vcombine.low %v1435_v37, %v1467_v38  ;;  %v3921_v27 = vcombine.low %v4680_v46, %v4683_v47  ;;  %v3923_v45 = vcombine.high %v4680_v46, %v4683_v47 }
 0x1a1   : > { %v1275_v52 = vcombine.low %v1076_v10, %v1088_v63  ;;  %v1276_v3 = vcombine.high %v1076_v10, %v1088_v63  ;;  %v1603_v8 = vrot.slane %v1595_v39, %v4545_v5  ;;  %v1267_v53 = vrot.slane %v1259_v58, %v4542_v2 }
 0x1a2   : > { %v484_v4 = vpop.permute.xlu0 %483  ;;  %v1274_v9 = vrot.slane %v1260_v59, %v4542_v2  ;;  %v1492_v11 = vcombine.high %v1435_v37, %v1467_v38  ;;  %v1031_v58 = vcombine.low %v4693_v55, %v4706_v62  ;;  %v1032_v59 = vcombine.high %v4693_v55, %v4706_v62 }
 0x1a3   : > { %v1283_v12 = vrot.slane %v1275_v52, %v4542_v2  ;;  %v1290_v0 = vrot.slane %v1276_v3, %v4542_v2  ;;  %v1627_v14 = vcombine.low %v1571_v26, %v1603_v8  ;;  %v1628_v19 = vcombine.high %v1571_v26, %v1603_v8 }
 0x1a4   : > { %v486_v13 = vpop.permute.xlu1 %485  ;;  %v527_v10 = vcombine.low %v4657_v22, %v484_v4  ;;  %v528_v20 = vcombine.high %v4657_v22, %v484_v4  ;;  %v4821_v35 = vrot.slane %v3921_v27, %v4542_v2  ;;  %v4827_v36 = vrot.slane %v3923_v45, %v4542_v2 }
 0x1a5   : > { %v663_v21 = vcombine.low %v4561_v34, %v486_v13  ;;  %v664_v23 = vcombine.high %v4561_v34, %v486_v13  ;;  %v1323_v24 = vcombine.low %v1267_v53, %v1283_v12  ;;  %v1324_v25 = vcombine.high %v1267_v53, %v1283_v12 }
 0x1a6   : > { %v1339_v28 = vcombine.low %v1274_v9, %v1290_v0  ;;  %v1340_v33 = vcombine.high %v1274_v9, %v1290_v0  ;;  %v490_v37 = vpop.permute.xlu0 %489  ;;  %v1635_v38 = vpack.c.bf16 %v1627_v14, %v1491_v7  ;;  %v1636_v49 = vpack.c.bf16 %v1628_v19, %v1492_v11 }
 0x1a7   : > { %v4736_v63 = vrot.slane %v1323_v24, %v4545_v5  ;;  %v4739_v22 = vrot.slane %v1324_v25, %v4545_v5  ;;  %v543_v3 = vcombine.low %v478_v43, %v490_v37  ;;  %v544_v4 = vcombine.high %v478_v43, %v490_v37 }
 0x1a8   : > { %v4742_v34 = vrot.slane %v1339_v28, %v4545_v5  ;;  %v4745_v26 = vrot.slane %v1340_v33, %v4545_v5  ;;  %v492_v39 = vpop.permute.xlu1 %491  ;;  %v2244_v7 = vsel %vm2239_vm1, %v1635_v38, 0  ;;  %v2291_v52 = vsel %vm2239_vm1, %v1636_v49, 0 }
 0x1a9   : > { %v535_v55 = vrot.slane %v527_v10, %v4542_v2  ;;  %v542_v62 = vrot.slane %v528_v20, %v4542_v2  ;;  %v671_v8 = vrot.slane %v663_v21, %v4542_v2  ;;  %v678_v53 = vrot.slane %v664_v23, %v4542_v2  ;;  %4055 = vmatpush3.bf16.xpose.msra.mxu0 %v2244_v7 }
 0x1aa   : > { %4061 = vmatpush3.bf16.xpose.msra.mxu1 %v2291_v52  ;;  %v551_v9 = vrot.slane %v543_v3, %v4542_v2  ;;  %v558_v11 = vrot.slane %v544_v4, %v4542_v2  ;;  %v679_v12 = vcombine.low %v4577_v56, %v492_v39  ;;  %v680_v0 = vcombine.high %v4577_v56, %v492_v39 }
 0x1ab   : > { %v3925_v43 = vcombine.low %v4736_v63, %v4739_v22  ;;  %v3927_v13 = vcombine.high %v4736_v63, %v4739_v22  ;;  %v3929_v14 = vcombine.low %v4742_v34, %v4745_v26  ;;  %v3931_v19 = vcombine.high %v4742_v34, %v4745_v26  ;;  %4066 = vmatprep.subr.bf16.mxu0 %v4356_v1 }
 0x1ac   : > { %v591_v10 = vcombine.low %v535_v55, %v551_v9  ;;  %v592_v20 = vcombine.high %v535_v55, %v551_v9  ;;  %v607_v21 = vcombine.low %v542_v62, %v558_v11  ;;  %v608_v23 = vcombine.high %v542_v62, %v558_v11  ;;  %4072 = vmatprep.subr.bf16.mxu1 %v4356_v1 }
 0x1ad   : > { %v687_v56 = vrot.slane %v679_v12, %v4542_v2  ;;  %v694_v24 = vrot.slane %v680_v0, %v4542_v2  ;;  %v1039_v25 = vpack.c.bf16 %v1031_v58, %v895_v54  ;;  %v1040_v28 = vpack.c.bf16 %v1032_v59, %v896_v60 }
 0x1ae   : > { %v599_v33 = vrot.slane %v591_v10, %v4545_v5  ;;  %v606_v37 = vrot.slane %v592_v20, %v4545_v5  ;;  %v615_v38 = vrot.slane %v607_v21, %v4545_v5  ;;  %v622_v49 = vrot.slane %v608_v23, %v4545_v5 }
 0x1af   : > { %v727_v63 = vcombine.low %v671_v8, %v687_v56  ;;  %v728_v22 = vcombine.high %v671_v8, %v687_v56  ;;  %v743_v34 = vcombine.low %v678_v53, %v694_v24  ;;  %v744_v26 = vcombine.high %v678_v53, %v694_v24 }
 0x1b0   : > { %v3901_v39 = vcombine.low %v599_v33, %v606_v37  ;;  %v3903_v7 = vcombine.high %v599_v33, %v606_v37  ;;  %v3905_v52 = vcombine.low %v615_v38, %v622_v49  ;;  %v3907_v54 = vcombine.high %v615_v38, %v622_v49  ;;  %4057 = vmatmul.mubr.msk.bf16.vlgmr.msra.gmra.mxu0 %vm2239_vm1, %v1039_v25 }
 0x1b1   : > { %v735_v15 = vrot.slane %v727_v63, %v4545_v5  ;;  %v742_v17 = vrot.slane %v728_v22, %v4545_v5  ;;  %v751_v60 = vrot.slane %v743_v34, %v4545_v5  ;;  %v758_v58 = vrot.slane %v744_v26, %v4545_v5  ;;  %4063 = vmatmul.mubr.msk.bf16.vlgmr.msra.gmra.mxu1 %vm2239_vm1, %v1040_v28 }
 0x1b2   : > { %v782_v59 = vrot.slane %v3901_v39, %v4542_v2  ;;  %v798_v3 = vrot.slane %v3903_v7, %v4542_v2  ;;  %v814_v4 = vrot.slane %v3905_v52, %v4542_v2  ;;  %v830_v55 = vrot.slane %v3907_v54, %v4542_v2  ;;  %4068 = vmatprep.mubr.msk.bf16.mxu0 %vm4357_vm0, %v4356_v1 }
 0x1b3   : > { %v3909_v62 = vcombine.low %v735_v15, %v742_v17  ;;  %v3911_v8 = vcombine.high %v735_v15, %v742_v17  ;;  %v3913_v53 = vcombine.low %v751_v60, %v758_v58  ;;  %v3915_v9 = vcombine.high %v751_v60, %v758_v58  ;;  %4074 = vmatprep.mubr.msk.bf16.mxu1 %vm4357_vm0, %v4356_v1 }
 0x1b4   : > { %v4797_v11 = vrot.slane %v3917_v57, %v4542_v2  ;;  %v4803_v12 = vrot.slane %v3919_v6, %v4542_v2  ;;  %v847_v0 = vcombine.low %v782_v59, %v798_v3  ;;  %v848_v10 = vcombine.high %v782_v59, %v798_v3 }
 0x1b5   : > { %v4806_v20 = vrot.slane %v3909_v62, %v4542_v2  ;;  %v4809_v21 = vrot.slane %v3911_v8, %v4542_v2  ;;  %v4812_v23 = vrot.slane %v3913_v53, %v4542_v2  ;;  %v4815_v57 = vrot.slane %v3915_v9, %v4542_v2 }
 0x1b6   : > { %v4830_v6 = vrot.slane %v3925_v43, %v4542_v2  ;;  %v4833_v56 = vrot.slane %v3927_v13, %v4542_v2  ;;  %v4836_v24 = vrot.slane %v3929_v14, %v4542_v2  ;;  %v4839_v25 = vrot.slane %v3931_v19, %v4542_v2 }
 0x1b7   : > { %v879_v27 = vcombine.low %v814_v4, %v830_v55  ;;  %v880_v28 = vcombine.high %v814_v4, %v830_v55  ;;  %v1428_v33 = vcombine.high %v4620_v40, %v4623_v41  ;;  %v1460_v46 = vcombine.high %v4626_v42, %v4629_v44 }
 0x1b8   : > { %v1564_v47 = vcombine.high %v4660_v29, %v4663_v30  ;;  %v1596_v45 = vcombine.high %v4666_v31, %v4669_v32  ;;  %v4850_v43 = vrot.slane %v847_v0, %v4545_v5  ;;  %v4853_v13 = vrot.slane %v848_v10, %v4545_v5  ;;  %v4901_v0 = vpop.permute.xlu1 %1645 }
 0x1b9   : > { %v983_v14 = vcombine.low %v4806_v20, %v4809_v21  ;;  %v1015_v40 = vcombine.low %v4812_v23, %v4815_v57  ;;  %v1442_v41 = vrot.slane %v1428_v33, %v4545_v5  ;;  %v1474_v42 = vrot.slane %v1460_v46, %v4545_v5 }
 0x1ba   : > { %v1578_v44 = vrot.slane %v1564_v47, %v4545_v5  ;;  %v1610_v29 = vrot.slane %v1596_v45, %v4545_v5  ;;  %v4864_v30 = vrot.slane %v879_v27, %v4545_v5  ;;  %v4867_v31 = vrot.slane %v880_v28, %v4545_v5  ;;  %v1648_v45 = vpop.permute.xlu0 %1647 }
 0x1bb   : > { %v984_v32 = vcombine.high %v4806_v20, %v4809_v21  ;;  %v1016_v19 = vcombine.high %v4812_v23, %v4815_v57  ;;  %v1493_v37 = vcombine.low %v1442_v41, %v1474_v42  ;;  %v1494_v49 = vcombine.high %v1442_v41, %v1474_v42 }
 0x1bc   : > { %v1629_v38 = vcombine.low %v1578_v44, %v1610_v29  ;;  %v1630_v63 = vcombine.high %v1578_v44, %v1610_v29  ;;  %v4874_v22 = vrot.slane %v983_v14, %v4545_v5  ;;  %v4877_v34 = vrot.slane %v1015_v40, %v4545_v5 }
 0x1bd   : > { %v1443_v26 = vcombine.low %v4797_v11, %v4803_v12  ;;  %v1475_v39 = vcombine.low %v4821_v35, %v4827_v36  ;;  %v1579_v54 = vcombine.low %v4830_v6, %v4833_v56  ;;  %v1611_v15 = vcombine.low %v4836_v24, %v4839_v25 }
 0x1be   : > { %v1637_v7 = vpack.c.bf16 %v1629_v38, %v1493_v37  ;;  %v1638_v52 = vpack.c.bf16 %v1630_v63, %v1494_v49  ;;  %v897_v17 = vcombine.low %v4595_v16, %v4601_v18  ;;  %v1033_v60 = vcombine.low %v4703_v61, %v4712_v51  ;;  %v1658_v49 = vpop.permute.xlu0 %1657 }
 0x1bf   : > { %v1451_v58 = vrot.slane %v1443_v26, %v4545_v5  ;;  %v1483_v59 = vrot.slane %v1475_v39, %v4545_v5  ;;  %v1587_v55 = vrot.slane %v1579_v54, %v4545_v5  ;;  %v1619_v62 = vrot.slane %v1611_v15, %v4545_v5 }
 0x1c0   : > { %v2338_v3 = vsel %vm2239_vm1, %v1637_v7, 0  ;;  %v2385_v4 = vsel %vm2239_vm1, %v1638_v52, 0  ;;  %v898_v8 = vcombine.high %v4595_v16, %v4601_v18  ;;  %v1034_v53 = vcombine.high %v4703_v61, %v4712_v51 }
 0x1c1   : > { %4067 = vmatpush3.bf16.xpose.msra.mxu0 %v2338_v3  ;;  %4073 = vmatpush3.bf16.xpose.msra.mxu1 %v2385_v4  ;;  %v1495_v9 = vcombine.low %v1451_v58, %v1483_v59  ;;  %v1631_v10 = vcombine.low %v1587_v55, %v1619_v62  ;;  %v1496_v20 = vcombine.high %v1451_v58, %v1483_v59 }
 0x1c2   : > { %4078 = vmatprep.subr.bf16.mxu0 %v4356_v1  ;;  %4084 = vmatprep.subr.bf16.mxu1 %v4356_v1  ;;  %v1632_v21 = vcombine.high %v1587_v55, %v1619_v62  ;;  %v1035_v23 = vcombine.low %v4874_v22, %v4877_v34  ;;  %v1444_v57 = vcombine.high %v4797_v11, %v4803_v12  ;;  %v1652_v12 = vpop.permute.xlu1 %1651 }
 0x1c3   : > { %v1476_v16 = vcombine.high %v4821_v35, %v4827_v36  ;;  %v1580_v18 = vcombine.high %v4830_v6, %v4833_v56  ;;  %v1041_v61 = vpack.c.bf16 %v1033_v60, %v897_v17  ;;  %v1639_v51 = vpack.c.bf16 %v1631_v10, %v1495_v9 }
 0x1c4   : > { %v1640_v27 = vpack.c.bf16 %v1632_v21, %v1496_v20  ;;  %v1612_v28 = vcombine.high %v4836_v24, %v4839_v25  ;;  %v899_v33 = vcombine.low %v4850_v43, %v4864_v30  ;;  %v1458_v46 = vrot.slane %v1444_v57, %v4545_v5 }
 0x1c5   : > { %v1490_v47 = vrot.slane %v1476_v16, %v4545_v5  ;;  %v1594_v11 = vrot.slane %v1580_v18, %v4545_v5  ;;  %v1042_v35 = vpack.c.bf16 %v1034_v53, %v898_v8  ;;  %v2432_v36 = vsel %vm2239_vm1, %v1639_v51, 0 }
 0x1c6   : > { %v2479_v6 = vsel %vm2239_vm1, %v1640_v27, 0  ;;  %v1626_v56 = vrot.slane %v1612_v28, %v4545_v5  ;;  %v4924_v24 = vrot.slane %v984_v32, %v4545_v5  ;;  %v4927_v25 = vrot.slane %v1016_v19, %v4545_v5  ;;  %v1654_v37 = vpop.permute.xlu1 %1653 }
 0x1c7   : > { %v1043_v14 = vpack.c.bf16 %v1035_v23, %v899_v33  ;;  %v900_v40 = vcombine.high %v4850_v43, %v4864_v30  ;;  %v1036_v41 = vcombine.high %v4874_v22, %v4877_v34  ;;  %v1497_v29 = vcombine.low %v1458_v46, %v1490_v47 }
 0x1c8   : > { %4069 = vmatmul.mubr.msk.bf16.vlgmr.msra.gmra.mxu0 %vm2239_vm1, %v1041_v61  ;;  %4075 = vmatmul.mubr.msk.bf16.vlgmr.msra.gmra.mxu1 %vm2239_vm1, %v1042_v35  ;;  %v1633_v42 = vcombine.low %v1594_v11, %v1626_v56  ;;  %v1634_v44 = vcombine.high %v1594_v11, %v1626_v56  ;;  %v1687_v32 = vcombine.low %v4511_v48, %v1652_v12 }
 0x1c9   : > { %4079 = vmatpush3.bf16.xpose.msra.mxu0 %v2432_v36  ;;  %4085 = vmatpush3.bf16.xpose.msra.mxu1 %v2479_v6  ;;  %v1688_v19 = vcombine.high %v4511_v48, %v1652_v12  ;;  %v1498_v43 = vcombine.high %v1458_v46, %v1490_v47  ;;  %v901_v30 = vcombine.low %v4853_v13, %v4867_v31 }
 0x1ca   : > { %4080 = vmatprep.mubr.msk.bf16.mxu0 %vm4357_vm0, %v4356_v1  ;;  %4086 = vmatprep.mubr.msk.bf16.mxu1 %vm4357_vm0, %v4356_v1  ;;  %v1823_v38 = vcombine.low %v4515_v50, %v1654_v37  ;;  %v1641_v63 = vpack.c.bf16 %v1633_v42, %v1497_v29  ;;  %v1037_v22 = vcombine.low %v4924_v24, %v4927_v25  ;;  %v1660_v60 = vpop.permute.xlu1 %1659 }
 0x1cb   : > { %4090 = vmatprep.subr.bf16.mxu0 %v4356_v1  ;;  %4096 = vmatprep.subr.bf16.mxu1 %v4356_v1  ;;  %v1824_v34 = vcombine.high %v4515_v50, %v1654_v37  ;;  %v1044_v26 = vpack.c.bf16 %v1036_v41, %v900_v40  ;;  %v1642_v39 = vpack.c.bf16 %v1634_v44, %v1498_v43 }
 0x1cc   : > { %v1695_v7 = vrot.slane %v1687_v32, %v4542_v2  ;;  %v1703_v52 = vcombine.low %v4901_v0, %v1658_v49  ;;  %v902_v54 = vcombine.high %v4853_v13, %v4867_v31  ;;  %v1702_v15 = vrot.slane %v1688_v19, %v4542_v2 }
 0x1cd   : > { %v1831_v17 = vrot.slane %v1823_v38, %v4542_v2  ;;  %v1704_v58 = vcombine.high %v4901_v0, %v1658_v49  ;;  %v1838_v59 = vrot.slane %v1824_v34, %v4542_v2  ;;  %v1839_v3 = vcombine.low %v1648_v45, %v1660_v60 }
 0x1ce   : > { %v1840_v4 = vcombine.high %v1648_v45, %v1660_v60  ;;  %v1711_v55 = vrot.slane %v1703_v52, %v4542_v2  ;;  %v2526_v62 = vsel %vm2239_vm1, %v1641_v63, 0  ;;  %v1045_v8 = vpack.c.bf16 %v1037_v22, %v901_v30 }
 0x1cf   : > { %v1038_v53 = vcombine.high %v4924_v24, %v4927_v25  ;;  %v1718_v13 = vrot.slane %v1704_v58, %v4542_v2  ;;  %v2573_v31 = vsel %vm2239_vm1, %v1642_v39, 0  ;;  %v1847_v9 = vrot.slane %v1839_v3, %v4542_v2 }
 0x1d0   : > { %4081 = vmatmul.mubr.msk.bf16.vlgmr.msra.gmra.mxu0 %vm2239_vm1, %v1043_v14  ;;  %4087 = vmatmul.mubr.msk.bf16.vlgmr.msra.gmra.mxu1 %vm2239_vm1, %v1044_v26  ;;  %v1854_v0 = vrot.slane %v1840_v4, %v4542_v2  ;;  %v1751_v10 = vcombine.low %v1695_v7, %v1711_v55  ;;  %v1752_v20 = vcombine.high %v1695_v7, %v1711_v55 }
 0x1d1   : > { %4091 = vmatpush3.bf16.xpose.msra.mxu0 %v2526_v62  ;;  %4097 = vmatpush3.bf16.xpose.msra.mxu1 %v2573_v31  ;;  %v1767_v21 = vcombine.low %v1702_v15, %v1718_v13  ;;  %v1768_v23 = vcombine.high %v1702_v15, %v1718_v13  ;;  %v1887_v57 = vcombine.low %v1831_v17, %v1847_v9 }
 0x1d2   : > { %4092 = vmatprep.mubr.msk.bf16.mxu0 %vm4357_vm0, %v4356_v1  ;;  %4098 = vmatprep.mubr.msk.bf16.mxu1 %vm4357_vm0, %v4356_v1  ;;  %v1888_v16 = vcombine.high %v1831_v17, %v1847_v9  ;;  %v1903_v18 = vcombine.low %v1838_v59, %v1854_v0  ;;  %v1904_v61 = vcombine.high %v1838_v59, %v1854_v0 }
 0x1d3   : > { %v1759_v51 = vrot.slane %v1751_v10, %v4545_v5  ;;  %v1766_v27 = vrot.slane %v1752_v20, %v4545_v5  ;;  %v1775_v28 = vrot.slane %v1767_v21, %v4545_v5  ;;  %4102 = vmatprep.subr.bf16.mxu0 %v4356_v1  ;;  %v1895_v33 = vrot.slane %v1887_v57, %v4545_v5 }
 0x1d4   : > { %v1902_v46 = vrot.slane %v1888_v16, %v4545_v5  ;;  %v1911_v47 = vrot.slane %v1903_v18, %v4545_v5  ;;  %v1782_v11 = vrot.slane %v1768_v23, %v4545_v5  ;;  %4108 = vmatprep.subr.bf16.mxu1 %v4356_v1  ;;  %v1046_v12 = vpack.c.bf16 %v1038_v53, %v902_v54 }
 0x1d5   : > { %v1918_v35 = vrot.slane %v1904_v61, %v4545_v5  ;;  %v3932_v36 = vcombine.low %v1759_v51, %v1766_v27  ;;  %v3934_v6 = vcombine.high %v1759_v51, %v1766_v27 }
 0x1d6   : > { %v3940_v56 = vcombine.low %v1895_v33, %v1902_v46  ;;  %v3942_v45 = vcombine.high %v1895_v33, %v1902_v46  ;;  %v3936_v24 = vcombine.low %v1775_v28, %v1782_v11  ;;  %v3938_v25 = vcombine.high %v1775_v28, %v1782_v11 }
 0x1d7   : > { %v3944_v14 = vcombine.low %v1911_v47, %v1918_v35  ;;  %v3946_v40 = vcombine.high %v1911_v47, %v1918_v35  ;;  %v1967_v41 = vrot.slane %v3932_v36, %v4542_v2  ;;  %v1983_v42 = vrot.slane %v3934_v6, %v4542_v2 }
 0x1d8   : > { %4093 = vmatmul.mubr.msk.bf16.vlgmr.msra.gmra.mxu0 %vm2239_vm1, %v1045_v8  ;;  %4099 = vmatmul.mubr.msk.bf16.vlgmr.msra.gmra.mxu1 %vm2239_vm1, %v1046_v12  ;;  %v2103_v44 = vrot.slane %v3940_v56, %v4542_v2  ;;  %v2119_v29 = vrot.slane %v3942_v45, %v4542_v2  ;;  %v1999_v32 = vrot.slane %v3936_v24, %v4542_v2 }
 0x1d9   : > { %v2135_v19 = vrot.slane %v3944_v14, %v4542_v2  ;;  %v2151_v37 = vrot.slane %v3946_v40, %v4542_v2  ;;  %v2015_v43 = vrot.slane %v3938_v25, %v4542_v2  ;;  %v2023_v30 = vcombine.low %v1967_v41, %v1983_v42  ;;  %4104 = vmatprep.mubr.msk.bf16.mxu0 %vm4357_vm0, %v4356_v1 }
 0x1da   : > { %v2159_v38 = vcombine.low %v2103_v44, %v2119_v29  ;;  %4110 = vmatprep.mubr.msk.bf16.mxu1 %vm4357_vm0, %v4356_v1  ;;  %v2024_v58 = vcombine.high %v1967_v41, %v1983_v42  ;;  %v2160_v3 = vcombine.high %v2103_v44, %v2119_v29 }
 0x1db   : > { %v2031_v49 = vrot.slane %v2023_v30, %v4545_v5  ;;  %v2055_v63 = vcombine.low %v1999_v32, %v2015_v43  ;;  %v2191_v22 = vcombine.low %v2135_v19, %v2151_v37  ;;  %v2056_v59 = vcombine.high %v1999_v32, %v2015_v43 }
 0x1dc   : > { %v2167_v34 = vrot.slane %v2159_v38, %v4545_v5  ;;  %v2192_v4 = vcombine.high %v2135_v19, %v2151_v37  ;;  %v2038_v55 = vrot.slane %v2024_v58, %v4545_v5  ;;  %v2174_v8 = vrot.slane %v2160_v3, %v4545_v5 }
 0x1dd   : > { %v2063_v26 = vrot.slane %v2055_v63, %v4545_v5  ;;  %v2199_v39 = vrot.slane %v2191_v22, %v4545_v5  ;;  %v2070_v62 = vrot.slane %v2056_v59, %v4545_v5 }
 0x1de   : > { %v2206_v53 = vrot.slane %v2192_v4, %v4545_v5 }
 0x1df   : > { %v2087_v7 = vcombine.low %v2031_v49, %v2063_v26  ;;  %v2223_v52 = vcombine.low %v2167_v34, %v2199_v39  ;;  %v2088_v54 = vcombine.high %v2031_v49, %v2063_v26  ;;  %v2224_v15 = vcombine.high %v2167_v34, %v2199_v39 }
 0x1e0   : > { %v2089_v13 = vcombine.low %v2038_v55, %v2070_v62  ;;  %v2225_v31 = vcombine.low %v2174_v8, %v2206_v53  ;;  %v2090_v9 = vcombine.high %v2038_v55, %v2070_v62  ;;  %v2226_v0 = vcombine.high %v2174_v8, %v2206_v53 }
 0x1e1   : > { %v2231_v17 = vpack.c.bf16 %v2223_v52, %v2087_v7  ;;  %v2232_v60 = vpack.c.bf16 %v2224_v15, %v2088_v54 }
 0x1e2   : > { %v5005_v10 = vpack.c.bf16 %v2225_v31, %v2089_v13  ;;  %v5007_v20 = vpack.c.bf16 %v2226_v0, %v2090_v9 }
 0x1e3   : > { %4103 = vmatpush3.bf16.msra.mxu0 %v2231_v17  ;;  %4109 = vmatpush3.bf16.msra.mxu1 %v2232_v60 }
 0x1e4   : > { %4114 = vmatprep.subr.bf16.mxu0 %v4356_v1  ;;  %4120 = vmatprep.subr.bf16.mxu1 %v4356_v1 }
 0x270   : > { %v2280_v21 = vpop.f32.mrf.mxu0 }
 0x271   : > { %v5009_v23 = vmul.f32 0.25, %v2280_v21  ;;  %v2327_v57 = vpop.f32.mrf.mxu1 }
 0x272   : > { %v4058_v16 = vpop.f32.mrf.mxu0  ;;  %v5011_v18 = vmul.f32 0.25, %v2327_v57 }
 0x273   : > { %v4064_v61 = vpop.f32.mrf.mxu1  ;;  %v2632_v51 = vsel %vm2239_vm1, %v5009_v23, -inf }
 0x274   : > { %2633 = vmax.xlane.f32.xlu0 %v2632_v51  ;;  %v2283_v27 = vpop.f32.mrf.mxu0  ;;  %v2638_v12 = vsel %vm2239_vm1, %v5011_v18, -inf }
 0x275   : > { %v2330_v28 = vpop.f32.mrf.mxu1  ;;  %v5015_v33 = vmul.f32 0.25, %v2283_v27 }
 0x276   : > { %v4059_v46 = vpop.f32.mrf.mxu0  ;;  %v5017_v47 = vmul.f32 0.25, %v2330_v28 }
 0x277   : > { %v4065_v11 = vpop.f32.mrf.mxu1  ;;  %v2635_v35 = vsel %vm2239_vm1, %v5015_v33, -inf  ;;  %v5077_v46 = vpop.permute.xlu1 %1663 }
 0x278   : > { %2639 = vmax.xlane.f32.xlu0 %v2638_v12  ;;  %2636 = vmax.xlane.f32.xlu1 %v2635_v35  ;;  %v2641_v36 = vsel %vm2239_vm1, %v5017_v47, -inf  ;;  %v5079_v11 = vpop.permute.xlu0 %1665 }
 0x27b   : > { %v5081_v12 = vpop.permute.xlu1 %1669 }
 0x27c   : > { %2642 = vmax.xlane.f32.xlu0 %v2641_v36  ;;  %v5083_v35 = vpop.permute.xlu0 %1675 }
 0x27f   : > { %v5085_v36 = vpop.permute.xlu1 %1671 }
 0x288   : > { %v2421_v6 = vpop.f32.mrf.mxu1  ;;  %v2374_v56 = vpop.f32.mrf.mxu0 }
 0x289   : > { %v5025_v45 = vmul.f32 0.25, %v2374_v56  ;;  %v5027_v14 = vmul.f32 0.25, %v2421_v6 }
 0x28a   : > { %v4070_v24 = vpop.f32.mrf.mxu0  ;;  %v4076_v25 = vpop.f32.mrf.mxu1 }
 0x28b   : > { %v2644_v40 = vsel %vm2239_vm1, %v5025_v45, -inf  ;;  %v2650_v37 = vsel %vm2239_vm1, %v5027_v14, -inf }
 0x28c   : > { %v2424_v41 = vpop.f32.mrf.mxu1  ;;  %2645 = vmax.xlane.f32.xlu1 %v2644_v40  ;;  %v2377_v42 = vpop.f32.mrf.mxu0 }
 0x28d   : > { %v5031_v44 = vmul.f32 0.25, %v2377_v42  ;;  %v5033_v19 = vmul.f32 0.25, %v2424_v41 }
 0x28e   : > { %v4071_v29 = vpop.f32.mrf.mxu0  ;;  %v4077_v32 = vpop.f32.mrf.mxu1 }
 0x28f   : > { %v2647_v43 = vsel %vm2239_vm1, %v5031_v44, -inf  ;;  %v2653_v26 = vsel %vm2239_vm1, %v5033_v19, -inf }
 0x290   : > { %2651 = vmax.xlane.f32.xlu1 %v2650_v37  ;;  %2648 = vmax.xlane.f32.xlu0 %v2647_v43  ;;  %v2468_v30 = vpop.f32.mrf.mxu0  ;;  %v2515_v38 = vpop.f32.mrf.mxu1 }
 0x291   : > { %v5039_v49 = vmul.f32 0.25, %v2468_v30  ;;  %v5041_v34 = vmul.f32 0.25, %v2515_v38 }
 0x292   : > { %v4082_v63 = vpop.f32.mrf.mxu0  ;;  %v4088_v22 = vpop.f32.mrf.mxu1 }
 0x293   : > { %v2656_v39 = vsel %vm2239_vm1, %v5039_v49, -inf  ;;  %v2662_v58 = vsel %vm2239_vm1, %v5041_v34, -inf }
 0x294   : > { %2654 = vmax.xlane.f32.xlu0 %v2653_v26  ;;  %v2518_v7 = vpop.f32.mrf.mxu1  ;;  %2657 = vmax.xlane.f32.xlu1 %v2656_v39  ;;  %v2471_v52 = vpop.f32.mrf.mxu0 }
 0x295   : > { %v5047_v54 = vmul.f32 0.25, %v2471_v52  ;;  %v5049_v60 = vmul.f32 0.25, %v2518_v7 }
 0x296   : > { %v4083_v15 = vpop.f32.mrf.mxu0  ;;  %v4089_v17 = vpop.f32.mrf.mxu1 }
 0x297   : > { %v2659_v59 = vsel %vm2239_vm1, %v5047_v54, -inf  ;;  %v2665_v13 = vsel %vm2239_vm1, %v5049_v60, -inf }
 0x298   : > { %v2609_v3 = vpop.f32.mrf.mxu1  ;;  %2663 = vmax.xlane.f32.xlu1 %v2662_v58  ;;  %2660 = vmax.xlane.f32.xlu0 %v2659_v59  ;;  %v2562_v4 = vpop.f32.mrf.mxu0 }
 0x299   : > { %v5055_v55 = vmul.f32 0.25, %v2562_v4  ;;  %v5057_v53 = vmul.f32 0.25, %v2609_v3 }
 0x29a   : > { %v4094_v62 = vpop.f32.mrf.mxu0  ;;  %v4100_v8 = vpop.f32.mrf.mxu1 }
 0x29b   : > { %v2668_v31 = vsel %vm2239_vm1, %v5055_v55, -inf  ;;  %v2674_v51 = vsel %vm2239_vm1, %v5057_v53, -inf }
 0x29c   : > { %v2612_v9 = vpop.f32.mrf.mxu1  ;;  %2666 = vmax.xlane.f32.xlu0 %v2665_v13  ;;  %2669 = vmax.xlane.f32.xlu1 %v2668_v31  ;;  %v2565_v0 = vpop.f32.mrf.mxu0 }
 0x29d   : > { %v5063_v21 = vmul.f32 0.25, %v2565_v0  ;;  %v5065_v61 = vmul.f32 0.25, %v2612_v9 }
 0x29e   : > { %v4095_v57 = vpop.f32.mrf.mxu0  ;;  %v4101_v16 = vpop.f32.mrf.mxu1 }
 0x29f   : > { %v2671_v27 = vsel %vm2239_vm1, %v5063_v21, -inf  ;;  %v2677_v28 = vsel %vm2239_vm1, %v5065_v61, -inf }
 0x2a0   : > { %2675 = vmax.xlane.f32.xlu1 %v2674_v51  ;;  %2672 = vmax.xlane.f32.xlu0 %v2671_v27 }
 0x2a4   : > { %2678 = vmax.xlane.f32.xlu0 %v2677_v28 }
 0x2b1   : > { %1677 = vrot.lane.b32.xlu1 %v4515_v50, %s4363_s6 }
 0x2ba   : > { %1681 = vrot.lane.b32.xlu0 %v4511_v48, %s4364_s7 }
 0x2fd   : > { %v2634_v6 = vpop.xlane.xlu0 %2633 }
 0x2fe   : > { %v2680_v56 = vsub.f32 %v5009_v23, %v2634_v6 }
 0x300   : > { %v2696_v24 = vmul.f32 1.442695, %v2680_v56 }
 0x301   : > { %v2637_v25 = vpop.xlane.xlu1 %2636  ;;  %v2640_v40 = vpop.xlane.xlu0 %2639 }
 0x302   : > { %4250 = vpow2.f32 %v2696_v24  ;;  %v2681_v41 = vsub.f32 %v5015_v33, %v2637_v25  ;;  %v2682_v48 = vsub.f32 %v5011_v18, %v2640_v40 }
 0x304   : > { %v2698_v42 = vmul.f32 1.442695, %v2681_v41  ;;  %v2700_v29 = vmul.f32 1.442695, %v2682_v48 }
 0x305   : > { %v2643_v32 = vpop.xlane.xlu0 %2642 }
 0x306   : > { %4252 = vpow2.f32 %v2698_v42  ;;  %v2683_v37 = vsub.f32 %v5017_v47, %v2643_v32 }
 0x307   : > { %4254 = vpow2.f32 %v2700_v29 }
 0x308   : > { %v2702_v43 = vmul.f32 1.442695, %v2683_v37 }
 0x30a   : > { %4256 = vpow2.f32 %v2702_v43 }
 0x30f   : > { %v5091_v30 = vpop.eup %4250 }
 0x310   : > { %v2728_v23 = vsel %vm2239_vm1, %v5091_v30, 0.0 }
 0x311   : > { %2729 = vadd.xlane.f32.xlu1 %v2728_v23 }
 0x313   : > { %v5095_v38 = vpop.eup %4252 }
 0x314   : > { %v5097_v33 = vpop.eup %4254  ;;  %v2731_v18 = vsel %vm2239_vm1, %v5095_v38, 0.0 }
 0x315   : > { %v2646_v63 = vpop.xlane.xlu1 %2645  ;;  %2732 = vadd.xlane.f32.xlu0 %v2731_v18  ;;  %v2734_v47 = vsel %vm2239_vm1, %v5097_v33, 0.0 }
 0x316   : > { %v2684_v22 = vsub.f32 %v5025_v45, %v2646_v63  ;;  %2735 = vadd.xlane.f32.xlu1 %v2734_v47 }
 0x317   : > { %v5104_v26 = vpop.eup %4256 }
 0x318   : > { %v2704_v39 = vmul.f32 1.442695, %v2684_v22  ;;  %v2737_v7 = vsel %vm2239_vm1, %v5104_v26, 0.0 }
 0x319   : > { %v2652_v52 = vpop.xlane.xlu1 %2651  ;;  %v2649_v15 = vpop.xlane.xlu0 %2648  ;;  %2738 = vadd.xlane.f32.xlu0 %v2737_v7 }
 0x31a   : > { %4258 = vpow2.f32 %v2704_v39  ;;  %v2686_v17 = vsub.f32 %v5027_v14, %v2652_v52  ;;  %v2685_v58 = vsub.f32 %v5031_v44, %v2649_v15 }
 0x31c   : > { %v2708_v59 = vmul.f32 1.442695, %v2686_v17  ;;  %v2706_v3 = vmul.f32 1.442695, %v2685_v58 }
 0x31d   : > { %v2658_v4 = vpop.xlane.xlu1 %2657  ;;  %v2655_v62 = vpop.xlane.xlu0 %2654 }
 0x31e   : > { %4260 = vpow2.f32 %v2708_v59  ;;  %v2688_v45 = vsub.f32 %v5039_v49, %v2658_v4  ;;  %v2687_v8 = vsub.f32 %v5033_v19, %v2655_v62 }
 0x31f   : > { %4262 = vpow2.f32 %v2706_v3 }
 0x320   : > { %v2712_v13 = vmul.f32 1.442695, %v2688_v45  ;;  %v2710_v31 = vmul.f32 1.442695, %v2687_v8 }
 0x321   : > { %v2664_v9 = vpop.xlane.xlu1 %2663  ;;  %v2661_v0 = vpop.xlane.xlu0 %2660 }
 0x322   : > { %4264 = vpow2.f32 %v2712_v13  ;;  %v2690_v57 = vsub.f32 %v5041_v34, %v2664_v9  ;;  %v2689_v14 = vsub.f32 %v5047_v54, %v2661_v0 }
 0x323   : > { %4266 = vpow2.f32 %v2710_v31 }
 0x324   : > { %v2716_v44 = vmul.f32 1.442695, %v2690_v57  ;;  %v2714_v16 = vmul.f32 1.442695, %v2689_v14 }
 0x325   : > { %v2670_v51 = vpop.xlane.xlu1 %2669  ;;  %v2667_v27 = vpop.xlane.xlu0 %2666 }
 0x326   : > { %4268 = vpow2.f32 %v2716_v44  ;;  %v2692_v49 = vsub.f32 %v5055_v55, %v2670_v51  ;;  %v2691_v19 = vsub.f32 %v5049_v60, %v2667_v27 }
 0x327   : > { %v5116_v28 = vpop.eup %4258  ;;  %4270 = vpow2.f32 %v2714_v16 }
 0x328   : > { %v2718_v6 = vmul.f32 1.442695, %v2691_v19  ;;  %v2740_v56 = vsel %vm2239_vm1, %v5116_v28, 0.0  ;;  %v2720_v54 = vmul.f32 1.442695, %v2692_v49 }
 0x329   : > { %v2676_v34 = vpop.xlane.xlu1 %2675  ;;  %v2673_v24 = vpop.xlane.xlu0 %2672  ;;  %2741 = vadd.xlane.f32.xlu0 %v2740_v56 }
 0x32a   : > { %v2694_v25 = vsub.f32 %v5057_v53, %v2676_v34  ;;  %4272 = vpow2.f32 %v2718_v6  ;;  %v2693_v3 = vsub.f32 %v5063_v21, %v2673_v24  ;;  %v1719_v34 = vcombine.low %v5077_v46, %v5083_v35 }
 0x32b   : > { %v5121_v40 = vpop.eup %4260  ;;  %4274 = vpow2.f32 %v2720_v54 }
 0x32c   : > { %v5123_v41 = vpop.eup %4262  ;;  %v2746_v60 = vsel %vm2239_vm1, %v5121_v40, 0.0  ;;  %v2724_v42 = vmul.f32 1.442695, %v2694_v25  ;;  %v2722_v4 = vmul.f32 1.442695, %v2693_v3  ;;  %v1727_v54 = vrot.slane %v1719_v34, %v4542_v2 }
 0x32d   : > { %v2743_v55 = vsel %vm2239_vm1, %v5123_v41, 0.0  ;;  %v2679_v48 = vpop.xlane.xlu0 %2678  ;;  %2747 = vadd.xlane.f32.xlu0 %v2746_v60  ;;  %v5169_v8 = vpop.permute.xlu1 %1677 }
 0x32e   : > { %2744 = vadd.xlane.f32.xlu1 %v2743_v55  ;;  %v2695_v29 = vsub.f32 %v5065_v61, %v2679_v48  ;;  %4276 = vpow2.f32 %v2724_v42 }
 0x32f   : > { %v5130_v32 = vpop.eup %4264 }
 0x330   : > { %v5132_v53 = vpop.eup %4266  ;;  %v2752_v37 = vsel %vm2239_vm1, %v5130_v32, 0.0  ;;  %v2726_v23 = vmul.f32 1.442695, %v2695_v29 }
 0x331   : > { %v2749_v43 = vsel %vm2239_vm1, %v5132_v53, 0.0  ;;  %v1682_v13 = vpop.permute.xlu0 %1681 }
 0x332   : > { %2753 = vadd.xlane.f32.xlu1 %v2752_v37  ;;  %2750 = vadd.xlane.f32.xlu0 %v2749_v43  ;;  %4278 = vpow2.f32 %v2726_v23  ;;  %v1735_v6 = vcombine.low %v5081_v12, %v1682_v13 }
 0x333   : > { %v5138_v18 = vpop.eup %4268  ;;  %4280 = vpow2.f32 %v2722_v4 }
 0x334   : > { %v5140_v63 = vpop.eup %4270  ;;  %v2758_v61 = vsel %vm2239_vm1, %v5138_v18, 0.0 }
 0x335   : > { %v2755_v47 = vsel %vm2239_vm1, %v5140_v63, 0.0 }
 0x336   : > { %2759 = vadd.xlane.f32.xlu1 %v2758_v61  ;;  %2756 = vadd.xlane.f32.xlu0 %v2755_v47  ;;  %v1855_v47 = vcombine.low %v5079_v11, %v5169_v8 }
 0x337   : > { %v5146_v22 = vpop.eup %4272 }
 0x338   : > { %v2761_v39 = vsel %vm2239_vm1, %v5146_v22, 0.0  ;;  %v5150_v7 = vpop.eup %4274 }
 0x339   : > { %v2764_v52 = vsel %vm2239_vm1, %v5150_v7, 0.0 }
 0x33a   : > { %2762 = vadd.xlane.f32.xlu0 %v2761_v39  ;;  %v1856_v39 = vcombine.high %v5079_v11, %v5169_v8 }
 0x33b   : > { %v5154_v15 = vpop.eup %4276 }
 0x33c   : > { %v2770_v17 = vsel %vm2239_vm1, %v5154_v15, 0.0 }
 0x33e   : > { %2765 = vadd.xlane.f32.xlu0 %v2764_v52 }
 0x33f   : > { %v5158_v58 = vpop.eup %4278 }
 0x340   : > { %v2773_v59 = vsel %vm2239_vm1, %v5158_v58, 0.0  ;;  %v5165_v62 = vpop.eup %4280 }
 0x341   : > { %v2767_v45 = vsel %vm2239_vm1, %v5165_v62, 0.0 }
 0x342   : > { %2771 = vadd.xlane.f32.xlu0 %v2770_v17 }
 0x346   : > { %2774 = vadd.xlane.f32.xlu0 %v2773_v59 }
 0x347   : > { %1683 = vrot.lane.b32.xlu1 %v4515_v50, %s4364_s7 }
 0x36b   : > { %2768 = vadd.xlane.f32.xlu1 %v2767_v45 }
 0x39a   : > { %v2730_v31 = vpop.xlane.xlu1 %2729 }
 0x39b   : > { %4282 = vrcp.f32 %v2730_v31 }
 0x39e   : > { %v2733_v9 = vpop.xlane.xlu0 %2732 }
 0x39f   : > { %v2736_v0 = vpop.xlane.xlu1 %2735  ;;  %4284 = vrcp.f32 %v2733_v9 }
 0x3a0   : > { %4286 = vrcp.f32 %v2736_v0 }
 0x3a2   : > { %v2739_v50 = vpop.xlane.xlu0 %2738 }
 0x3a3   : > { %4288 = vrcp.f32 %v2739_v50  ;;  %v1863_v50 = vrot.slane %v1855_v47, %v4542_v2 }
 0x3a8   : > { %v4283_v21 = vpop.eup %4282 }
 0x3a9   : > { %v2777_v14 = vmul.f32 %v4283_v21, %v5091_v30  ;;  %v1736_v30 = vcombine.high %v5081_v12, %v1682_v13  ;;  %v1870_v21 = vrot.slane %v1856_v39, %v4542_v2 }
 0x3ab   : > { %v1750_v12 = vrot.slane %v1736_v30, %v4542_v2 }
 0x3ac   : > { %v4285_v57 = vpop.eup %4284 }
 0x3ad   : > { %v2779_v44 = vmul.f32 %v4285_v57, %v5095_v38  ;;  %v4287_v16 = vpop.eup %4286 }
 0x3ae   : > { %v2781_v49 = vmul.f32 %v4287_v16, %v5097_v33  ;;  %v1720_v33 = vcombine.high %v5077_v46, %v5083_v35 }
 0x3af   : > { %v2808_v51 = vpack.c.bf16 %v2779_v44, %v2777_v14 }
 0x3b0   : > { %v4289_v27 = vpop.eup %4288  ;;  %v1734_v46 = vrot.slane %v1720_v33, %v4542_v2 }
 0x3b1   : > { %4105 = vmatmul.mubr.msk.bf16.vlgmr.msra.gmra.mxu0 %vm2239_vm1, %v2808_v51  ;;  %v2783_v19 = vmul.f32 %v4289_v27, %v5104_v26  ;;  %v1743_v26 = vrot.slane %v1735_v6, %v4542_v2 }
 0x3b2   : > { %v2742_v56 = vpop.xlane.xlu0 %2741  ;;  %4115 = vmatpush3.bf16.msra.mxu0 %v5005_v10  ;;  %4116 = vmatprep.mubr.msk.bf16.mxu0 %vm4357_vm0, %v4356_v1  ;;  %v1799_v60 = vcombine.low %v1734_v46, %v1750_v12  ;;  %v1800_v55 = vcombine.high %v1734_v46, %v1750_v12 }
 0x3b3   : > { %v2809_v38 = vpack.c.bf16 %v2783_v19, %v2781_v49  ;;  %4126 = vmatprep.subr.bf16.mxu0 %v4356_v1  ;;  %4290 = vrcp.f32 %v2742_v56  ;;  %v1783_v35 = vcombine.low %v1727_v54, %v1743_v26  ;;  %v1784_v25 = vcombine.high %v1727_v54, %v1743_v26 }
 0x3b4   : > { %v1807_v37 = vrot.slane %v1799_v60, %v4545_v5  ;;  %v1814_v43 = vrot.slane %v1800_v55, %v4545_v5 }
 0x3b5   : > { %4111 = vmatmul.mubr.msk.bf16.vlgmr.msra.gmra.mxu1 %vm2239_vm1, %v2809_v38  ;;  %v1791_v42 = vrot.slane %v1783_v35, %v4545_v5  ;;  %v1798_v29 = vrot.slane %v1784_v25, %v4545_v5 }
 0x3b6   : > { %v2748_v10 = vpop.xlane.xlu0 %2747  ;;  %4121 = vmatpush3.bf16.msra.mxu1 %v5007_v20  ;;  %4122 = vmatprep.mubr.msk.bf16.mxu1 %vm4357_vm0, %v4356_v1  ;;  %v3937_v3 = vcombine.low %v1807_v37, %v1814_v43  ;;  %v3939_v4 = vcombine.high %v1807_v37, %v1814_v43 }
 0x3b7   : > { %v2745_v24 = vpop.xlane.xlu1 %2744  ;;  %4132 = vmatprep.subr.bf16.mxu1 %v4356_v1  ;;  %v3933_v17 = vcombine.low %v1791_v42, %v1798_v29  ;;  %v3935_v59 = vcombine.high %v1791_v42, %v1798_v29 }
 0x3b8   : > { %4292 = vrcp.f32 %v2745_v24  ;;  %v2006_v16 = vrot.slane %v3937_v3, %v4542_v2  ;;  %v2022_v51 = vrot.slane %v3939_v4, %v4542_v2 }
 0x3b9   : > { %4294 = vrcp.f32 %v2748_v10  ;;  %v1974_v8 = vrot.slane %v3933_v17, %v4542_v2 }
 0x3ba   : > { %v2071_v54 = vcombine.low %v2006_v16, %v2022_v51 }
 0x3bb   : > { %v2754_v48 = vpop.xlane.xlu1 %2753  ;;  %v2751_v20 = vpop.xlane.xlu0 %2750 }
 0x3bc   : > { %4296 = vrcp.f32 %v2751_v20  ;;  %v2079_v43 = vrot.slane %v2071_v54, %v4545_v5 }
 0x3bf   : > { %v2760_v23 = vpop.xlane.xlu1 %2759  ;;  %v2757_v61 = vpop.xlane.xlu0 %2756 }
 0x3c0   : > { %v4291_v52 = vpop.eup %4290  ;;  %4298 = vrcp.f32 %v2760_v23  ;;  %v2072_v23 = vcombine.high %v2006_v16, %v2022_v51 }
 0x3c1   : > { %4300 = vrcp.f32 %v2757_v61  ;;  %v2785_v11 = vmul.f32 %v4291_v52, %v5116_v28 }
 0x3c3   : > { %v1684_v45 = vpop.permute.xlu1 %1683  ;;  %v2763_v9 = vpop.xlane.xlu0 %2762 }
 0x3c4   : > { %v1871_v13 = vcombine.low %v5085_v36, %v1684_v45  ;;  %v1872_v31 = vcombine.high %v5085_v36, %v1684_v45  ;;  %4302 = vrcp.f32 %v2763_v9  ;;  %v1990_v36 = vrot.slane %v3935_v59, %v4542_v2 }
 0x3c5   : > { %v4293_v0 = vpop.eup %4292  ;;  %4304 = vrcp.f32 %v2754_v48 }
 0x3c6   : > { %v1879_v57 = vrot.slane %v1871_v13, %v4542_v2  ;;  %v1886_v14 = vrot.slane %v1872_v31, %v4542_v2  ;;  %v2787_v44 = vmul.f32 %v4293_v0, %v5123_v41  ;;  %v4295_v27 = vpop.eup %4294  ;;  %v2039_v24 = vcombine.low %v1974_v8, %v1990_v36 }
 0x3c7   : > { %v5215_v56 = vpop.xlane.xlu0 %2765  ;;  %v2789_v10 = vmul.f32 %v4295_v27, %v5121_v40  ;;  %v2040_v20 = vcombine.high %v1974_v8, %v1990_v36 }
 0x3c8   : > { %v1919_v49 = vcombine.low %v1863_v50, %v1879_v57  ;;  %v1920_v19 = vcombine.high %v1863_v50, %v1879_v57  ;;  %v1935_v6 = vcombine.low %v1870_v21, %v1886_v14  ;;  %v1936_v28 = vcombine.high %v1870_v21, %v1886_v14 }
 0x3c9   : > { %v2810_v30 = vpack.c.bf16 %v2787_v44, %v2785_v11  ;;  %v4297_v38 = vpop.eup %4296  ;;  %v2047_v37 = vrot.slane %v2039_v24, %v4545_v5  ;;  %v2054_v50 = vrot.slane %v2040_v20, %v4545_v5  ;;  %v2086_v21 = vrot.slane %v2072_v23, %v4545_v5 }
 0x3ca   : > { %v1927_v34 = vrot.slane %v1919_v49, %v4545_v5  ;;  %v1934_v41 = vrot.slane %v1920_v19, %v4545_v5  ;;  %v1943_v33 = vrot.slane %v1935_v6, %v4545_v5  ;;  %v1950_v26 = vrot.slane %v1936_v28, %v4545_v5 }
 0x3cb   : > { %4117 = vmatmul.mubr.msk.bf16.vlgmr.msra.gmra.mxu0 %vm2239_vm1, %v2810_v30  ;;  %v2791_v12 = vmul.f32 %v4297_v38, %v5132_v53  ;;  %v2772_v55 = vpop.xlane.xlu0 %2771  ;;  %v2091_v8 = vcombine.low %v2047_v37, %v2079_v43  ;;  %v2092_v14 = vcombine.high %v2047_v37, %v2079_v43  ;;  %v2093_v28 = vcombine.low %v2054_v50, %v2086_v21 }
 0x3cc   : > { %v3941_v46 = vcombine.low %v1927_v34, %v1934_v41  ;;  %v3943_v35 = vcombine.high %v1927_v34, %v1934_v41  ;;  %v3945_v25 = vcombine.low %v1943_v33, %v1950_v26  ;;  %v3947_v60 = vcombine.high %v1943_v33, %v1950_v26  ;;  %4128 = vmatprep.mubr.msk.bf16.mxu0 %vm4357_vm0, %v4356_v1 }
 0x3cd   : > { %v2811_v48 = vpack.c.bf16 %v2791_v12, %v2789_v10  ;;  %4306 = vrcp.f32 %v2772_v55  ;;  %v4299_v61 = vpop.eup %4298  ;;  %v2094_v30 = vcombine.high %v2054_v50, %v2086_v21 }
 0x3ce   : > { %v2110_v42 = vrot.slane %v3941_v46, %v4542_v2  ;;  %v2126_v29 = vrot.slane %v3943_v35, %v4542_v2  ;;  %v2142_v40 = vrot.slane %v3945_v25, %v4542_v2  ;;  %v2158_v53 = vrot.slane %v3947_v60, %v4542_v2  ;;  %v4301_v3 = vpop.eup %4300 }
 0x3cf   : > { %4123 = vmatmul.mubr.msk.bf16.vlgmr.msra.gmra.mxu1 %vm2239_vm1, %v2811_v48  ;;  %v2775_v47 = vpop.xlane.xlu0 %2774  ;;  %v2795_v36 = vmul.f32 %v4301_v3, %v5140_v63  ;;  %v2797_v16 = vmul.f32 %v4299_v61, %v5138_v18 }
 0x3d0   : > { %v2175_v39 = vcombine.low %v2110_v42, %v2126_v29  ;;  %v2207_v52 = vcombine.low %v2142_v40, %v2158_v53  ;;  %4134 = vmatprep.mubr.msk.bf16.mxu1 %vm4357_vm0, %v4356_v1  ;;  %v2176_v17 = vcombine.high %v2110_v42, %v2126_v29  ;;  %v2208_v59 = vcombine.high %v2142_v40, %v2158_v53 }
 0x3d1   : > { %4308 = vrcp.f32 %v2775_v47  ;;  %v4303_v4 = vpop.eup %4302 }
 0x3d2   : > { %v2183_v45 = vrot.slane %v2175_v39, %v4545_v5  ;;  %v2215_v13 = vrot.slane %v2207_v52, %v4545_v5  ;;  %v2190_v31 = vrot.slane %v2176_v17, %v4545_v5  ;;  %v2222_v9 = vrot.slane %v2208_v59, %v4545_v5  ;;  %v4305_v11 = vpop.eup %4304 }
 0x3d3   : > { %v2799_v0 = vmul.f32 %v4303_v4, %v5146_v22  ;;  %v2793_v6 = vmul.f32 %v4305_v11, %v5130_v32  ;;  %4310 = vrcp.f32 %v5215_v56 }
 0x3d4   : > { %v2227_v57 = vcombine.low %v2183_v45, %v2215_v13  ;;  %v2228_v44 = vcombine.high %v2183_v45, %v2215_v13  ;;  %v2229_v49 = vcombine.low %v2190_v31, %v2222_v9  ;;  %v2230_v19 = vcombine.high %v2190_v31, %v2222_v9 }
 0x3d5   : > { %v2813_v22 = vpack.c.bf16 %v2799_v0, %v2797_v16  ;;  %v2812_v38 = vpack.c.bf16 %v2795_v36, %v2793_v6 }
 0x3d6   : > { %v2235_v51 = vpack.c.bf16 %v2227_v57, %v2091_v8  ;;  %v2236_v27 = vpack.c.bf16 %v2228_v44, %v2092_v14  ;;  %v2237_v34 = vpack.c.bf16 %v2229_v49, %v2093_v28  ;;  %v2238_v63 = vpack.c.bf16 %v2230_v19, %v2094_v30 }
 0x3d8   : > { %4127 = vmatpush3.bf16.msra.mxu0 %v2235_v51  ;;  %4133 = vmatpush3.bf16.msra.mxu1 %v2236_v27 }
 0x3d9   : > { %4138 = vmatprep.subr.bf16.mxu0 %v4356_v1  ;;  %4144 = vmatprep.subr.bf16.mxu1 %v4356_v1 }
 0x3da   : > { %v4307_v18 = vpop.eup %4306 }
 0x3db   : > { %4129 = vmatmul.mubr.msk.bf16.vlgmr.msra.gmra.mxu0 %vm2239_vm1, %v2812_v38  ;;  %4135 = vmatmul.mubr.msk.bf16.vlgmr.msra.gmra.mxu1 %vm2239_vm1, %v2813_v22  ;;  %v2805_v41 = vmul.f32 %v4307_v18, %v5154_v15 }
 0x3dc   : > { %4139 = vmatpush3.bf16.msra.mxu0 %v2237_v34  ;;  %4145 = vmatpush3.bf16.msra.mxu1 %v2238_v63 }
 0x3dd   : > { %4146 = vmatprep.mubr.msk.bf16.mxu1 %vm4357_vm0, %v4356_v1  ;;  %4140 = vmatprep.mubr.msk.bf16.mxu0 %vm4357_vm0, %v4356_v1 }
 0x3de   : > { %v4309_v32 = vpop.eup %4308 }
 0x3df   : > { %v2807_v33 = vmul.f32 %v4309_v32, %v5158_v58 }
 0x3e0   : > { %v4311_v12 = vpop.eup %4310 }
 0x3e1   : > { %v2815_v26 = vpack.c.bf16 %v2807_v33, %v2805_v41  ;;  %v2801_v54 = vmul.f32 %v4311_v12, %v5150_v7 }
 0x3e3   : > { %4147 = vmatmul.mubr.msk.bf16.vlgmr.msra.gmra.mxu1 %vm2239_vm1, %v2815_v26 }
 0x3f4   : > { %v2769_v10 = vpop.xlane.xlu1 %2768 }
 0x3f5   : > { %4312 = vrcp.f32 %v2769_v10 }
 0x402   : > { %v4313_v24 = vpop.eup %4312 }
 0x403   : > { %v2803_v46 = vmul.f32 %v4313_v24, %v5165_v62 }
 0x405   : > { %v2814_v35 = vpack.c.bf16 %v2803_v46, %v2801_v54 }
 0x407   : > { %4141 = vmatmul.mubr.msk.bf16.vlgmr.msra.gmra.mxu0 %vm2239_vm1, %v2814_v35 }
 0x471   : > { %v2853_v1 = vpop.f32.mrf.mxu0 }
 0x473   : > { %v4106_v15 = vpop.f32.mrf.mxu0 }
 0x475   : > { %v2856_v25 = vpop.f32.mrf.mxu0  ;;  %v2897_v58 = vpop.f32.mrf.mxu1 }
 0x477   : > { %v4107_v60 = vpop.f32.mrf.mxu0  ;;  %v4112_v55 = vpop.f32.mrf.mxu1 }
 0x479   : > { %v2900_v48 = vpop.f32.mrf.mxu1 }
 0x47b   : > { %v4113_v20 = vpop.f32.mrf.mxu1 }
 0x48b   : > { %v2941_v56 = vpop.f32.mrf.mxu0 }
 0x48c   : > { %v3168_v29 = vcombine.low %v2853_v1, %v2941_v56  ;;  %v3169_v40 = vcombine.high %v2853_v1, %v2941_v56 }
 0x48d   : > { %v4118_v42 = vpop.f32.mrf.mxu0 }
 0x48e   : > { %v3176_v61 = vrot.slane %v3168_v29, %v4542_v2  ;;  %v3183_v47 = vrot.slane %v3169_v40, %v4542_v2 }
 0x48f   : > { %v2944_v53 = vpop.f32.mrf.mxu0  ;;  %v2985_v37 = vpop.f32.mrf.mxu1 }
 0x490   : > { %v3184_v7 = vcombine.low %v2897_v58, %v2985_v37  ;;  %v3185_v43 = vcombine.high %v2897_v58, %v2985_v37  ;;  %v3304_v17 = vcombine.low %v2856_v25, %v2944_v53  ;;  %v3305_v59 = vcombine.high %v2856_v25, %v2944_v53 }
 0x491   : > { %v4119_v62 = vpop.f32.mrf.mxu0  ;;  %v4124_v23 = vpop.f32.mrf.mxu1 }
 0x492   : > { %v3192_v39 = vrot.slane %v3184_v7, %v4542_v2  ;;  %v3199_v52 = vrot.slane %v3185_v43, %v4542_v2  ;;  %v3312_v14 = vrot.slane %v3304_v17, %v4542_v2  ;;  %v3319_v44 = vrot.slane %v3305_v59, %v4542_v2 }
 0x493   : > { %v2988_v3 = vpop.f32.mrf.mxu1 }
 0x494   : > { %v3232_v4 = vcombine.low %v3176_v61, %v3192_v39  ;;  %v3233_v45 = vcombine.high %v3176_v61, %v3192_v39  ;;  %v3248_v13 = vcombine.low %v3183_v47, %v3199_v52  ;;  %v3249_v31 = vcombine.high %v3183_v47, %v3199_v52 }
 0x495   : > { %v3320_v9 = vcombine.low %v2900_v48, %v2988_v3  ;;  %v3321_v0 = vcombine.high %v2900_v48, %v2988_v3  ;;  %v4125_v50 = vpop.f32.mrf.mxu1 }
 0x496   : > { %v3240_v21 = vrot.slane %v3232_v4, %v4545_v5  ;;  %v3247_v11 = vrot.slane %v3233_v45, %v4545_v5  ;;  %v3256_v8 = vrot.slane %v3248_v13, %v4545_v5  ;;  %v3263_v57 = vrot.slane %v3249_v31, %v4545_v5 }
 0x497   : > { %v3328_v36 = vrot.slane %v3320_v9, %v4542_v2  ;;  %v3335_v16 = vrot.slane %v3321_v0, %v4542_v2 }
 0x498   : > { %v3964_v51 = vcombine.low %v3240_v21, %v3247_v11  ;;  %v3966_v27 = vcombine.high %v3240_v21, %v3247_v11  ;;  %v3968_v49 = vcombine.low %v3256_v8, %v3263_v57  ;;  %v3970_v19 = vcombine.high %v3256_v8, %v3263_v57 }
 0x499   : > { %v3368_v6 = vcombine.low %v3312_v14, %v3328_v36  ;;  %v3369_v22 = vcombine.high %v3312_v14, %v3328_v36  ;;  %v3384_v28 = vcombine.low %v3319_v44, %v3335_v16  ;;  %v3385_v30 = vcombine.high %v3319_v44, %v3335_v16 }
 0x49a   : > { %v3448_v38 = vrot.slane %v3964_v51, %v4542_v2  ;;  %v3464_v34 = vrot.slane %v3966_v27, %v4542_v2  ;;  %v3480_v63 = vrot.slane %v3968_v49, %v4542_v2  ;;  %v3496_v18 = vrot.slane %v3970_v19, %v4542_v2 }
 0x49b   : > { %v3376_v32 = vrot.slane %v3368_v6, %v4545_v5  ;;  %v3383_v41 = vrot.slane %v3369_v22, %v4545_v5  ;;  %v3392_v33 = vrot.slane %v3384_v28, %v4545_v5  ;;  %v3399_v26 = vrot.slane %v3385_v30, %v4545_v5  ;;  %v3029_v10 = vpop.f32.mrf.mxu0  ;;  %v3073_v12 = vpop.f32.mrf.mxu1 }
 0x49c   : > { %v3505_v24 = vcombine.high %v3448_v38, %v3464_v34  ;;  %v3537_v54 = vcombine.high %v3480_v63, %v3496_v18  ;;  %v3504_v46 = vcombine.low %v3448_v38, %v3464_v34  ;;  %v3536_v35 = vcombine.low %v3480_v63, %v3496_v18 }
 0x49d   : > { %v3972_v1 = vcombine.low %v3376_v32, %v3383_v41  ;;  %v3974_v15 = vcombine.high %v3376_v32, %v3383_v41  ;;  %v3976_v25 = vcombine.low %v3392_v33, %v3399_v26  ;;  %v3978_v58 = vcombine.high %v3392_v33, %v3399_v26  ;;  %v4130_v60 = vpop.f32.mrf.mxu0  ;;  %v4136_v55 = vpop.f32.mrf.mxu1 }
 0x49e   : > { %v5281_v48 = vrot.slane %v3504_v46, %v4545_v5  ;;  %v5284_v20 = vrot.slane %v3536_v35, %v4545_v5  ;;  %v3519_v7 = vrot.slane %v3505_v24, %v4545_v5  ;;  %v3551_v43 = vrot.slane %v3537_v54, %v4545_v5 }
 0x49f   : > { %v3584_v56 = vrot.slane %v3972_v1, %v4542_v2  ;;  %v3600_v42 = vrot.slane %v3974_v15, %v4542_v2  ;;  %v3616_v29 = vrot.slane %v3976_v25, %v4542_v2  ;;  %v3632_v40 = vrot.slane %v3978_v58, %v4542_v2  ;;  %v3032_v53 = vpop.f32.mrf.mxu0  ;;  %v3076_v37 = vpop.f32.mrf.mxu1 }
 0x4a0   : > { %v3568_v62 = vcombine.low %v5281_v48, %v5284_v20  ;;  %v3570_v31 = vcombine.low %v3519_v7, %v3551_v43  ;;  %v3569_v50 = vcombine.high %v5281_v48, %v5284_v20  ;;  %v3571_v16 = vcombine.high %v3519_v7, %v3551_v43 }
 0x4a1   : > { %v4131_v23 = vpop.f32.mrf.mxu0  ;;  %v4137_v61 = vpop.f32.mrf.mxu1  ;;  %v3641_v47 = vcombine.high %v3584_v56, %v3600_v42  ;;  %v3673_v39 = vcombine.high %v3616_v29, %v3632_v40  ;;  %v3640_v52 = vcombine.low %v3584_v56, %v3600_v42  ;;  %v3672_v17 = vcombine.low %v3616_v29, %v3632_v40 }
 0x4a3   : > { %v3161_v59 = vpop.f32.mrf.mxu1  ;;  %v3655_v3 = vrot.slane %v3641_v47, %v4545_v5  ;;  %v3687_v4 = vrot.slane %v3673_v39, %v4545_v5  ;;  %v5297_v45 = vrot.slane %v3640_v52, %v4545_v5  ;;  %v5300_v13 = vrot.slane %v3672_v17, %v4545_v5 }
 0x4a4   : > { %v3216_v27 = vcombine.low %v3073_v12, %v3161_v59  ;;  %v3217_v49 = vcombine.high %v3073_v12, %v3161_v59 }
 0x4a5   : > { %v4148_v9 = vpop.f32.mrf.mxu1  ;;  %v3706_v0 = vcombine.low %v3655_v3, %v3687_v4  ;;  %v3705_v21 = vcombine.high %v5297_v45, %v5300_v13  ;;  %v3704_v11 = vcombine.low %v5297_v45, %v5300_v13  ;;  %v3707_v44 = vcombine.high %v3655_v3, %v3687_v4 }
 0x4a6   : > { %v3224_v30 = vrot.slane %v3216_v27, %v4542_v2  ;;  %v3231_v38 = vrot.slane %v3217_v49, %v4542_v2 }
 0x4a7   : > { %v3164_v8 = vpop.f32.mrf.mxu1  ;;  %v4188_v57 = vpack.i.bf16 %v3706_v0, %v3570_v31  ;;  %v4183_v14 = vpack.i.bf16 %v3705_v21, %v3569_v50  ;;  %v4193_v51 = vpack.i.bf16 %v3707_v44, %v3571_v16 }
 0x4a8   : > { %v3352_v18 = vcombine.low %v3076_v37, %v3164_v8  ;;  %v3353_v32 = vcombine.high %v3076_v37, %v3164_v8 }
 0x4a9   : > { %4189 = vrot.lane.b32.xlu0 %v4188_v57, %s4363_s6  ;;  %4184 = vrot.lane.b32.xlu1 %v4183_v14, %s4364_s7  ;;  %v4149_v36 = vpop.f32.mrf.mxu1 }
 0x4aa   : > { %v3360_v58 = vrot.slane %v3352_v18, %v4542_v2  ;;  %v3367_v60 = vrot.slane %v3353_v32, %v4542_v2 }
 0x4ad   : > { %4194 = vrot.lane.b32.xlu1 %v4193_v51, %s4362_s5 }
 0x4c7   : > { %v3117_v19 = vpop.f32.mrf.mxu0 }
 0x4c8   : > { %v3200_v6 = vcombine.low %v3029_v10, %v3117_v19  ;;  %v3201_v22 = vcombine.high %v3029_v10, %v3117_v19 }
 0x4c9   : > { %v4142_v28 = vpop.f32.mrf.mxu0 }
 0x4ca   : > { %v3208_v34 = vrot.slane %v3200_v6, %v4542_v2  ;;  %v3215_v63 = vrot.slane %v3201_v22, %v4542_v2 }
 0x4cb   : > { %v3120_v41 = vpop.f32.mrf.mxu0 }
 0x4cc   : > { %v3264_v33 = vcombine.low %v3208_v34, %v3224_v30  ;;  %v3265_v26 = vcombine.high %v3208_v34, %v3224_v30  ;;  %v3280_v24 = vcombine.low %v3215_v63, %v3231_v38  ;;  %v3281_v54 = vcombine.high %v3215_v63, %v3231_v38 }
 0x4cd   : > { %v3336_v12 = vcombine.low %v3032_v53, %v3120_v41  ;;  %v3337_v46 = vcombine.high %v3032_v53, %v3120_v41  ;;  %v4143_v35 = vpop.f32.mrf.mxu0 }
 0x4ce   : > { %v3272_v10 = vrot.slane %v3264_v33, %v4545_v5  ;;  %v3279_v1 = vrot.slane %v3265_v26, %v4545_v5  ;;  %v3288_v15 = vrot.slane %v3280_v24, %v4545_v5  ;;  %v3295_v25 = vrot.slane %v3281_v54, %v4545_v5 }
 0x4cf   : > { %v3344_v55 = vrot.slane %v3336_v12, %v4542_v2  ;;  %v3351_v56 = vrot.slane %v3337_v46, %v4542_v2 }
 0x4d0   : > { %v3965_v42 = vcombine.low %v3272_v10, %v3279_v1  ;;  %v3967_v29 = vcombine.high %v3272_v10, %v3279_v1  ;;  %v3969_v40 = vcombine.low %v3288_v15, %v3295_v25  ;;  %v3971_v53 = vcombine.high %v3288_v15, %v3295_v25 }
 0x4d1   : > { %v3400_v37 = vcombine.low %v3344_v55, %v3360_v58  ;;  %v3401_v7 = vcombine.high %v3344_v55, %v3360_v58  ;;  %v3416_v43 = vcombine.low %v3351_v56, %v3367_v60  ;;  %v3417_v23 = vcombine.high %v3351_v56, %v3367_v60 }
 0x4d2   : > { %v3455_v61 = vrot.slane %v3965_v42, %v4542_v2  ;;  %v3471_v47 = vrot.slane %v3967_v29, %v4542_v2  ;;  %v3487_v39 = vrot.slane %v3969_v40, %v4542_v2  ;;  %v3503_v52 = vrot.slane %v3971_v53, %v4542_v2 }
 0x4d3   : > { %v3408_v17 = vrot.slane %v3400_v37, %v4545_v5  ;;  %v3415_v59 = vrot.slane %v3401_v7, %v4545_v5  ;;  %v3424_v3 = vrot.slane %v3416_v43, %v4545_v5  ;;  %v3431_v4 = vrot.slane %v3417_v23, %v4545_v5 }
 0x4d4   : > { %v3520_v31 = vcombine.low %v3455_v61, %v3471_v47  ;;  %v3552_v9 = vcombine.low %v3487_v39, %v3503_v52  ;;  %v3521_v27 = vcombine.high %v3455_v61, %v3471_v47  ;;  %v3553_v49 = vcombine.high %v3487_v39, %v3503_v52 }
 0x4d5   : > { %v3973_v0 = vcombine.low %v3408_v17, %v3415_v59  ;;  %v3975_v50 = vcombine.high %v3408_v17, %v3415_v59  ;;  %v3977_v21 = vcombine.low %v3424_v3, %v3431_v4  ;;  %v3979_v8 = vcombine.high %v3424_v3, %v3431_v4 }
 0x4d6   : > { %v3528_v16 = vrot.slane %v3520_v31, %v4545_v5  ;;  %v3560_v51 = vrot.slane %v3552_v9, %v4545_v5  ;;  %v3567_v18 = vrot.slane %v3553_v49, %v4545_v5 }
 0x4d7   : > { %v3591_v57 = vrot.slane %v3973_v0, %v4542_v2  ;;  %v3607_v14 = vrot.slane %v3975_v50, %v4542_v2  ;;  %v3623_v44 = vrot.slane %v3977_v21, %v4542_v2  ;;  %v3639_v36 = vrot.slane %v3979_v8, %v4542_v2 }
 0x4d8   : > { %v3535_v2 = vrot.slane %v3521_v27, %v4545_v5  ;;  %v3573_v32 = vcombine.high %v3528_v16, %v3560_v51  ;;  %v3572_v33 = vcombine.low %v3528_v16, %v3560_v51 }
 0x4d9   : > { %v3656_v19 = vcombine.low %v3591_v57, %v3607_v14  ;;  %v3688_v6 = vcombine.low %v3623_v44, %v3639_v36  ;;  %v3657_v22 = vcombine.high %v3591_v57, %v3607_v14  ;;  %v3689_v28 = vcombine.high %v3623_v44, %v3639_v36 }
 0x4da   : > { %v3575_v35 = vcombine.high %v3535_v2, %v3567_v18  ;;  %v3574_v10 = vcombine.low %v3535_v2, %v3567_v18 }
 0x4db   : > { %v3664_v30 = vrot.slane %v3656_v19, %v4545_v5  ;;  %v3696_v38 = vrot.slane %v3688_v6, %v4545_v5  ;;  %v3671_v34 = vrot.slane %v3657_v22, %v4545_v5  ;;  %v3703_v63 = vrot.slane %v3689_v28, %v4545_v5 }
 0x4dd   : > { %v3709_v41 = vcombine.high %v3664_v30, %v3696_v38  ;;  %v3708_v26 = vcombine.low %v3664_v30, %v3696_v38  ;;  %v3711_v12 = vcombine.high %v3671_v34, %v3703_v63  ;;  %v3710_v46 = vcombine.low %v3671_v34, %v3703_v63 }
 0x4df   : > { %v4203_v24 = vpack.i.bf16 %v3709_v41, %v3573_v32  ;;  %v4198_v54 = vpack.i.bf16 %v3708_v26, %v3572_v33  ;;  %v4213_v1 = vpack.i.bf16 %v3711_v12, %v3575_v35  ;;  %v4208_v15 = vpack.i.bf16 %v3710_v46, %v3574_v10 }
 0x4e1   : > { %4204 = vrot.lane.b32.xlu0 %v4203_v24, %s4360_s30  ;;  %4199 = vrot.lane.b32.xlu1 %v4198_v54, %s4361_s4 }
 0x4e5   : > { %4214 = vrot.lane.b32.xlu0 %v4213_v1, %s4358_s28  ;;  %4209 = vrot.lane.b32.xlu1 %v4208_v15, %s4359_s29 }
 0x51b   : > { %v4185_v5 = vpop.permute.xlu1 %4184  ;;  %v4190_v60 = vpop.permute.xlu0 %4189 }
 0x51c   : > { %v4187_v25 = vunpack.i.h.bf16 %v4185_v5  ;;  %v4186_v58 = vunpack.i.l.bf16 %v4185_v5  ;;  %v4192_v56 = vunpack.i.h.bf16 %v4190_v60  ;;  %v4191_v42 = vunpack.i.l.bf16 %v4190_v60 }
 0x51e   : > { %v3768_v29 = vsel %vm2239_vm1, %v3568_v62, %v4186_v58  ;;  %v3769_v40 = vsel %vm2239_vm1, %v3704_v11, %v4187_v25 }
 0x51f   : > { %v4195_v55 = vpop.permute.xlu1 %4194  ;;  %v3772_v23 = vsel %vm3770_vm2, %v3769_v40, %v4192_v56  ;;  %v3771_v61 = vsel %vm3770_vm2, %v3768_v29, %v4191_v42 }
 0x520   : > { %v4197_v53 = vunpack.i.h.bf16 %v4195_v55  ;;  %v4196_v37 = vunpack.i.l.bf16 %v4195_v55 }
 0x522   : > { %v3774_v52 = vsel %vm3773_vm3, %v3771_v61, %v4196_v37  ;;  %v3775_v48 = vsel %vm3773_vm3, %v3772_v23, %v4197_v53 }
 0x553   : > { %v4200_v7 = vpop.permute.xlu1 %4199  ;;  %v4205_v43 = vpop.permute.xlu0 %4204 }
 0x554   : > { %v4202_v47 = vunpack.i.h.bf16 %v4200_v7  ;;  %v4201_v39 = vunpack.i.l.bf16 %v4200_v7  ;;  %v4207_v20 = vunpack.i.h.bf16 %v4205_v43  ;;  %v4206_v62 = vunpack.i.l.bf16 %v4205_v43 }
 0x556   : > { %v3777_v17 = vsel %vm3776_vm4, %v3774_v52, %v4201_v39  ;;  %v3778_v59 = vsel %vm3776_vm4, %v3775_v48, %v4202_v47 }
 0x557   : > { %v4210_v45 = vpop.permute.xlu1 %4209  ;;  %v4215_v13 = vpop.permute.xlu0 %4214  ;;  %v3780_v9 = vsel %vm3779_vm5, %v3777_v17, %v4206_v62  ;;  %v3781_v0 = vsel %vm3779_vm5, %v3778_v59, %v4207_v20 }
 0x558   : > { %v4212_v11 = vunpack.i.h.bf16 %v4210_v45  ;;  %v4211_v3 = vunpack.i.l.bf16 %v4210_v45  ;;  %v4217_v4 = vunpack.i.h.bf16 %v4215_v13  ;;  %v4216_v31 = vunpack.i.l.bf16 %v4215_v13 }
 0x55a   : > { %v3783_v50 = vsel %vm3782_vm6, %v3780_v9, %v4211_v3  ;;  %v3784_v21 = vsel %vm3782_vm6, %v3781_v0, %v4212_v11 }
 0x55b   : > { %v3786_v8 = vsel %vm3785_vm7, %v3783_v50, %v4216_v31  ;;  %v3787_v57 = vsel %vm3785_vm7, %v3784_v21, %v4217_v4 }
 0x55c   : > { %v3991_v14 = vpack.c.bf16 %v3787_v57, %v3786_v8 }
 0x55e   : > { %3992 = vst [vmem:[%s185_s11] sm:$0xff] %v3991_v14  }
 0x55f PF: > { %s14_s12 = sadd.s32 1, %s4350_s12  }
 0x560   : > { %p11_p1 = scmp.ge.s32.totalorder %s14_s12, 4  }
 0x562   :  { %13 = sbr.rel (!%p11_p1) target bundleno = 1 (0x1), region = 67 }
 0x567   :  { %3819 = vsyncpa [#allocation3], 1 }
 0x568   :  { %3821 = vsyncpa [#allocation3 + $0x1], 1 }

// kernel: tds_transformer.10
= control target key start
LH: loop header
LB: loop body
LE: loop exit
PB: predicated region body
PF: predicated region fallthrough
CT: control target
= control target key end

     0   :  { %12 = vsyncpa [#allocation3], 0  ;;  %s1877_s0 = inlined_call_operand.vmem [shape: f32[32,128], index: 0, kind: input, shape index: {}, may-alias: {0,7}]   ;;  %s1878_s1 = inlined_call_operand.vmem [shape: bf16[128,512], index: 1, kind: input, shape index: {}]   ;;  %s1879_s2 = inlined_call_operand.hbm [shape: f32[1,512], index: 2, kind: input, shape index: {}]   ;;  %s1880_s3 = inlined_call_operand.vmem [shape: bf16[512,128], index: 3, kind: input, shape index: {}]   ;;  %s1881_s4 = inlined_call_operand.hbm [shape: f32[1,128], index: 4, kind: input, shape index: {}]   ;;  %s1882_s5 = inlined_call_operand.hbm [shape: f32[1,128], index: 5, kind: input, shape index: {}]   ;;  %s1883_s6 = inlined_call_operand.hbm [shape: f32[1,128], index: 6, kind: input, shape index: {}]   ;;  %s1884_s7 = inlined_call_operand.vmem [shape: f32[32,128], index: 7, kind: output, shape index: {}, may-alias: {0,7}]  }
   0x1   :  { %13 = vsyncpa [#allocation5], 0 }
   0x2   :  { %14 = vsyncpa [#allocation8], 0  ;;  %s1569_s24 = smov 0  }
   0x3 LB: > { %s1136_s25 = sadd.s32 4294967295, %s1522_s24   ;;  %p1138_p0 = scmp.ge.s32.totalorder %s1522_s24, 1  ;;  %s1522_s24 = sphi %s1569_s24, %s20_s24  }
   0x4   : > { %p203_p1 = scmp.lt.s32.totalorder %s1522_s24, 3  ;;  %p1579_p2 = scmp.eq.s32.totalorder %s1136_s25, 0 }
   0x5   : > { %s1524_s27 = smov [#allocation4]   ;;  %s1525_s30 = smov [#allocation2]  }
   0x6   : > { %s1888_s26 = scalar_select %p1579_p2, 1, 0 }
   0x7   : > { %s233_s28 = sshll.u32 %s1524_s27, 4  ;;  %p1583_p3 = pnand %p1138_p0, %p203_p1  ;;  %s234_s28 = int_to_ptr.vmem [resolvable:$true] %s233_s28 }
   0x8   : > { %s219_s8 = sshll.u32 %s1525_s30, 4  ;;  %s1526_s9 = smov [#allocation6]   ;;  %s220_s8 = int_to_ptr.vmem [resolvable:$true] %s219_s8 }
   0x9   : > { %s1889_s29 = scalar_select %p1583_p3, 1, 0 }
   0xa   : > { %p1282_p4 = pneg %p1583_p3  ;;  %s244_s10 = sshll.u32 %s1526_s9, 4  ;;  %s1595_s10 = int_to_ptr.vmem [resolvable:$true] %s244_s10 }
   0xb   : > { %s1527_s12 = smov [#allocation7]   ;;  %s1411_s14 = scalar_lea.vmem %s234_s28, 16 }
   0xc   : > { %p1591_p5 = pnand %p1579_p2, %p1282_p4  ;;  %s255_s13 = sshll.u32 %s1527_s12, 4  ;;  %s1597_s13 = int_to_ptr.vmem [resolvable:$true] %s255_s13 }
   0xd   : > { %p1412_p7 = scmp.ne.s32.totalorder %s234_s28, %s1411_s14  ;;  %s1418_s15 = scalar_lea.vmem %s234_s28, 32 }
   0xe   : > { %p1402_p6 = pneg %p1591_p5  ;;  %p1419_p10 = scmp.lt.s32.totalorder %s234_s28, %s234_s28 }
   0xf   : > { %p1420_p11 = scmp.lt.s32.totalorder %s1418_s15, %s1411_s14 }
  0x10   : > { %p1414_p8 = pnand %p1412_p7, %p1402_p6 }
  0x11   : > { %p1421_p12 = por %p1420_p11, %p1419_p10 }
  0x12   : > { %p1415_p9 = pneg %p1414_p8 }
  0x14   : > { %p1422_p13 = pnand %p1421_p12, %p1415_p9 }
  0x16   : > { %1425 = shalt.err (!%p1422_p13)
}
  0x17   : > { %1288 = dma.hbm_to_vmem [thread:$0]  (!%p1591_p5), %s1881_s4, 16, %s234_s28, [#allocation5]  }
  0x18   : > { %s1437_s18 = scalar_lea.vmem %s220_s8, 64  ;;  %p1445_p7 = scmp.lt.s32.totalorder %s220_s8, %s220_s8 }
  0x19   : > { %p1438_p0 = scmp.ne.s32.totalorder %s220_s8, %s1437_s18  ;;  %p1446_p8 = scmp.lt.s32.totalorder %s1437_s18, %s1437_s18 }
  0x1b   : > { %p1440_p1 = pnand %p1438_p0, %p1402_p6  ;;  %p1447_p2 = por %p1446_p8, %p1445_p7 }
  0x1d   : > { %p1441_p4 = pneg %p1440_p1 }
  0x1f   : > { %p1448_p3 = pnand %p1447_p2, %p1441_p4 }
  0x21   : > { %1451 = shalt.err (!%p1448_p3)
}
  0x22   : > { %1285 = dma.hbm_to_vmem [thread:$0]  (!%p1591_p5), %s1879_s2, 64, %s220_s8, [#allocation3]  }
  0x23   : > { %s1463_s21 = scalar_lea.vmem %s1595_s10, 16  ;;  %s1470_s22 = scalar_lea.vmem %s1595_s10, 32 }
  0x24   : > { %p1464_p9 = scmp.ne.s32.totalorder %s1595_s10, %s1463_s21  ;;  %p1471_p2 = scmp.lt.s32.totalorder %s1595_s10, %s1595_s10 }
  0x25   : > { %p1472_p3 = scmp.lt.s32.totalorder %s1470_s22, %s1463_s21 }
  0x26   : > { %p1466_p10 = pnand %p1464_p9, %p1402_p6 }
  0x27   : > { %p1473_p12 = por %p1472_p3, %p1471_p2 }
  0x28   : > { %p1467_p11 = pneg %p1466_p10 }
  0x2a   : > { %p1474_p13 = pnand %p1473_p12, %p1467_p11 }
  0x2c   : > { %1477 = shalt.err (!%p1474_p13)
}
  0x2d   : > { %1291 = dma.hbm_to_vmem [thread:$0]  (!%p1591_p5), %s1882_s5, 16, %s1595_s10, [#allocation5]  }
  0x2e   : > { %s1489_s28 = scalar_lea.vmem %s1597_s13, 16  ;;  %s1496_s30 = scalar_lea.vmem %s1597_s13, 32 }
  0x2f   : > { %p1490_p0 = scmp.ne.s32.totalorder %s1597_s13, %s1489_s28  ;;  %p1497_p7 = scmp.lt.s32.totalorder %s1597_s13, %s1597_s13 }
  0x30   : > { %p1498_p8 = scmp.lt.s32.totalorder %s1496_s30, %s1489_s28 }
  0x31   : > { %p1492_p1 = pnand %p1490_p0, %p1402_p6 }
  0x32   : > { %p1499_p9 = por %p1498_p8, %p1497_p7 }
  0x33   : > { %p1493_p4 = pneg %p1492_p1 }
  0x35   : > { %p1500_p10 = pnand %p1499_p9, %p1493_p4 }
  0x37   : > { %1503 = shalt.err (!%p1500_p10)
}
  0x38   : > { %1294 = dma.hbm_to_vmem [thread:$0]  (!%p1591_p5), %s1883_s6, 16, %s1597_s13, [#allocation8]  }
  0x39   : > { %p1891_p11 = scmp.ne.s32.totalorder %s1889_s29, 0 }
  0x3a   : > { %p1892_p6 = scmp.ne.s32.totalorder (!%p1891_p11), %s1888_s26, 0 }
  0x3b   : > { %277 = sbr.rel (%p1891_p11) target bundleno = 823 (0x337), region = 48 }
  0x40   : > { %1509 = dma.done.wait (%p1892_p6), [#allocation3], 64  }
  0x41   : > { %1511 = vsyncadd (%p1892_p6), [#allocation3], 4294967232 }
  0x42   : > { %1513 = dma.done.wait (%p1892_p6), [#allocation5], 32  }
  0x43   : > { %1515 = vsyncadd (%p1892_p6), [#allocation5], 4294967264 }
  0x44   : > { %1517 = dma.done.wait (%p1892_p6), [#allocation8], 16  }
  0x45   : > { %1519 = vsyncadd (%p1892_p6), [#allocation8], 4294967280  ;;  %v1528_v0 = vmov 0   ;;  %v1316_v1 = vld [vmem:[%s1878_s1 + $0xe4] ss:$16 sps:$4 sm:$0xff]   ;;  %s1149_s16 = sshll.u32 %s1136_s25, 1 }
  0x46   : > { %583 = vmatprep.mubr.bf16.mxu0 %v1528_v0  ;;  %626 = vmatprep.mubr.bf16.mxu1 %v1528_v0  ;;  %v1318_v2 = vld [vmem:[%s1878_s1 + $0xec] ss:$16 sps:$4 sm:$0xff]   ;;  %v1320_v3 = vld [vmem:[%s1878_s1 + $0xe0] ss:$16 sps:$4 sm:$0xff]   ;;  %v1321_v4 = vld [vmem:[%s1878_s1 + $0xe8] ss:$16 sps:$4 sm:$0xff]  }
  0x47   : > { %551 = vmatprep.subr.bf16.mxu0 %v1316_v1  ;;  %594 = vmatprep.subr.bf16.mxu1 %v1318_v2  ;;  %v1322_v5 = vld [vmem:[%s1878_s1 + $0xc4] ss:$16 sps:$4 sm:$0xff]   ;;  %v1324_v6 = vld [vmem:[%s1878_s1 + $0xcc] ss:$16 sps:$4 sm:$0xff]   ;;  %v1326_v7 = vld [vmem:[%s1878_s1 + $0xc0] ss:$16 sps:$4 sm:$0xff]  }
  0x48   : > { %552 = vmatpush1.bf16.msra.mxu0 %v1320_v3  ;;  %595 = vmatpush1.bf16.msra.mxu1 %v1321_v4  ;;  %v1327_v8 = vld [vmem:[%s1878_s1 + $0xc8] ss:$16 sps:$4 sm:$0xff]   ;;  %v1328_v9 = vld [vmem:[%s1878_s1 + $0xa4] ss:$16 sps:$4 sm:$0xff]   ;;  %v1330_v10 = vld [vmem:[%s1878_s1 + $0xac] ss:$16 sps:$4 sm:$0xff]   ;;  %v371_v4 = vlaneseq }
  0x49   : > { %553 = vmatprep.subr.bf16.mxu0 %v1322_v5  ;;  %596 = vmatprep.subr.bf16.mxu1 %v1324_v6  ;;  %v1332_v11 = vld [vmem:[%s1878_s1 + $0xa0] ss:$16 sps:$4 sm:$0xff]   ;;  %v1333_v12 = vld [vmem:[%s1878_s1 + $0xa8] ss:$16 sps:$4 sm:$0xff]   ;;  %v1334_v13 = vld [vmem:[%s1878_s1 + $0x84] ss:$16 sps:$4 sm:$0xff]  }
  0x4a   : > { %v1336_v14 = vld [vmem:[%s1878_s1 + $0x8c] ss:$16 sps:$4 sm:$0xff]   ;;  %v1338_v15 = vld [vmem:[%s1878_s1 + $0x80] ss:$16 sps:$4 sm:$0xff]   ;;  %v1339_v16 = vld [vmem:[%s1878_s1 + $0x88] ss:$16 sps:$4 sm:$0xff]  }
  0x4b   : > { %v1340_v17 = vld [vmem:[%s1878_s1 + $0x64] ss:$16 sps:$4 sm:$0xff]   ;;  %p322_p5 = scmp.lt.s32.totalorder %s1149_s16, 3  ;;  %v1342_v18 = vld [vmem:[%s1878_s1 + $0x6c] ss:$16 sps:$4 sm:$0xff]   ;;  %v372_v5 = vshrl.u32 %v371_v4, 7 }
  0x4c   : > { %554 = vmatpush1.bf16.msra.mxu0 %v1326_v7  ;;  %597 = vmatpush1.bf16.msra.mxu1 %v1327_v8  ;;  %v1344_v19 = vld [vmem:[%s1878_s1 + $0x60] ss:$16 sps:$4 sm:$0xff]   ;;  %v1345_v20 = vld [vmem:[%s1878_s1 + $0x68] ss:$16 sps:$4 sm:$0xff]   ;;  %v1346_v21 = vld [vmem:[%s1878_s1 + $0x44] ss:$16 sps:$4 sm:$0xff]  }
  0x4d   : > { %555 = vmatprep.subr.bf16.mxu0 %v1328_v9  ;;  %598 = vmatprep.subr.bf16.mxu1 %v1330_v10  ;;  %s1894_s16 = smov (!%p322_p5, %s1149_s16), 3  ;;  %v1348_v22 = vld [vmem:[%s1878_s1 + $0x4c] ss:$16 sps:$4 sm:$0xff]   ;;  %v1350_v23 = vld [vmem:[%s1878_s1 + $0x40] ss:$16 sps:$4 sm:$0xff]   ;;  %v377_v6 = vsub.s32 1, %v372_v5 }
  0x4e   : > { %v1351_v24 = vld [vmem:[%s1878_s1 + $0x48] ss:$16 sps:$4 sm:$0xff]   ;;  %s1150_s15 = sshll.u32 %s1894_s16, 3  ;;  %v1352_v25 = vld [vmem:[%s1878_s1 + $0x24] ss:$16 sps:$4 sm:$0xff]   ;;  %v385_v7 = vsub.s32 3, %v372_v5 }
  0x4f   : > { %v1354_v26 = vld [vmem:[%s1878_s1 + $0x2c] ss:$16 sps:$4 sm:$0xff]   ;;  %v1356_v27 = vld [vmem:[%s1878_s1 + $0x20] ss:$16 sps:$4 sm:$0xff]   ;;  %v1357_v28 = vld [vmem:[%s1878_s1 + $0x28] ss:$16 sps:$4 sm:$0xff]   ;;  %s325_s28 = scalar_lea.vmem %s1877_s0, %s1150_s15  ;;  %s331_s21 = scalar_lea.vmem %s1884_s7, %s1150_s15 }
  0x50   : > { %556 = vmatpush1.bf16.msra.mxu0 %v1332_v11  ;;  %599 = vmatpush1.bf16.msra.mxu1 %v1333_v12  ;;  %v1358_v29 = vld [vmem:[%s1878_s1 + $0x4] ss:$16 sps:$4 sm:$0xff]   ;;  %v1360_v30 = vld [vmem:[%s1878_s1 + $0xc] ss:$16 sps:$4 sm:$0xff]   ;;  %v1362_v31 = vld [vmem:[%s1878_s1] ss:$16 sps:$4 sm:$0xff]  }
  0x51   : > { %557 = vmatprep.subr.bf16.mxu0 %v1334_v13  ;;  %600 = vmatprep.subr.bf16.mxu1 %v1336_v14  ;;  %v1363_v32 = vld [vmem:[%s1878_s1 + $0x8] ss:$16 sps:$4 sm:$0xff]   ;;  %v1765_v33 = vld [vmem:[%s325_s28] sm:$0xff]  ;;  %v1368_v40 = vld [vmem:[%s1880_s3 + $0x70] sm:$0xff]   ;;  %v373_v8 = vsub.s32 0, %v372_v5  ;;  %v381_v9 = vsub.s32 2, %v372_v5 }
  0x52   : > { %v1767_v34 = vld [vmem:[%s325_s28 + $0x8] sm:$0xff]  ;;  %v1364_v35 = vld [vmem:[%s1880_s3 + $0x78] sm:$0xff]   ;;  %v1369_v41 = vld [vmem:[%s1880_s3 + $0xf0] sm:$0xff]  }
  0x53   : > { %v1365_v36 = vld [vmem:[%s1880_s3 + $0xf8] sm:$0xff]   ;;  %v336_v38 = vpack.c.bf16 %v1767_v34, %v1765_v33  ;;  %v1370_v42 = vld [vmem:[%s1880_s3 + $0x30] sm:$0xff]   ;;  %v1372_v44 = vld [vmem:[%s1880_s3 + $0x68] sm:$0xff]  }
  0x54   : > { %558 = vmatpush1.bf16.msra.mxu0 %v1338_v15  ;;  %601 = vmatpush1.bf16.msra.mxu1 %v1339_v16  ;;  %v1366_v37 = vld [vmem:[%s1880_s3 + $0x38] sm:$0xff]   ;;  %v1371_v43 = vld [vmem:[%s1880_s3 + $0xb0] sm:$0xff]   ;;  %v1373_v45 = vld [vmem:[%s1880_s3 + $0xe8] sm:$0xff]  }
  0x55   : > { %559 = vmatprep.subr.bf16.mxu0 %v1340_v17  ;;  %602 = vmatprep.subr.bf16.mxu1 %v1342_v18  ;;  %v1367_v39 = vld [vmem:[%s1880_s3 + $0xb8] sm:$0xff]   ;;  %v1374_v46 = vld [vmem:[%s1880_s3 + $0x28] sm:$0xff]   ;;  %v1376_v48 = vld [vmem:[%s1880_s3 + $0x60] sm:$0xff]  }
  0x56   : > { %v1375_v47 = vld [vmem:[%s1880_s3 + $0xa8] sm:$0xff]   ;;  %v1377_v49 = vld [vmem:[%s1880_s3 + $0xe0] sm:$0xff]   ;;  %v1380_v52 = vld [vmem:[%s1880_s3 + $0x58] sm:$0xff]  }
  0x57   : > { %v1378_v50 = vld [vmem:[%s1880_s3 + $0x20] sm:$0xff]   ;;  %v1381_v53 = vld [vmem:[%s1880_s3 + $0xd8] sm:$0xff]   ;;  %v1384_v56 = vld [vmem:[%s1880_s3 + $0x50] sm:$0xff]  }
  0x58   : > { %560 = vmatpush1.bf16.msra.mxu0 %v1344_v19  ;;  %603 = vmatpush1.bf16.msra.mxu1 %v1345_v20  ;;  %v1379_v51 = vld [vmem:[%s1880_s3 + $0xa0] sm:$0xff]   ;;  %v1382_v54 = vld [vmem:[%s1880_s3 + $0x18] sm:$0xff]   ;;  %v1385_v57 = vld [vmem:[%s1880_s3 + $0xd0] sm:$0xff]  }
  0x59   : > { %561 = vmatprep.subr.bf16.mxu0 %v1346_v21  ;;  %604 = vmatprep.subr.bf16.mxu1 %v1348_v22  ;;  %v1383_v55 = vld [vmem:[%s1880_s3 + $0x98] sm:$0xff]   ;;  %v1386_v58 = vld [vmem:[%s1880_s3 + $0x10] sm:$0xff]   ;;  %v1388_v60 = vld [vmem:[%s1880_s3 + $0x48] sm:$0xff]  }
  0x5a   : > { %v1387_v59 = vld [vmem:[%s1880_s3 + $0x90] sm:$0xff]   ;;  %v1389_v61 = vld [vmem:[%s1880_s3 + $0xc8] sm:$0xff]   ;;  %v1392_v0 = vld [vmem:[%s1880_s3 + $0x40] sm:$0xff]  }
  0x5b   : > { %v1390_v62 = vld [vmem:[%s1880_s3 + $0x8] sm:$0xff]   ;;  %v1393_v1 = vld [vmem:[%s1880_s3 + $0xc0] sm:$0xff]  }
  0x5c   : > { %562 = vmatpush1.bf16.msra.mxu0 %v1350_v23  ;;  %605 = vmatpush1.bf16.msra.mxu1 %v1351_v24  ;;  %v1391_v63 = vld [vmem:[%s1880_s3 + $0x88] sm:$0xff]   ;;  %v1394_v2 = vld [vmem:[%s1880_s3] sm:$0xff]  }
  0x5d   : > { %563 = vmatprep.subr.bf16.mxu0 %v1352_v25  ;;  %606 = vmatprep.subr.bf16.mxu1 %v1354_v26  ;;  %v1395_v3 = vld [vmem:[%s1880_s3 + $0x80] sm:$0xff]  }
  0x5e   : > { %v369_v10 = vld [vmem:[#allocation2] sm:$0xf] }
  0x5f   : > { %v378_v13 = vrot.slane %v369_v10, %v377_v6  ;;  %v386_v14 = vrot.slane %v369_v10, %v385_v7  ;;  %v374_v15 = vrot.slane %v369_v10, %v373_v8  ;;  %v382_v16 = vrot.slane %v369_v10, %v381_v9 }
  0x60   : > { %564 = vmatpush1.bf16.msra.mxu0 %v1356_v27  ;;  %607 = vmatpush1.bf16.msra.mxu1 %v1357_v28 }
  0x61   : > { %565 = vmatprep.subr.bf16.mxu0 %v1358_v29  ;;  %608 = vmatprep.subr.bf16.mxu1 %v1360_v30 }
  0x64   : > { %566 = vmatpush1.bf16.msra.mxu0 %v1362_v31  ;;  %609 = vmatpush1.bf16.msra.mxu1 %v1363_v32 }
  0x65   : > { %1222 = vmatprep.subr.bf16.mxu0 %v1364_v35  ;;  %1244 = vmatprep.subr.bf16.mxu1 %v1365_v36 }
  0x67   : > { %584 = vmatmul.mubr.bf16.vlgmr.msra.gmra.mxu0 %v336_v38  ;;  %627 = vmatmul.mubr.bf16.vlgmr.msra.gmra.mxu1 %v336_v38 }
  0x68   : > { %1223 = vmatpush3.bf16.msra.mxu0 %v1366_v37  ;;  %1245 = vmatpush3.bf16.msra.mxu1 %v1367_v39 }
  0x69   : > { %1224 = vmatprep.subr.bf16.mxu0 %v1368_v40  ;;  %1246 = vmatprep.subr.bf16.mxu1 %v1369_v41 }
  0x6c   : > { %1225 = vmatpush3.bf16.msra.mxu0 %v1370_v42  ;;  %1247 = vmatpush3.bf16.msra.mxu1 %v1371_v43 }
  0x6d   : > { %1226 = vmatprep.subr.bf16.mxu0 %v1372_v44  ;;  %1248 = vmatprep.subr.bf16.mxu1 %v1373_v45 }
  0x70   : > { %1227 = vmatpush3.bf16.msra.mxu0 %v1374_v46  ;;  %1249 = vmatpush3.bf16.msra.mxu1 %v1375_v47  ;;  %v1185_v47 = vld [vmem:[#allocation4] ss:$0 sm:$0xff] }
  0x71   : > { %1228 = vmatprep.subr.bf16.mxu0 %v1376_v48  ;;  %1250 = vmatprep.subr.bf16.mxu1 %v1377_v49 }
  0x74   : > { %1229 = vmatpush3.bf16.msra.mxu0 %v1378_v50  ;;  %1251 = vmatpush3.bf16.msra.mxu1 %v1379_v51 }
  0x75   : > { %1230 = vmatprep.subr.bf16.mxu0 %v1380_v52  ;;  %1252 = vmatprep.subr.bf16.mxu1 %v1381_v53 }
  0x78   : > { %1231 = vmatpush3.bf16.msra.mxu0 %v1382_v54  ;;  %1253 = vmatpush3.bf16.msra.mxu1 %v1383_v55 }
  0x79   : > { %1232 = vmatprep.subr.bf16.mxu0 %v1384_v56  ;;  %1254 = vmatprep.subr.bf16.mxu1 %v1385_v57 }
  0x7c   : > { %1233 = vmatpush3.bf16.msra.mxu0 %v1386_v58  ;;  %1255 = vmatpush3.bf16.msra.mxu1 %v1387_v59 }
  0x7d   : > { %1234 = vmatprep.subr.bf16.mxu0 %v1388_v60  ;;  %1256 = vmatprep.subr.bf16.mxu1 %v1389_v61 }
  0x80   : > { %1235 = vmatpush3.bf16.msra.mxu0 %v1390_v62  ;;  %1257 = vmatpush3.bf16.msra.mxu1 %v1391_v63 }
  0x81   : > { %1236 = vmatprep.subr.bf16.mxu0 %v1392_v0  ;;  %1258 = vmatprep.subr.bf16.mxu1 %v1393_v1 }
  0x84   : > { %1237 = vmatpush3.bf16.msra.mxu0 %v1394_v2  ;;  %1259 = vmatpush3.bf16.msra.mxu1 %v1395_v3 }
 0x127   : > { %v585_v11 = vpop.f32.mrf.mxu0  ;;  %v628_v12 = vpop.f32.mrf.mxu1 }
 0x128   : > { %v586_v25 = vadd.f32 %v585_v11, %v374_v15  ;;  %v629_v26 = vadd.f32 %v628_v12, %v382_v16 }
 0x129   : > { %v587_v17 = vpop.f32.mrf.mxu0  ;;  %v630_v18 = vpop.f32.mrf.mxu1 }
 0x12a   : > { %v588_v21 = vadd.f32 %v587_v17, %v378_v13  ;;  %v631_v22 = vadd.f32 %v630_v18, %v386_v14  ;;  %v637_v39 = vmax.f32 %v586_v25, 0.0  ;;  %v639_v40 = vmax.f32 %v629_v26, 0.0 }
 0x12b   : > { %v589_v19 = vpop.f32.mrf.mxu0  ;;  %v632_v20 = vpop.f32.mrf.mxu1 }
 0x12c   : > { %v590_v23 = vadd.f32 %v589_v19, %v374_v15  ;;  %v633_v24 = vadd.f32 %v632_v20, %v382_v16  ;;  %v638_v35 = vmax.f32 %v588_v21, 0.0  ;;  %v640_v36 = vmax.f32 %v631_v22, 0.0  ;;  %v1219_v15 = vld [vmem:[#allocation7] ss:$0 sm:$0xff] }
 0x12d   : > { %v591_v27 = vpop.f32.mrf.mxu0  ;;  %v634_v28 = vpop.f32.mrf.mxu1 }
 0x12e   : > { %v592_v29 = vadd.f32 %v591_v27, %v378_v13  ;;  %v635_v30 = vadd.f32 %v634_v28, %v386_v14  ;;  %v641_v31 = vmax.f32 %v590_v23, 0.0  ;;  %v643_v32 = vmax.f32 %v633_v24, 0.0  ;;  %v1218_v13 = vld [vmem:[#allocation6] ss:$0 sm:$0xff] }
 0x130   : > { %v642_v37 = vmax.f32 %v592_v29, 0.0  ;;  %v644_v38 = vmax.f32 %v635_v30, 0.0  ;;  %v645_v43 = vpack.c.bf16 %v641_v31, %v637_v39  ;;  %v647_v44 = vpack.c.bf16 %v643_v32, %v639_v40 }
 0x132   : > { %v646_v41 = vpack.c.bf16 %v642_v37, %v638_v35  ;;  %v648_v42 = vpack.c.bf16 %v644_v38, %v640_v36 }
 0x134   : > { %944 = vmatprep.mubr.bf16.mxu0 %v646_v41  ;;  %985 = vmatprep.mubr.bf16.mxu1 %v648_v42 }
 0x135   : > { %945 = vmatmul.mubr.bf16.vlgmr.msra.gmra.mxu0 %v645_v43  ;;  %986 = vmatmul.mubr.bf16.vlgmr.msra.gmra.mxu1 %v647_v44 }
 0x1f5   : > { %v1238_v45 = vpop.f32.mrf.mxu0  ;;  %v1260_v46 = vpop.f32.mrf.mxu1 }
 0x1f7   : > { %v1239_v48 = vpop.f32.mrf.mxu0  ;;  %v1261_v49 = vpop.f32.mrf.mxu1 }
 0x1f8   : > { %v1240_v50 = vadd.f32 %v1239_v48, %v1238_v45  ;;  %v1262_v54 = vadd.f32 %v1261_v49, %v1260_v46 }
 0x1f9   : > { %v1241_v51 = vpop.f32.mrf.mxu0  ;;  %v1263_v52 = vpop.f32.mrf.mxu1 }
 0x1fa   : > { %v947_v53 = vadd.f32 %v1240_v50, %v1185_v47 }
 0x1fb   : > { %v1242_v55 = vpop.f32.mrf.mxu0  ;;  %v1264_v56 = vpop.f32.mrf.mxu1 }
 0x1fc   : > { %v988_v57 = vadd.f32 %v1262_v54, %v947_v53  ;;  %v1243_v58 = vadd.f32 %v1242_v55, %v1241_v51  ;;  %v1265_v60 = vadd.f32 %v1264_v56, %v1263_v52 }
 0x1fe   : > { %v950_v59 = vadd.f32 %v1243_v58, %v1185_v47  ;;  %v994_v61 = vadd.f32 %v988_v57, %v1765_v33 }
 0x200   : > { %v991_v62 = vadd.f32 %v1265_v60, %v950_v59  ;;  %998 = vadd.xlane.f32.xlu0 %v994_v61 }
 0x202   : > { %v995_v63 = vadd.f32 %v991_v62, %v1767_v34 }
 0x204   : > { %1000 = vadd.xlane.f32.xlu0 %v995_v63 }
 0x289   : > { %v999_v0 = vpop.xlane.xlu0 %998 }
 0x28a   : > { %v1003_v1 = vmul.f32 0.0078125, %v999_v0 }
 0x28c   : > { %v1005_v2 = vsub.f32 %v994_v61, %v1003_v1 }
 0x28d   : > { %v1001_v3 = vpop.xlane.xlu0 %1000 }
 0x28e   : > { %v1004_v4 = vmul.f32 0.0078125, %v1001_v3  ;;  %v1007_v5 = vmul.f32 %v1005_v2, %v1005_v2 }
 0x290   : > { %v1006_v6 = vsub.f32 %v995_v63, %v1004_v4  ;;  %1009 = vadd.xlane.f32.xlu1 %v1007_v5 }
 0x292   : > { %v1008_v7 = vmul.f32 %v1006_v6, %v1006_v6 }
 0x294   : > { %1011 = vadd.xlane.f32.xlu1 %v1008_v7 }
 0x319   : > { %v1010_v8 = vpop.xlane.xlu1 %1009 }
 0x31a   : > { %v1013_v9 = vmul.f32 0.0078125, %v1010_v8 }
 0x31c   : > { %v1015_v10 = vadd.f32 1e-05, %v1013_v9 }
 0x31d   : > { %v1012_v33 = vpop.xlane.xlu1 %1011 }
 0x31e   : > { %1396 = vrsqrt.f32 %v1015_v10  ;;  %v1014_v11 = vmul.f32 0.0078125, %v1012_v33 }
 0x320   : > { %v1016_v12 = vadd.f32 1e-05, %v1014_v11 }
 0x322   : > { %1398 = vrsqrt.f32 %v1016_v12 }
 0x32b   : > { %v1397_v34 = vpop.eup %1396 }
 0x32c   : > { %v1019_v14 = vmul.f32 %v1397_v34, %v1005_v2 }
 0x32e   : > { %v1027_v16 = vmul.f32 %v1218_v13, %v1019_v14 }
 0x32f   : > { %v1399_v17 = vpop.eup %1398 }
 0x330   : > { %v1035_v18 = vadd.f32 %v1219_v15, %v1027_v16  ;;  %v1020_v19 = vmul.f32 %v1399_v17, %v1006_v6 }
 0x332   : > { %1037 = vst [vmem:[%s331_s21] sm:$0xff] %v1035_v18  ;;  %v1028_v20 = vmul.f32 %v1218_v13, %v1020_v19 }
 0x334   : > { %v1036_v21 = vadd.f32 %v1219_v15, %v1028_v20 }
 0x336   : > { %1038 = vst [vmem:[%s331_s21 + $0x8] sm:$0xff] %v1036_v21 }
 0x337 PF: > { %s20_s24 = sadd.s32 1, %s1522_s24  }
 0x338   : > { %p17_p2 = scmp.ge.s32.totalorder %s20_s24, 4  }
 0x33a   :  { %19 = sbr.rel (!%p17_p2) target bundleno = 3 (0x3), region = 95 }
 0x33f   :  { %1061 = vsyncpa [#allocation3], 1 }
 0x340   :  { %1063 = vsyncpa [#allocation3 + $0x1], 1 }
 0x341   :  { %1064 = vsyncpa [#allocation5], 1 }
 0x342   :  { %1065 = vsyncpa [#allocation8], 1 }

// kernel: tds_transformer.12
= control target key start
LH: loop header
LB: loop body
LE: loop exit
PB: predicated region body
PF: predicated region fallthrough
CT: control target
= control target key end

     0   :  { %s635_s21 = smov 0   ;;  %s696_s0 = inlined_call_operand.vmem [shape: f32[32,128], index: 0, kind: input, shape index: {}, may-alias: {0,6}]   ;;  %s697_s1 = inlined_call_operand.vmem [shape: bf16[32,128], index: 1, kind: input, shape index: {}]   ;;  %s698_s2 = inlined_call_operand.vmem [shape: bf16[128,128], index: 2, kind: input, shape index: {}]   ;;  %s699_s3 = inlined_call_operand.vmem [shape: f32[1,128], index: 3, kind: input, shape index: {}]   ;;  %s700_s4 = inlined_call_operand.vmem [shape: f32[1,128], index: 4, kind: input, shape index: {}]   ;;  %s701_s5 = inlined_call_operand.vmem [shape: f32[1,128], index: 5, kind: input, shape index: {}]   ;;  %s702_s6 = inlined_call_operand.vmem [shape: f32[32,128], index: 6, kind: output, shape index: {}, may-alias: {0,6}]  }
   0x1 LB: > { %s513_s22 = sadd.s32 4294967295, %s596_s21   ;;  %p517_p0 = scmp.ge.s32.totalorder %s596_s21, 1  ;;  %s596_s21 = sphi %s635_s21, %s16_s21  }
   0x2   : > { %p224_p1 = scmp.lt.s32.totalorder %s596_s21, 3 }
   0x4   : > { %p225_p2 = pnand %p517_p0, %p224_p1 }
   0x5   : > { %s518_s27 = sshll.u32 (!%p225_p2), %s513_s22, 1 }
   0x6   : > { %228 = sbr.rel (%p225_p2) target bundleno = 552 (0x228), region = 44  ;;  %p260_p3 = scmp.lt.s32.totalorder (!%p225_p2), %s518_s27, 3 }
   0xb   : > { %v577_v0 = vld [vmem:[%s698_s2 + $0x38] sm:$0xff]   ;;  %v598_v1 = vmov 0.0   ;;  %v578_v2 = vld [vmem:[%s698_s2 + $0x30] sm:$0xff]   ;;  %vm599_vm0 = vmmov 0   ;;  %s704_s27 = smov (!%p260_p3, %s518_s27), 3  ;;  %v579_v3 = vld [vmem:[%s698_s2 + $0x28] sm:$0xff]  }
   0xc   : > { %547 = vmatprep.subr.bf16.mxu0 %v598_v1  ;;  %563 = vmatprep.mubr.msk.bf16.mxu0 %vm599_vm0, %v598_v1  ;;  %s521_s30 = sshll.u32 %s704_s27, 2  ;;  %v580_v4 = vld [vmem:[%s698_s2 + $0x20] sm:$0xff]   ;;  %v581_v5 = vld [vmem:[%s698_s2 + $0x18] sm:$0xff]   ;;  %v582_v6 = vld [vmem:[%s698_s2 + $0x10] sm:$0xff]   ;;  %s519_s20 = sshll.u32 %s704_s27, 3 }
   0xd   : > { %548 = vmatpush3.bf16.msra.mxu0 %v577_v0  ;;  %s269_s9 = scalar_lea.vmem %s697_s1, %s521_s30  ;;  %v583_v7 = vld [vmem:[%s698_s2 + $0x8] sm:$0xff]   ;;  %v584_v8 = vld [vmem:[%s698_s2] sm:$0xff]   ;;  %s263_s24 = scalar_lea.vmem %s696_s0, %s519_s20 }
   0xe   : > { %549 = vmatprep.subr.bf16.mxu0 %v598_v1  ;;  %v585_v9 = vld [vmem:[%s269_s9] sm:$0xff]   ;;  %v399_v17 = vld [vmem:[%s263_s24 + $0x8] sm:$0xff]  ;;  %s275_s10 = scalar_lea.vmem %s702_s6, %s519_s20 }
   0xf   : > { %v524_v10 = vld [vmem:[%s699_s3] ss:$0 sm:$0xff] }
  0x10   : > { %v398_v12 = vld [vmem:[%s263_s24] sm:$0xff] }
  0x11   : > { %550 = vmatpush3.bf16.msra.mxu0 %v578_v2  ;;  %v534_v36 = vld [vmem:[%s700_s4] ss:$0 sm:$0xff] }
  0x12   : > { %551 = vmatprep.subr.bf16.mxu0 %v598_v1  ;;  %v535_v38 = vld [vmem:[%s701_s5] ss:$0 sm:$0xff] }
  0x15   : > { %552 = vmatpush3.bf16.msra.mxu0 %v579_v3 }
  0x16   : > { %553 = vmatprep.subr.bf16.mxu0 %v598_v1 }
  0x19   : > { %554 = vmatpush3.bf16.msra.mxu0 %v580_v4 }
  0x1a   : > { %555 = vmatprep.subr.bf16.mxu0 %v598_v1 }
  0x1d   : > { %556 = vmatpush3.bf16.msra.mxu0 %v581_v5 }
  0x1e   : > { %557 = vmatprep.subr.bf16.mxu0 %v598_v1 }
  0x21   : > { %558 = vmatpush3.bf16.msra.mxu0 %v582_v6 }
  0x22   : > { %559 = vmatprep.subr.bf16.mxu0 %v598_v1 }
  0x25   : > { %560 = vmatpush3.bf16.msra.mxu0 %v583_v7 }
  0x26   : > { %561 = vmatprep.subr.bf16.mxu0 %v598_v1 }
  0x29   : > { %562 = vmatpush3.bf16.msra.mxu0 %v584_v8 }
  0x2c   : > { %564 = vmatmul.mubr.bf16.vlgmr.msra.gmra.mxu0 %v585_v9 }
  0xec   : > { %v391_v11 = vpop.f32.mrf.mxu0 }
  0xed   : > { %v392_v13 = vadd.f32 %v524_v10, %v391_v11 }
  0xee   : > { %v565_v14 = vpop.f32.mrf.mxu0 }
  0xef   : > { %v400_v15 = vadd.f32 %v398_v12, %v392_v13 }
  0xf0   : > { %v394_v16 = vpop.f32.mrf.mxu0 }
  0xf1   : > { %v395_v18 = vadd.f32 %v524_v10, %v394_v16  ;;  %404 = vadd.xlane.f32.xlu0 %v400_v15 }
  0xf2   : > { %v566_v19 = vpop.f32.mrf.mxu0 }
  0xf3   : > { %v401_v20 = vadd.f32 %v399_v17, %v395_v18 }
  0xf5   : > { %406 = vadd.xlane.f32.xlu0 %v401_v20 }
 0x17a   : > { %v405_v21 = vpop.xlane.xlu0 %404 }
 0x17b   : > { %v409_v22 = vmul.f32 0.0078125, %v405_v21 }
 0x17d   : > { %v411_v23 = vsub.f32 %v400_v15, %v409_v22 }
 0x17e   : > { %v407_v24 = vpop.xlane.xlu0 %406 }
 0x17f   : > { %v410_v25 = vmul.f32 0.0078125, %v407_v24  ;;  %v413_v26 = vmul.f32 %v411_v23, %v411_v23 }
 0x181   : > { %v412_v27 = vsub.f32 %v401_v20, %v410_v25  ;;  %415 = vadd.xlane.f32.xlu1 %v413_v26 }
 0x183   : > { %v414_v28 = vmul.f32 %v412_v27, %v412_v27 }
 0x185   : > { %417 = vadd.xlane.f32.xlu1 %v414_v28 }
 0x20a   : > { %v416_v29 = vpop.xlane.xlu1 %415 }
 0x20b   : > { %v419_v30 = vmul.f32 0.0078125, %v416_v29 }
 0x20d   : > { %v421_v31 = vadd.f32 1e-05, %v419_v30 }
 0x20e   : > { %v418_v32 = vpop.xlane.xlu1 %417 }
 0x20f   : > { %586 = vrsqrt.f32 %v421_v31  ;;  %v420_v33 = vmul.f32 0.0078125, %v418_v32 }
 0x211   : > { %v422_v34 = vadd.f32 1e-05, %v420_v33 }
 0x213   : > { %588 = vrsqrt.f32 %v422_v34 }
 0x21c   : > { %v587_v35 = vpop.eup %586 }
 0x21d   : > { %v425_v37 = vmul.f32 %v587_v35, %v411_v23 }
 0x21f   : > { %v433_v39 = vmul.f32 %v534_v36, %v425_v37 }
 0x220   : > { %v589_v40 = vpop.eup %588 }
 0x221   : > { %v441_v41 = vadd.f32 %v535_v38, %v433_v39  ;;  %v426_v42 = vmul.f32 %v589_v40, %v412_v27 }
 0x223   : > { %443 = vst [vmem:[%s275_s10] sm:$0xff] %v441_v41  ;;  %v434_v43 = vmul.f32 %v534_v36, %v426_v42 }
 0x225   : > { %v442_v44 = vadd.f32 %v535_v38, %v434_v43 }
 0x227   : > { %444 = vst [vmem:[%s275_s10 + $0x8] sm:$0xff] %v442_v44 }
 0x228 PF: > { %s16_s21 = sadd.s32 1, %s596_s21  }
 0x229   : > { %p13_p4 = scmp.ge.s32.totalorder %s16_s21, 4  }
 0x22b   :  { %15 = sbr.rel (!%p13_p4) target bundleno = 1 (0x1), region = 77 }

// kernel: tds_transformer.11
= control target key start
LH: loop header
LB: loop body
LE: loop exit
PB: predicated region body
PF: predicated region fallthrough
CT: control target
= control target key end

     0   :  { %s4312_s12 = smov 0   ;;  %s5341_s0 = inlined_call_operand.vmem [shape: f32[2,16,128], index: 0, kind: input, shape index: {}]   ;;  %s5342_s1 = inlined_call_operand.vmem [shape: bf16[128,384], index: 1, kind: input, shape index: {}]   ;;  %s5343_s2 = inlined_call_operand.vmem [shape: f32[1,384], index: 2, kind: input, shape index: {}]   ;;  %s5344_s3 = inlined_call_operand.vmem [shape: bf16[2,16,128], index: 3, kind: output, shape index: {}]  }
   0x1 LB: > { %s3838_s13 = sadd.s32 4294967295, %s4278_s12   ;;  %p3842_p0 = scmp.ge.s32.totalorder %s4278_s12, 1  ;;  %s4278_s12 = sphi %s4312_s12, %s13_s12  }
   0x2   : > { %p137_p1 = scmp.lt.s32.totalorder %s4278_s12, 3 }
   0x4   : > { %p138_p2 = pnand %p3842_p0, %p137_p1 }
   0x5   : > { %p161_p3 = scmp.lt.s32.totalorder (!%p138_p2), %s3838_s13, 1  ;;  %s4283_s18 = smov (!%p138_p2), 112  }
   0x6   : > { %141 = sbr.rel (%p138_p2) target bundleno = 1358 (0x54e), region = 32  ;;  %s4284_s19 = smov (!%p138_p2), 96  }
   0x7   : > { %s4285_s20 = smov (!%p138_p2), 80   ;;  %s4287_s22 = smov (!%p138_p2), 48  }
   0x8   : > { %s4288_s23 = smov (!%p138_p2), 32   ;;  %s4289_s24 = smov (!%p138_p2), 16  }
   0xb   : > { %v4176_v0 = vld [vmem:[%s5342_s1 + $0xac] ss:$12 sps:$4 sm:$0xff]   ;;  %v4178_v1 = vld [vmem:[%s5342_s1 + $0xa8] ss:$12 sps:$4 sm:$0xff]   ;;  %v4280_v2 = vmov 0   ;;  %v4281_v4 = vmov 0.0   ;;  %v209_v29 = vlaneseq }
   0xc   : > { %384 = vmatprep.mubr.bf16.mxu0 %v4280_v2  ;;  %352 = vmatprep.subr.bf16.mxu0 %v4176_v0  ;;  %v4179_v3 = vld [vmem:[%s5342_s1 + $0x94] ss:$12 sps:$4 sm:$0xff]   ;;  %v4181_v5 = vld [vmem:[%s5342_s1 + $0x90] ss:$12 sps:$4 sm:$0xff]   ;;  %vm4282_vm0 = vmmov 0   ;;  %s5346_s13 = smov (!%p161_p3, %s3838_s13), 1 }
   0xd   : > { %4005 = vmatprep.subr.bf16.mxu1 %v4281_v4  ;;  %353 = vmatpush1.bf16.msra.mxu0 %v4178_v1  ;;  %v4182_v6 = vld [vmem:[%s5342_s1 + $0x7c] ss:$12 sps:$4 sm:$0xff]   ;;  %v4184_v7 = vld [vmem:[%s5342_s1 + $0x78] ss:$12 sps:$4 sm:$0xff]   ;;  %v4187_v9 = vld [vmem:[%s5342_s1 + $0x60] ss:$12 sps:$4 sm:$0xff]  }
   0xe   : > { %4021 = vmatprep.mubr.msk.bf16.mxu1 %vm4282_vm0, %v4281_v4  ;;  %354 = vmatprep.subr.bf16.mxu0 %v4179_v3  ;;  %v4185_v8 = vld [vmem:[%s5342_s1 + $0x64] ss:$12 sps:$4 sm:$0xff]   ;;  %v4188_v10 = vld [vmem:[%s5342_s1 + $0x4c] ss:$12 sps:$4 sm:$0xff]   ;;  %v4190_v13 = vld [vmem:[%s5342_s1 + $0x48] ss:$12 sps:$4 sm:$0xff]  }
   0xf   : > { %v4200_v11 = vld [vmem:[%s5342_s1 + $0xb0] ss:$12 sps:$4 sm:$0xff]   ;;  %v4201_v12 = vld [vmem:[%s5342_s1 + $0x98] ss:$12 sps:$4 sm:$0xff]   ;;  %v4191_v14 = vld [vmem:[%s5342_s1 + $0x34] ss:$12 sps:$4 sm:$0xff]  }
  0x10   : > { %4006 = vmatpush3.bf16.msra.mxu1 %v4200_v11  ;;  %v4202_v15 = vld [vmem:[%s5342_s1 + $0x80] ss:$12 sps:$4 sm:$0xff]   ;;  %v4193_v16 = vld [vmem:[%s5342_s1 + $0x30] ss:$12 sps:$4 sm:$0xff]   ;;  %s3955_s21 = sshll.u32 %s5346_s13, 4  ;;  %v4418_v30 = vshrl.u32 %v209_v29, 7 }
  0x11   : > { %355 = vmatpush1.bf16.msra.mxu0 %v4181_v5  ;;  %4007 = vmatprep.subr.bf16.mxu1 %v4281_v4  ;;  %v4194_v17 = vld [vmem:[%s5342_s1 + $0x1c] ss:$12 sps:$4 sm:$0xff]   ;;  %v4196_v19 = vld [vmem:[%s5342_s1 + $0x18] ss:$12 sps:$4 sm:$0xff]   ;;  %s165_s30 = scalar_lea.vmem %s5341_s0, %s3955_s21  ;;  %v4199_v22 = vld [vmem:[%s5342_s1] ss:$12 sps:$4 sm:$0xff]  }
  0x12   : > { %356 = vmatprep.subr.bf16.mxu0 %v4182_v6  ;;  %v4203_v18 = vld [vmem:[%s5342_s1 + $0x68] ss:$12 sps:$4 sm:$0xff]   ;;  %v4197_v20 = vld [vmem:[%s5342_s1 + $0x4] ss:$12 sps:$4 sm:$0xff]   ;;  %v4206_v27 = vld [vmem:[%s5342_s1 + $0x20] ss:$12 sps:$4 sm:$0xff]  }
  0x13   : > { %v4204_v21 = vld [vmem:[%s5342_s1 + $0x50] ss:$12 sps:$4 sm:$0xff]   ;;  %v172_v23 = vld [vmem:[%s165_s30] sm:$0xff]  ;;  %v173_v24 = vld [vmem:[%s165_s30 + $0x8] sm:$0xff]  ;;  %v211_v31 = vsub.s32 0, %v4418_v30  ;;  %v215_v33 = vsub.s32 1, %v4418_v30 }
  0x14   : > { %4008 = vmatpush3.bf16.msra.mxu1 %v4201_v12  ;;  %v174_v25 = vpack.c.bf16 %v173_v24, %v172_v23  ;;  %v4205_v26 = vld [vmem:[%s5342_s1 + $0x38] ss:$12 sps:$4 sm:$0xff]   ;;  %v4207_v28 = vld [vmem:[%s5342_s1 + $0x8] ss:$12 sps:$4 sm:$0xff]   ;;  %v207_v32 = vld [vmem:[%s5343_s2] sm:$0x7] }
  0x15   : > { %357 = vmatpush1.bf16.msra.mxu0 %v4184_v7  ;;  %4009 = vmatprep.subr.bf16.mxu1 %v4281_v4  ;;  %v212_v34 = vrot.slane %v207_v32, %v211_v31  ;;  %v216_v35 = vrot.slane %v207_v32, %v215_v33  ;;  %s4286_s21 = smov 64   ;;  %v219_v44 = vsub.s32 2, %v4418_v30  ;;  %v4290_v53 = vmov 1983009808   ;;  %s3956_s25 = sshll.u32 %s5346_s13, 3 }
  0x16   : > { %358 = vmatprep.subr.bf16.mxu0 %v4185_v8  ;;  %v483_v54 = vunpack.c.l.s4 %v4290_v53  ;;  %v4291_v55 = vmov 1934713408   ;;  %vm2224_vm1 = vcmask 130048   ;;  %vm3755_vm2 = vcmask 261120   ;;  %s170_s28 = scalar_lea.vmem %s5344_s3, %s3956_s25 }
  0x17   : > { %v220_v46 = vrot.slane %v207_v32, %v219_v44  ;;  %v547_v56 = vunpack.c.l.s4 %v4291_v55  ;;  %vm3758_vm3 = vcmask 392192   ;;  %vm3761_vm4 = vcmask 523264  }
  0x18   : > { %4010 = vmatpush3.bf16.msra.mxu1 %v4202_v15  ;;  %v484_v59 = vunpack.c.0.s8 %v483_v54  ;;  %vm3764_vm5 = vcmask 654336   ;;  %vm3767_vm6 = vcmask 785408   ;;  %vm3770_vm7 = vcmask 916480  }
  0x19   : > { %359 = vmatpush1.bf16.msra.mxu0 %v4187_v9  ;;  %4011 = vmatprep.subr.bf16.mxu1 %v4281_v4  ;;  %v548_v60 = vunpack.c.0.s8 %v547_v56 }
  0x1a   : > { %360 = vmatprep.subr.bf16.mxu0 %v4188_v10  ;;  %v4521_v1 = vsub.s32 %v484_v59, %v4418_v30 }
  0x1b   : > { %v4524_v5 = vsub.s32 %v548_v60, %v4418_v30 }
  0x1c   : > { %4012 = vmatpush3.bf16.msra.mxu1 %v4203_v18 }
  0x1d   : > { %361 = vmatpush1.bf16.msra.mxu0 %v4190_v13  ;;  %4013 = vmatprep.subr.bf16.mxu1 %v4281_v4 }
  0x1e   : > { %362 = vmatprep.subr.bf16.mxu0 %v4191_v14 }
  0x20   : > { %4014 = vmatpush3.bf16.msra.mxu1 %v4204_v21 }
  0x21   : > { %363 = vmatpush1.bf16.msra.mxu0 %v4193_v16  ;;  %4015 = vmatprep.subr.bf16.mxu1 %v4281_v4 }
  0x22   : > { %364 = vmatprep.subr.bf16.mxu0 %v4194_v17 }
  0x24   : > { %4016 = vmatpush3.bf16.msra.mxu1 %v4205_v26 }
  0x25   : > { %365 = vmatpush1.bf16.msra.mxu0 %v4196_v19  ;;  %4017 = vmatprep.subr.bf16.mxu1 %v4281_v4 }
  0x26   : > { %366 = vmatprep.subr.bf16.mxu0 %v4197_v20 }
  0x28   : > { %4018 = vmatpush3.bf16.msra.mxu1 %v4206_v27 }
  0x29   : > { %367 = vmatpush1.bf16.msra.mxu0 %v4199_v22  ;;  %4019 = vmatprep.subr.bf16.mxu1 %v4281_v4 }
  0x2a   : > { %4025 = vmatprep.subr.bf16.mxu0 %v4281_v4 }
  0x2c   : > { %385 = vmatmul.mubr.bf16.vlgmr.msra.gmra.mxu0 %v174_v25  ;;  %4020 = vmatpush3.bf16.msra.mxu1 %v4207_v28 }
  0x2d   : > { %4027 = vmatprep.mubr.msk.bf16.mxu0 %vm4282_vm0, %v4281_v4  ;;  %4031 = vmatprep.subr.bf16.mxu1 %v4281_v4 }
  0x2f   : > { %4022 = vmatmul.mubr.bf16.vlgmr.msra.gmra.mxu1 %v174_v25 }
  0x30   : > { %4033 = vmatprep.mubr.msk.bf16.mxu1 %vm4282_vm0, %v4281_v4 }
  0xec   : > { %v386_v36 = vpop.f32.mrf.mxu0 }
  0xed   : > { %v4425_v37 = vadd.f32 %v386_v36, %v212_v34 }
  0xee   : > { %v388_v38 = vpop.f32.mrf.mxu0 }
  0xef   : > { %v4427_v39 = vadd.f32 %v388_v38, %v216_v35  ;;  %438 = vrot.lane.b32.xlu0 %v4425_v37, %s4283_s18  ;;  %v429_v45 = vpop.f32.mrf.mxu1 }
  0xf0   : > { %v390_v40 = vpop.f32.mrf.mxu0  ;;  %v4490_v48 = vadd.f32 %v429_v45, %v220_v46 }
  0xf1   : > { %1040 = vrot.lane.b32.xlu1 %v4427_v39, %s4284_s19  ;;  %v4433_v41 = vadd.f32 %v390_v40, %v212_v34  ;;  %v4023_v47 = vpop.f32.mrf.mxu1 }
  0xf2   : > { %v392_v42 = vpop.f32.mrf.mxu0 }
  0xf3   : > { %444 = vrot.lane.b32.xlu0 %v4425_v37, %s4284_s19  ;;  %v4455_v43 = vadd.f32 %v392_v42, %v216_v35  ;;  %v432_v49 = vpop.f32.mrf.mxu1 }
  0xf4   : > { %v4494_v50 = vadd.f32 %v432_v49, %v220_v46 }
  0xf5   : > { %440 = vrot.lane.b32.xlu1 %v4433_v41, %s4283_s18  ;;  %v4024_v51 = vpop.f32.mrf.mxu1 }
  0xf7   : > { %450 = vrot.lane.b32.xlu0 %v4425_v37, %s4285_s20 }
  0xf9   : > { %446 = vrot.lane.b32.xlu1 %v4433_v41, %s4284_s19 }
  0xfb   : > { %1034 = vrot.lane.b32.xlu0 %v4427_v39, %s4283_s18 }
  0xfd   : > { %452 = vrot.lane.b32.xlu1 %v4433_v41, %s4285_s20 }
  0xff   : > { %1046 = vrot.lane.b32.xlu0 %v4427_v39, %s4285_s20 }
 0x101   : > { %458 = vrot.lane.b32.xlu1 %v4433_v41, %s4286_s21 }
 0x103   : > { %1052 = vrot.lane.b32.xlu0 %v4427_v39, %s4286_s21 }
 0x105   : > { %464 = vrot.lane.b32.xlu1 %v4433_v41, %s4287_s22 }
 0x107   : > { %1058 = vrot.lane.b32.xlu0 %v4427_v39, %s4287_s22 }
 0x109   : > { %1042 = vrot.lane.b32.xlu1 %v4455_v43, %s4284_s19 }
 0x10b   : > { %1036 = vrot.lane.b32.xlu0 %v4455_v43, %s4283_s18 }
 0x10d   : > { %1048 = vrot.lane.b32.xlu1 %v4455_v43, %s4285_s20 }
 0x10f   : > { %1064 = vrot.lane.b32.xlu0 %v4427_v39, %s4288_s23 }
 0x111   : > { %1054 = vrot.lane.b32.xlu1 %v4455_v43, %s4286_s21 }
 0x113   : > { %1070 = vrot.lane.b32.xlu0 %v4427_v39, %s4289_s24 }
 0x115   : > { %1060 = vrot.lane.b32.xlu1 %v4455_v43, %s4287_s22 }
 0x117   : > { %456 = vrot.lane.b32.xlu0 %v4425_v37, %s4286_s21 }
 0x119   : > { %1066 = vrot.lane.b32.xlu1 %v4455_v43, %s4288_s23 }
 0x11b   : > { %462 = vrot.lane.b32.xlu0 %v4425_v37, %s4287_s22 }
 0x11d   : > { %1072 = vrot.lane.b32.xlu1 %v4455_v43, %s4289_s24 }
 0x11f   : > { %468 = vrot.lane.b32.xlu0 %v4425_v37, %s4288_s23 }
 0x121   : > { %470 = vrot.lane.b32.xlu1 %v4433_v41, %s4288_s23 }
 0x123   : > { %474 = vrot.lane.b32.xlu0 %v4425_v37, %s4289_s24 }
 0x125   : > { %476 = vrot.lane.b32.xlu1 %v4433_v41, %s4289_s24 }
 0x127   : > { %1632 = vrot.lane.b32.xlu0 %v4494_v50, %s4283_s18 }
 0x129   : > { %1630 = vrot.lane.b32.xlu1 %v4490_v48, %s4283_s18 }
 0x12b   : > { %1642 = vrot.lane.b32.xlu0 %v4490_v48, %s4285_s20 }
 0x12d   : > { %1636 = vrot.lane.b32.xlu1 %v4490_v48, %s4284_s19 }
 0x12f   : > { %1650 = vrot.lane.b32.xlu0 %v4494_v50, %s4286_s21 }
 0x131   : > { %1638 = vrot.lane.b32.xlu1 %v4494_v50, %s4284_s19 }
 0x133   : > { %1660 = vrot.lane.b32.xlu0 %v4490_v48, %s4288_s23 }
 0x135   : > { %1644 = vrot.lane.b32.xlu1 %v4494_v50, %s4285_s20 }
 0x139   : > { %1648 = vrot.lane.b32.xlu1 %v4490_v48, %s4286_s21 }
 0x13d   : > { %1654 = vrot.lane.b32.xlu1 %v4490_v48, %s4287_s22 }
 0x141   : > { %1656 = vrot.lane.b32.xlu1 %v4494_v50, %s4287_s22 }
 0x161   : > { %v439_v52 = vpop.permute.xlu0 %438 }
 0x163   : > { %v4516_v57 = vpop.permute.xlu1 %1040 }
 0x164   : > { %v1076_v46 = vcombine.low %v4427_v39, %v4516_v57  ;;  %v1077_v47 = vcombine.high %v4427_v39, %v4516_v57 }
 0x165   : > { %v445_v58 = vpop.permute.xlu0 %444 }
 0x166   : > { %v480_v62 = vcombine.low %v4425_v37, %v445_v58  ;;  %v481_v63 = vcombine.high %v4425_v37, %v445_v58  ;;  %v1084_v39 = vrot.slane %v1076_v46, %v4521_v1  ;;  %v1091_v57 = vrot.slane %v1077_v47, %v4521_v1 }
 0x167   : > { %v441_v61 = vpop.permute.xlu1 %440 }
 0x168   : > { %v488_v7 = vrot.slane %v480_v62, %v4521_v1  ;;  %v495_v8 = vrot.slane %v481_v63, %v4521_v1 }
 0x169   : > { %v451_v0 = vpop.permute.xlu0 %450 }
 0x16a   : > { %v496_v2 = vcombine.low %v439_v52, %v451_v0  ;;  %v497_v3 = vcombine.high %v439_v52, %v451_v0 }
 0x16b   : > { %v447_v6 = vpop.permute.xlu1 %446 }
 0x16c   : > { %v504_v9 = vrot.slane %v496_v2, %v4521_v1  ;;  %v511_v10 = vrot.slane %v497_v3, %v4521_v1  ;;  %v616_v16 = vcombine.low %v4433_v41, %v447_v6  ;;  %v617_v17 = vcombine.high %v4433_v41, %v447_v6 }
 0x16d   : > { %v1035_v11 = vpop.permute.xlu0 %1034 }
 0x16e   : > { %v544_v12 = vcombine.low %v488_v7, %v504_v9  ;;  %v545_v13 = vcombine.high %v488_v7, %v504_v9  ;;  %v560_v14 = vcombine.low %v495_v8, %v511_v10  ;;  %v561_v15 = vcombine.high %v495_v8, %v511_v10 }
 0x16f   : > { %v453_v18 = vpop.permute.xlu1 %452  ;;  %v624_v30 = vrot.slane %v616_v16, %v4521_v1  ;;  %v631_v31 = vrot.slane %v617_v17, %v4521_v1 }
 0x170   : > { %v552_v19 = vrot.slane %v544_v12, %v4524_v5  ;;  %v559_v20 = vrot.slane %v545_v13, %v4524_v5  ;;  %v568_v21 = vrot.slane %v560_v14, %v4524_v5  ;;  %v575_v22 = vrot.slane %v561_v15, %v4524_v5 }
 0x171   : > { %v632_v23 = vcombine.low %v441_v61, %v453_v18  ;;  %v633_v24 = vcombine.high %v441_v61, %v453_v18  ;;  %v1047_v25 = vpop.permute.xlu0 %1046 }
 0x172   : > { %v3871_v26 = vcombine.low %v552_v19, %v559_v20  ;;  %v3873_v27 = vcombine.high %v552_v19, %v559_v20  ;;  %v3875_v28 = vcombine.low %v568_v21, %v575_v22  ;;  %v3877_v29 = vcombine.high %v568_v21, %v575_v22 }
 0x173   : > { %v640_v32 = vrot.slane %v632_v23, %v4521_v1  ;;  %v647_v33 = vrot.slane %v633_v24, %v4521_v1  ;;  %v4540_v34 = vpop.permute.xlu1 %458  ;;  %v1092_v49 = vcombine.low %v1035_v11, %v1047_v25  ;;  %v1093_v51 = vcombine.high %v1035_v11, %v1047_v25 }
 0x174   : > { %v760_v35 = vrot.slane %v3871_v26, %v4521_v1  ;;  %v776_v36 = vrot.slane %v3873_v27, %v4521_v1  ;;  %v792_v37 = vrot.slane %v3875_v28, %v4521_v1  ;;  %v808_v38 = vrot.slane %v3877_v29, %v4521_v1 }
 0x175   : > { %v680_v40 = vcombine.low %v624_v30, %v640_v32  ;;  %v681_v41 = vcombine.high %v624_v30, %v640_v32  ;;  %v696_v42 = vcombine.low %v631_v31, %v647_v33  ;;  %v697_v44 = vcombine.high %v631_v31, %v647_v33  ;;  %v4546_v45 = vpop.permute.xlu0 %1052 }
 0x176   : > { %v816_v58 = vcombine.low %v760_v35, %v776_v36  ;;  %v817_v59 = vcombine.high %v760_v35, %v776_v36  ;;  %v848_v60 = vcombine.low %v792_v37, %v808_v38  ;;  %v849_v61 = vcombine.high %v792_v37, %v808_v38 }
 0x177   : > { %v688_v52 = vrot.slane %v680_v40, %v4524_v5  ;;  %v695_v53 = vrot.slane %v681_v41, %v4524_v5  ;;  %v704_v54 = vrot.slane %v696_v42, %v4524_v5  ;;  %v711_v55 = vrot.slane %v697_v44, %v4524_v5  ;;  %v4556_v56 = vpop.permute.xlu1 %464 }
 0x178   : > { %v1100_v2 = vrot.slane %v1092_v49, %v4521_v1  ;;  %v1107_v3 = vrot.slane %v1093_v51, %v4521_v1  ;;  %v4571_v15 = vrot.slane %v816_v58, %v4524_v5  ;;  %v4574_v16 = vrot.slane %v817_v59, %v4524_v5 }
 0x179   : > { %v3879_v62 = vcombine.low %v688_v52, %v695_v53  ;;  %v3881_v63 = vcombine.high %v688_v52, %v695_v53  ;;  %v4558_v0 = vpop.permute.xlu0 %1058  ;;  %v3883_v8 = vcombine.low %v704_v54, %v711_v55  ;;  %v3885_v9 = vcombine.high %v704_v54, %v711_v55 }
 0x17a   : > { %v1140_v11 = vcombine.low %v1084_v39, %v1100_v2  ;;  %v1141_v12 = vcombine.high %v1084_v39, %v1100_v2  ;;  %v1156_v13 = vcombine.low %v1091_v57, %v1107_v3  ;;  %v1157_v14 = vcombine.high %v1091_v57, %v1107_v3 }
 0x17b   : > { %v4565_v6 = vrot.slane %v3879_v62, %v4521_v1  ;;  %v4568_v7 = vrot.slane %v3881_v63, %v4521_v1  ;;  %v1043_v10 = vpop.permute.xlu1 %1042  ;;  %v4577_v17 = vrot.slane %v848_v60, %v4524_v5  ;;  %v4580_v18 = vrot.slane %v849_v61, %v4524_v5 }
 0x17c   : > { %v1148_v20 = vrot.slane %v1140_v11, %v4524_v5  ;;  %v1155_v21 = vrot.slane %v1141_v12, %v4524_v5  ;;  %v1164_v22 = vrot.slane %v1156_v13, %v4524_v5  ;;  %v1171_v23 = vrot.slane %v1157_v14, %v4524_v5 }
 0x17d   : > { %v1037_v19 = vpop.permute.xlu0 %1036  ;;  %v4587_v24 = vrot.slane %v3883_v8, %v4521_v1  ;;  %v4590_v25 = vrot.slane %v3885_v9, %v4521_v1  ;;  %v952_v26 = vcombine.low %v4565_v6, %v4568_v7  ;;  %v953_v27 = vcombine.high %v4565_v6, %v4568_v7 }
 0x17e   : > { %v3887_v29 = vcombine.low %v1148_v20, %v1155_v21  ;;  %v3889_v30 = vcombine.high %v1148_v20, %v1155_v21  ;;  %v3891_v31 = vcombine.low %v1164_v22, %v1171_v23  ;;  %v3893_v32 = vcombine.high %v1164_v22, %v1171_v23 }
 0x17f   : > { %v1049_v28 = vpop.permute.xlu1 %1048  ;;  %v1212_v33 = vcombine.low %v4455_v43, %v1043_v10  ;;  %v1213_v35 = vcombine.high %v4455_v43, %v1043_v10  ;;  %v984_v52 = vcombine.low %v4587_v24, %v4590_v25  ;;  %v985_v53 = vcombine.high %v4587_v24, %v4590_v25 }
 0x180   : > { %v1228_v36 = vcombine.low %v1037_v19, %v1049_v28  ;;  %v1229_v37 = vcombine.high %v1037_v19, %v1049_v28  ;;  %v4599_v40 = vrot.slane %v3887_v29, %v4521_v1  ;;  %v4602_v41 = vrot.slane %v3889_v30, %v4521_v1 }
 0x181   : > { %v1065_v38 = vpop.permute.xlu0 %1064  ;;  %v4605_v42 = vrot.slane %v3891_v31, %v4521_v1  ;;  %v4608_v44 = vrot.slane %v3893_v32, %v4521_v1  ;;  %v1220_v46 = vrot.slane %v1212_v33, %v4521_v1  ;;  %v1227_v47 = vrot.slane %v1213_v35, %v4521_v1 }
 0x182   : > { %v1236_v43 = vrot.slane %v1228_v36, %v4521_v1  ;;  %v1243_v49 = vrot.slane %v1229_v37, %v4521_v1  ;;  %v1108_v54 = vcombine.low %v4546_v45, %v1065_v38  ;;  %v1109_v55 = vcombine.high %v4546_v45, %v1065_v38 }
 0x183   : > { %v4614_v51 = vpop.permute.xlu1 %1054  ;;  %v1412_v57 = vcombine.low %v4599_v40, %v4602_v41  ;;  %v1444_v2 = vcombine.low %v4605_v42, %v4608_v44 }
 0x184   : > { %v1276_v58 = vcombine.low %v1220_v46, %v1236_v43  ;;  %v1277_v59 = vcombine.high %v1220_v46, %v1236_v43  ;;  %v1292_v60 = vcombine.low %v1227_v47, %v1243_v49  ;;  %v1293_v61 = vcombine.high %v1227_v47, %v1243_v49 }
 0x185   : > { %v1071_v62 = vpop.permute.xlu0 %1070  ;;  %v1116_v11 = vrot.slane %v1108_v54, %v4521_v1  ;;  %v1123_v12 = vrot.slane %v1109_v55, %v4521_v1  ;;  %v1420_v37 = vrot.slane %v1412_v57, %v4524_v5  ;;  %v1452_v38 = vrot.slane %v1444_v2, %v4524_v5 }
 0x186   : > { %v1124_v63 = vcombine.low %v4558_v0, %v1071_v62  ;;  %v1125_v39 = vcombine.high %v4558_v0, %v1071_v62  ;;  %v1284_v3 = vrot.slane %v1276_v58, %v4524_v5  ;;  %v1291_v8 = vrot.slane %v1277_v59, %v4524_v5 }
 0x187   : > { %v1300_v45 = vrot.slane %v1292_v60, %v4524_v5  ;;  %v1307_v9 = vrot.slane %v1293_v61, %v4524_v5  ;;  %v1061_v10 = vpop.permute.xlu1 %1060  ;;  %v880_v54 = vcombine.low %v4571_v15, %v4577_v17  ;;  %v4672_v55 = vrot.slane %v952_v26, %v4524_v5 }
 0x188   : > { %v1132_v0 = vrot.slane %v1124_v63, %v4521_v1  ;;  %v1139_v13 = vrot.slane %v1125_v39, %v4521_v1  ;;  %v3895_v14 = vcombine.low %v1284_v3, %v1291_v8  ;;  %v3897_v19 = vcombine.high %v1284_v3, %v1291_v8 }
 0x189   : > { %v3899_v20 = vcombine.low %v1300_v45, %v1307_v9  ;;  %v3901_v21 = vcombine.high %v1300_v45, %v1307_v9  ;;  %v4636_v22 = vpop.permute.xlu0 %456  ;;  %v881_v60 = vcombine.high %v4571_v15, %v4577_v17  ;;  %v4682_v61 = vrot.slane %v953_v27, %v4524_v5 }
 0x18a   : > { %v1172_v23 = vcombine.low %v1116_v11, %v1132_v0  ;;  %v1173_v24 = vcombine.high %v1116_v11, %v1132_v0  ;;  %v1188_v25 = vcombine.low %v1123_v12, %v1139_v13  ;;  %v1189_v28 = vcombine.high %v1123_v12, %v1139_v13 }
 0x18b   : > { %v4639_v29 = vrot.slane %v3895_v14, %v4521_v1  ;;  %v4642_v30 = vrot.slane %v3897_v19, %v4521_v1  ;;  %v4645_v31 = vrot.slane %v3899_v20, %v4521_v1  ;;  %v4648_v32 = vrot.slane %v3901_v21, %v4521_v1  ;;  %v1067_v33 = vpop.permute.xlu1 %1066 }
 0x18c   : > { %v4651_v35 = vrot.slane %v1172_v23, %v4524_v5  ;;  %v4654_v36 = vrot.slane %v1173_v24, %v4524_v5  ;;  %v4659_v46 = vrot.slane %v1188_v25, %v4524_v5  ;;  %v4662_v47 = vrot.slane %v1189_v28, %v4524_v5 }
 0x18d   : > { %v463_v43 = vpop.permute.xlu0 %462  ;;  %v1548_v49 = vcombine.low %v4639_v29, %v4642_v30  ;;  %v1244_v58 = vcombine.low %v4614_v51, %v1067_v33  ;;  %v1245_v59 = vcombine.high %v4614_v51, %v1067_v33  ;;  %v4685_v62 = vrot.slane %v984_v52, %v4524_v5 }
 0x18e   : > { %v1580_v39 = vcombine.low %v4645_v31, %v4648_v32  ;;  %v4691_v51 = vrot.slane %v985_v53, %v4524_v5  ;;  %v3888_v57 = vcombine.low %v4651_v35, %v4654_v36  ;;  %v3890_v6 = vcombine.high %v4651_v35, %v4654_v36 }
 0x18f   : > { %v1073_v63 = vpop.permute.xlu1 %1072  ;;  %v1556_v26 = vrot.slane %v1548_v49, %v4524_v5  ;;  %v1476_v7 = vcombine.low %v1420_v37, %v1452_v38  ;;  %v3892_v27 = vcombine.low %v4659_v46, %v4662_v47  ;;  %v3894_v45 = vcombine.high %v4659_v46, %v4662_v47 }
 0x190   : > { %v1260_v52 = vcombine.low %v1061_v10, %v1073_v63  ;;  %v1261_v2 = vcombine.high %v1061_v10, %v1073_v63  ;;  %v1588_v8 = vrot.slane %v1580_v39, %v4524_v5  ;;  %v1252_v53 = vrot.slane %v1244_v58, %v4521_v1 }
 0x191   : > { %v469_v3 = vpop.permute.xlu0 %468  ;;  %v1259_v9 = vrot.slane %v1245_v59, %v4521_v1  ;;  %v1477_v11 = vcombine.high %v1420_v37, %v1452_v38  ;;  %v1016_v58 = vcombine.low %v4672_v55, %v4685_v62  ;;  %v1017_v59 = vcombine.high %v4672_v55, %v4685_v62 }
 0x192   : > { %v1268_v12 = vrot.slane %v1260_v52, %v4521_v1  ;;  %v1275_v0 = vrot.slane %v1261_v2, %v4521_v1  ;;  %v1612_v14 = vcombine.low %v1556_v26, %v1588_v8  ;;  %v1613_v19 = vcombine.high %v1556_v26, %v1588_v8 }
 0x193   : > { %v471_v13 = vpop.permute.xlu1 %470  ;;  %v512_v10 = vcombine.low %v4636_v22, %v469_v3  ;;  %v513_v20 = vcombine.high %v4636_v22, %v469_v3  ;;  %v4800_v35 = vrot.slane %v3892_v27, %v4521_v1  ;;  %v4806_v36 = vrot.slane %v3894_v45, %v4521_v1 }
 0x194   : > { %v648_v21 = vcombine.low %v4540_v34, %v471_v13  ;;  %v649_v23 = vcombine.high %v4540_v34, %v471_v13  ;;  %v1308_v24 = vcombine.low %v1252_v53, %v1268_v12  ;;  %v1309_v25 = vcombine.high %v1252_v53, %v1268_v12 }
 0x195   : > { %v1324_v28 = vcombine.low %v1259_v9, %v1275_v0  ;;  %v1325_v33 = vcombine.high %v1259_v9, %v1275_v0  ;;  %v475_v37 = vpop.permute.xlu0 %474  ;;  %v1620_v38 = vpack.c.bf16 %v1612_v14, %v1476_v7  ;;  %v1621_v49 = vpack.c.bf16 %v1613_v19, %v1477_v11 }
 0x196   : > { %v4715_v63 = vrot.slane %v1308_v24, %v4524_v5  ;;  %v4718_v22 = vrot.slane %v1309_v25, %v4524_v5  ;;  %v528_v2 = vcombine.low %v463_v43, %v475_v37  ;;  %v529_v3 = vcombine.high %v463_v43, %v475_v37 }
 0x197   : > { %v4721_v34 = vrot.slane %v1324_v28, %v4524_v5  ;;  %v4724_v26 = vrot.slane %v1325_v33, %v4524_v5  ;;  %v477_v39 = vpop.permute.xlu1 %476  ;;  %v2229_v7 = vsel %vm2224_vm1, %v1620_v38, 0  ;;  %v2276_v52 = vsel %vm2224_vm1, %v1621_v49, 0 }
 0x198   : > { %v520_v55 = vrot.slane %v512_v10, %v4521_v1  ;;  %v527_v62 = vrot.slane %v513_v20, %v4521_v1  ;;  %v656_v8 = vrot.slane %v648_v21, %v4521_v1  ;;  %v663_v53 = vrot.slane %v649_v23, %v4521_v1  ;;  %4026 = vmatpush3.bf16.xpose.msra.mxu0 %v2229_v7 }
 0x199   : > { %4032 = vmatpush3.bf16.xpose.msra.mxu1 %v2276_v52  ;;  %v536_v9 = vrot.slane %v528_v2, %v4521_v1  ;;  %v543_v11 = vrot.slane %v529_v3, %v4521_v1  ;;  %v664_v12 = vcombine.low %v4556_v56, %v477_v39  ;;  %v665_v0 = vcombine.high %v4556_v56, %v477_v39 }
 0x19a   : > { %v3896_v43 = vcombine.low %v4715_v63, %v4718_v22  ;;  %v3898_v13 = vcombine.high %v4715_v63, %v4718_v22  ;;  %v3900_v14 = vcombine.low %v4721_v34, %v4724_v26  ;;  %v3902_v19 = vcombine.high %v4721_v34, %v4724_v26  ;;  %4037 = vmatprep.subr.bf16.mxu0 %v4281_v4 }
 0x19b   : > { %v576_v10 = vcombine.low %v520_v55, %v536_v9  ;;  %v577_v20 = vcombine.high %v520_v55, %v536_v9  ;;  %v592_v21 = vcombine.low %v527_v62, %v543_v11  ;;  %v593_v23 = vcombine.high %v527_v62, %v543_v11  ;;  %4043 = vmatprep.subr.bf16.mxu1 %v4281_v4 }
 0x19c   : > { %v672_v56 = vrot.slane %v664_v12, %v4521_v1  ;;  %v679_v24 = vrot.slane %v665_v0, %v4521_v1  ;;  %v1024_v25 = vpack.c.bf16 %v1016_v58, %v880_v54  ;;  %v1025_v28 = vpack.c.bf16 %v1017_v59, %v881_v60 }
 0x19d   : > { %v584_v33 = vrot.slane %v576_v10, %v4524_v5  ;;  %v591_v37 = vrot.slane %v577_v20, %v4524_v5  ;;  %v600_v38 = vrot.slane %v592_v21, %v4524_v5  ;;  %v607_v49 = vrot.slane %v593_v23, %v4524_v5 }
 0x19e   : > { %v712_v63 = vcombine.low %v656_v8, %v672_v56  ;;  %v713_v22 = vcombine.high %v656_v8, %v672_v56  ;;  %v728_v34 = vcombine.low %v663_v53, %v679_v24  ;;  %v729_v26 = vcombine.high %v663_v53, %v679_v24 }
 0x19f   : > { %v3872_v39 = vcombine.low %v584_v33, %v591_v37  ;;  %v3874_v7 = vcombine.high %v584_v33, %v591_v37  ;;  %v3876_v52 = vcombine.low %v600_v38, %v607_v49  ;;  %v3878_v54 = vcombine.high %v600_v38, %v607_v49  ;;  %4028 = vmatmul.mubr.msk.bf16.vlgmr.msra.gmra.mxu0 %vm2224_vm1, %v1024_v25 }
 0x1a0   : > { %v720_v15 = vrot.slane %v712_v63, %v4524_v5  ;;  %v727_v17 = vrot.slane %v713_v22, %v4524_v5  ;;  %v736_v60 = vrot.slane %v728_v34, %v4524_v5  ;;  %v743_v58 = vrot.slane %v729_v26, %v4524_v5  ;;  %4034 = vmatmul.mubr.msk.bf16.vlgmr.msra.gmra.mxu1 %vm2224_vm1, %v1025_v28 }
 0x1a1   : > { %v767_v59 = vrot.slane %v3872_v39, %v4521_v1  ;;  %v783_v2 = vrot.slane %v3874_v7, %v4521_v1  ;;  %v799_v3 = vrot.slane %v3876_v52, %v4521_v1  ;;  %v815_v55 = vrot.slane %v3878_v54, %v4521_v1  ;;  %4039 = vmatprep.mubr.msk.bf16.mxu0 %vm4282_vm0, %v4281_v4 }
 0x1a2   : > { %v3880_v62 = vcombine.low %v720_v15, %v727_v17  ;;  %v3882_v8 = vcombine.high %v720_v15, %v727_v17  ;;  %v3884_v53 = vcombine.low %v736_v60, %v743_v58  ;;  %v3886_v9 = vcombine.high %v736_v60, %v743_v58  ;;  %4045 = vmatprep.mubr.msk.bf16.mxu1 %vm4282_vm0, %v4281_v4 }
 0x1a3   : > { %v4776_v11 = vrot.slane %v3888_v57, %v4521_v1  ;;  %v4782_v12 = vrot.slane %v3890_v6, %v4521_v1  ;;  %v832_v0 = vcombine.low %v767_v59, %v783_v2  ;;  %v833_v10 = vcombine.high %v767_v59, %v783_v2 }
 0x1a4   : > { %v4785_v20 = vrot.slane %v3880_v62, %v4521_v1  ;;  %v4788_v21 = vrot.slane %v3882_v8, %v4521_v1  ;;  %v4791_v23 = vrot.slane %v3884_v53, %v4521_v1  ;;  %v4794_v57 = vrot.slane %v3886_v9, %v4521_v1 }
 0x1a5   : > { %v4809_v6 = vrot.slane %v3896_v43, %v4521_v1  ;;  %v4812_v56 = vrot.slane %v3898_v13, %v4521_v1  ;;  %v4815_v24 = vrot.slane %v3900_v14, %v4521_v1  ;;  %v4818_v25 = vrot.slane %v3902_v19, %v4521_v1 }
 0x1a6   : > { %v864_v27 = vcombine.low %v799_v3, %v815_v55  ;;  %v865_v28 = vcombine.high %v799_v3, %v815_v55  ;;  %v1413_v33 = vcombine.high %v4599_v40, %v4602_v41  ;;  %v1445_v46 = vcombine.high %v4605_v42, %v4608_v44 }
 0x1a7   : > { %v1549_v47 = vcombine.high %v4639_v29, %v4642_v30  ;;  %v1581_v45 = vcombine.high %v4645_v31, %v4648_v32  ;;  %v4829_v43 = vrot.slane %v832_v0, %v4524_v5  ;;  %v4832_v13 = vrot.slane %v833_v10, %v4524_v5  ;;  %v4880_v0 = vpop.permute.xlu1 %1630 }
 0x1a8   : > { %v968_v14 = vcombine.low %v4785_v20, %v4788_v21  ;;  %v1000_v40 = vcombine.low %v4791_v23, %v4794_v57  ;;  %v1427_v41 = vrot.slane %v1413_v33, %v4524_v5  ;;  %v1459_v42 = vrot.slane %v1445_v46, %v4524_v5 }
 0x1a9   : > { %v1563_v44 = vrot.slane %v1549_v47, %v4524_v5  ;;  %v1595_v29 = vrot.slane %v1581_v45, %v4524_v5  ;;  %v4843_v30 = vrot.slane %v864_v27, %v4524_v5  ;;  %v4846_v31 = vrot.slane %v865_v28, %v4524_v5  ;;  %v1633_v45 = vpop.permute.xlu0 %1632 }
 0x1aa   : > { %v969_v32 = vcombine.high %v4785_v20, %v4788_v21  ;;  %v1001_v19 = vcombine.high %v4791_v23, %v4794_v57  ;;  %v1478_v37 = vcombine.low %v1427_v41, %v1459_v42  ;;  %v1479_v49 = vcombine.high %v1427_v41, %v1459_v42 }
 0x1ab   : > { %v1614_v38 = vcombine.low %v1563_v44, %v1595_v29  ;;  %v1615_v63 = vcombine.high %v1563_v44, %v1595_v29  ;;  %v4853_v22 = vrot.slane %v968_v14, %v4524_v5  ;;  %v4856_v34 = vrot.slane %v1000_v40, %v4524_v5 }
 0x1ac   : > { %v1428_v26 = vcombine.low %v4776_v11, %v4782_v12  ;;  %v1460_v39 = vcombine.low %v4800_v35, %v4806_v36  ;;  %v1564_v54 = vcombine.low %v4809_v6, %v4812_v56  ;;  %v1596_v15 = vcombine.low %v4815_v24, %v4818_v25 }
 0x1ad   : > { %v1622_v7 = vpack.c.bf16 %v1614_v38, %v1478_v37  ;;  %v1623_v52 = vpack.c.bf16 %v1615_v63, %v1479_v49  ;;  %v882_v17 = vcombine.low %v4574_v16, %v4580_v18  ;;  %v1018_v60 = vcombine.low %v4682_v61, %v4691_v51  ;;  %v1643_v49 = vpop.permute.xlu0 %1642 }
 0x1ae   : > { %v1436_v58 = vrot.slane %v1428_v26, %v4524_v5  ;;  %v1468_v59 = vrot.slane %v1460_v39, %v4524_v5  ;;  %v1572_v55 = vrot.slane %v1564_v54, %v4524_v5  ;;  %v1604_v62 = vrot.slane %v1596_v15, %v4524_v5 }
 0x1af   : > { %v2323_v2 = vsel %vm2224_vm1, %v1622_v7, 0  ;;  %v2370_v3 = vsel %vm2224_vm1, %v1623_v52, 0  ;;  %v883_v8 = vcombine.high %v4574_v16, %v4580_v18  ;;  %v1019_v53 = vcombine.high %v4682_v61, %v4691_v51 }
 0x1b0   : > { %4038 = vmatpush3.bf16.xpose.msra.mxu0 %v2323_v2  ;;  %4044 = vmatpush3.bf16.xpose.msra.mxu1 %v2370_v3  ;;  %v1480_v9 = vcombine.low %v1436_v58, %v1468_v59  ;;  %v1616_v10 = vcombine.low %v1572_v55, %v1604_v62  ;;  %v1481_v20 = vcombine.high %v1436_v58, %v1468_v59 }
 0x1b1   : > { %4049 = vmatprep.subr.bf16.mxu0 %v4281_v4  ;;  %4055 = vmatprep.subr.bf16.mxu1 %v4281_v4  ;;  %v1617_v21 = vcombine.high %v1572_v55, %v1604_v62  ;;  %v1020_v23 = vcombine.low %v4853_v22, %v4856_v34  ;;  %v1429_v57 = vcombine.high %v4776_v11, %v4782_v12  ;;  %v1637_v12 = vpop.permute.xlu1 %1636 }
 0x1b2   : > { %v1461_v16 = vcombine.high %v4800_v35, %v4806_v36  ;;  %v1565_v18 = vcombine.high %v4809_v6, %v4812_v56  ;;  %v1026_v61 = vpack.c.bf16 %v1018_v60, %v882_v17  ;;  %v1624_v51 = vpack.c.bf16 %v1616_v10, %v1480_v9 }
 0x1b3   : > { %v1625_v27 = vpack.c.bf16 %v1617_v21, %v1481_v20  ;;  %v1597_v28 = vcombine.high %v4815_v24, %v4818_v25  ;;  %v884_v33 = vcombine.low %v4829_v43, %v4843_v30  ;;  %v1443_v46 = vrot.slane %v1429_v57, %v4524_v5 }
 0x1b4   : > { %v1475_v47 = vrot.slane %v1461_v16, %v4524_v5  ;;  %v1579_v11 = vrot.slane %v1565_v18, %v4524_v5  ;;  %v1027_v35 = vpack.c.bf16 %v1019_v53, %v883_v8  ;;  %v2417_v36 = vsel %vm2224_vm1, %v1624_v51, 0 }
 0x1b5   : > { %v2464_v6 = vsel %vm2224_vm1, %v1625_v27, 0  ;;  %v1611_v56 = vrot.slane %v1597_v28, %v4524_v5  ;;  %v4903_v24 = vrot.slane %v969_v32, %v4524_v5  ;;  %v4906_v25 = vrot.slane %v1001_v19, %v4524_v5  ;;  %v1639_v37 = vpop.permute.xlu1 %1638 }
 0x1b6   : > { %v1028_v14 = vpack.c.bf16 %v1020_v23, %v884_v33  ;;  %v885_v40 = vcombine.high %v4829_v43, %v4843_v30  ;;  %v1021_v41 = vcombine.high %v4853_v22, %v4856_v34  ;;  %v1482_v29 = vcombine.low %v1443_v46, %v1475_v47 }
 0x1b7   : > { %4040 = vmatmul.mubr.msk.bf16.vlgmr.msra.gmra.mxu0 %vm2224_vm1, %v1026_v61  ;;  %4046 = vmatmul.mubr.msk.bf16.vlgmr.msra.gmra.mxu1 %vm2224_vm1, %v1027_v35  ;;  %v1618_v42 = vcombine.low %v1579_v11, %v1611_v56  ;;  %v1619_v44 = vcombine.high %v1579_v11, %v1611_v56  ;;  %v1672_v32 = vcombine.low %v4490_v48, %v1637_v12 }
 0x1b8   : > { %4050 = vmatpush3.bf16.xpose.msra.mxu0 %v2417_v36  ;;  %4056 = vmatpush3.bf16.xpose.msra.mxu1 %v2464_v6  ;;  %v1673_v19 = vcombine.high %v4490_v48, %v1637_v12  ;;  %v1483_v43 = vcombine.high %v1443_v46, %v1475_v47  ;;  %v886_v30 = vcombine.low %v4832_v13, %v4846_v31 }
 0x1b9   : > { %4051 = vmatprep.mubr.msk.bf16.mxu0 %vm4282_vm0, %v4281_v4  ;;  %4057 = vmatprep.mubr.msk.bf16.mxu1 %vm4282_vm0, %v4281_v4  ;;  %v1808_v38 = vcombine.low %v4494_v50, %v1639_v37  ;;  %v1626_v63 = vpack.c.bf16 %v1618_v42, %v1482_v29  ;;  %v1022_v22 = vcombine.low %v4903_v24, %v4906_v25  ;;  %v1645_v60 = vpop.permute.xlu1 %1644 }
 0x1ba   : > { %4061 = vmatprep.subr.bf16.mxu0 %v4281_v4  ;;  %4067 = vmatprep.subr.bf16.mxu1 %v4281_v4  ;;  %v1809_v34 = vcombine.high %v4494_v50, %v1639_v37  ;;  %v1029_v26 = vpack.c.bf16 %v1021_v41, %v885_v40  ;;  %v1627_v39 = vpack.c.bf16 %v1619_v44, %v1483_v43 }
 0x1bb   : > { %v1680_v7 = vrot.slane %v1672_v32, %v4521_v1  ;;  %v1688_v52 = vcombine.low %v4880_v0, %v1643_v49  ;;  %v887_v54 = vcombine.high %v4832_v13, %v4846_v31  ;;  %v1687_v15 = vrot.slane %v1673_v19, %v4521_v1 }
 0x1bc   : > { %v1816_v17 = vrot.slane %v1808_v38, %v4521_v1  ;;  %v1689_v58 = vcombine.high %v4880_v0, %v1643_v49  ;;  %v1823_v59 = vrot.slane %v1809_v34, %v4521_v1  ;;  %v1824_v2 = vcombine.low %v1633_v45, %v1645_v60 }
 0x1bd   : > { %v1825_v3 = vcombine.high %v1633_v45, %v1645_v60  ;;  %v1696_v55 = vrot.slane %v1688_v52, %v4521_v1  ;;  %v2511_v62 = vsel %vm2224_vm1, %v1626_v63, 0  ;;  %v1030_v8 = vpack.c.bf16 %v1022_v22, %v886_v30 }
 0x1be   : > { %v1023_v53 = vcombine.high %v4903_v24, %v4906_v25  ;;  %v1703_v13 = vrot.slane %v1689_v58, %v4521_v1  ;;  %v2558_v31 = vsel %vm2224_vm1, %v1627_v39, 0  ;;  %v1832_v9 = vrot.slane %v1824_v2, %v4521_v1 }
 0x1bf   : > { %4052 = vmatmul.mubr.msk.bf16.vlgmr.msra.gmra.mxu0 %vm2224_vm1, %v1028_v14  ;;  %4058 = vmatmul.mubr.msk.bf16.vlgmr.msra.gmra.mxu1 %vm2224_vm1, %v1029_v26  ;;  %v1839_v0 = vrot.slane %v1825_v3, %v4521_v1  ;;  %v1736_v10 = vcombine.low %v1680_v7, %v1696_v55  ;;  %v1737_v20 = vcombine.high %v1680_v7, %v1696_v55 }
 0x1c0   : > { %4062 = vmatpush3.bf16.xpose.msra.mxu0 %v2511_v62  ;;  %4068 = vmatpush3.bf16.xpose.msra.mxu1 %v2558_v31  ;;  %v1752_v21 = vcombine.low %v1687_v15, %v1703_v13  ;;  %v1753_v23 = vcombine.high %v1687_v15, %v1703_v13  ;;  %v1872_v57 = vcombine.low %v1816_v17, %v1832_v9 }
 0x1c1   : > { %4063 = vmatprep.mubr.msk.bf16.mxu0 %vm4282_vm0, %v4281_v4  ;;  %4069 = vmatprep.mubr.msk.bf16.mxu1 %vm4282_vm0, %v4281_v4  ;;  %v1873_v16 = vcombine.high %v1816_v17, %v1832_v9  ;;  %v1888_v18 = vcombine.low %v1823_v59, %v1839_v0  ;;  %v1889_v61 = vcombine.high %v1823_v59, %v1839_v0 }
 0x1c2   : > { %v1744_v51 = vrot.slane %v1736_v10, %v4524_v5  ;;  %v1751_v27 = vrot.slane %v1737_v20, %v4524_v5  ;;  %v1760_v28 = vrot.slane %v1752_v21, %v4524_v5  ;;  %4073 = vmatprep.subr.bf16.mxu0 %v4281_v4  ;;  %v1880_v33 = vrot.slane %v1872_v57, %v4524_v5 }
 0x1c3   : > { %v1887_v46 = vrot.slane %v1873_v16, %v4524_v5  ;;  %v1896_v47 = vrot.slane %v1888_v18, %v4524_v5  ;;  %v1767_v11 = vrot.slane %v1753_v23, %v4524_v5  ;;  %4079 = vmatprep.subr.bf16.mxu1 %v4281_v4  ;;  %v1031_v12 = vpack.c.bf16 %v1023_v53, %v887_v54 }
 0x1c4   : > { %v1903_v35 = vrot.slane %v1889_v61, %v4524_v5  ;;  %v3903_v36 = vcombine.low %v1744_v51, %v1751_v27  ;;  %v3905_v6 = vcombine.high %v1744_v51, %v1751_v27 }
 0x1c5   : > { %v3911_v56 = vcombine.low %v1880_v33, %v1887_v46  ;;  %v3913_v45 = vcombine.high %v1880_v33, %v1887_v46  ;;  %v3907_v24 = vcombine.low %v1760_v28, %v1767_v11  ;;  %v3909_v25 = vcombine.high %v1760_v28, %v1767_v11 }
 0x1c6   : > { %v3915_v14 = vcombine.low %v1896_v47, %v1903_v35  ;;  %v3917_v40 = vcombine.high %v1896_v47, %v1903_v35  ;;  %v1952_v41 = vrot.slane %v3903_v36, %v4521_v1  ;;  %v1968_v42 = vrot.slane %v3905_v6, %v4521_v1 }
 0x1c7   : > { %4064 = vmatmul.mubr.msk.bf16.vlgmr.msra.gmra.mxu0 %vm2224_vm1, %v1030_v8  ;;  %4070 = vmatmul.mubr.msk.bf16.vlgmr.msra.gmra.mxu1 %vm2224_vm1, %v1031_v12  ;;  %v2088_v44 = vrot.slane %v3911_v56, %v4521_v1  ;;  %v2104_v29 = vrot.slane %v3913_v45, %v4521_v1  ;;  %v1984_v32 = vrot.slane %v3907_v24, %v4521_v1 }
 0x1c8   : > { %v2120_v19 = vrot.slane %v3915_v14, %v4521_v1  ;;  %v2136_v37 = vrot.slane %v3917_v40, %v4521_v1  ;;  %v2000_v43 = vrot.slane %v3909_v25, %v4521_v1  ;;  %v2008_v30 = vcombine.low %v1952_v41, %v1968_v42  ;;  %4075 = vmatprep.mubr.msk.bf16.mxu0 %vm4282_vm0, %v4281_v4 }
 0x1c9   : > { %v2144_v38 = vcombine.low %v2088_v44, %v2104_v29  ;;  %4081 = vmatprep.mubr.msk.bf16.mxu1 %vm4282_vm0, %v4281_v4  ;;  %v2009_v58 = vcombine.high %v1952_v41, %v1968_v42  ;;  %v2145_v2 = vcombine.high %v2088_v44, %v2104_v29 }
 0x1ca   : > { %v2016_v49 = vrot.slane %v2008_v30, %v4524_v5  ;;  %v2040_v63 = vcombine.low %v1984_v32, %v2000_v43  ;;  %v2176_v22 = vcombine.low %v2120_v19, %v2136_v37  ;;  %v2041_v59 = vcombine.high %v1984_v32, %v2000_v43 }
 0x1cb   : > { %v2152_v34 = vrot.slane %v2144_v38, %v4524_v5  ;;  %v2177_v3 = vcombine.high %v2120_v19, %v2136_v37  ;;  %v2023_v55 = vrot.slane %v2009_v58, %v4524_v5  ;;  %v2159_v8 = vrot.slane %v2145_v2, %v4524_v5 }
 0x1cc   : > { %v2048_v26 = vrot.slane %v2040_v63, %v4524_v5  ;;  %v2184_v39 = vrot.slane %v2176_v22, %v4524_v5  ;;  %v2055_v62 = vrot.slane %v2041_v59, %v4524_v5 }
 0x1cd   : > { %v2191_v53 = vrot.slane %v2177_v3, %v4524_v5 }
 0x1ce   : > { %v2072_v7 = vcombine.low %v2016_v49, %v2048_v26  ;;  %v2208_v52 = vcombine.low %v2152_v34, %v2184_v39  ;;  %v2073_v54 = vcombine.high %v2016_v49, %v2048_v26  ;;  %v2209_v15 = vcombine.high %v2152_v34, %v2184_v39 }
 0x1cf   : > { %v2074_v13 = vcombine.low %v2023_v55, %v2055_v62  ;;  %v2210_v31 = vcombine.low %v2159_v8, %v2191_v53  ;;  %v2075_v9 = vcombine.high %v2023_v55, %v2055_v62  ;;  %v2211_v0 = vcombine.high %v2159_v8, %v2191_v53 }
 0x1d0   : > { %v2216_v17 = vpack.c.bf16 %v2208_v52, %v2072_v7  ;;  %v2217_v60 = vpack.c.bf16 %v2209_v15, %v2073_v54 }
 0x1d1   : > { %v4984_v10 = vpack.c.bf16 %v2210_v31, %v2074_v13  ;;  %v4986_v20 = vpack.c.bf16 %v2211_v0, %v2075_v9 }
 0x1d2   : > { %4074 = vmatpush3.bf16.msra.mxu0 %v2216_v17  ;;  %4080 = vmatpush3.bf16.msra.mxu1 %v2217_v60 }
 0x1d3   : > { %4085 = vmatprep.subr.bf16.mxu0 %v4281_v4  ;;  %4091 = vmatprep.subr.bf16.mxu1 %v4281_v4 }
 0x25f   : > { %v2265_v21 = vpop.f32.mrf.mxu0 }
 0x260   : > { %v4988_v23 = vmul.f32 0.25, %v2265_v21  ;;  %v2312_v57 = vpop.f32.mrf.mxu1 }
 0x261   : > { %v4029_v16 = vpop.f32.mrf.mxu0  ;;  %v4990_v18 = vmul.f32 0.25, %v2312_v57 }
 0x262   : > { %v4035_v61 = vpop.f32.mrf.mxu1  ;;  %v2617_v51 = vsel %vm2224_vm1, %v4988_v23, -inf }
 0x263   : > { %2618 = vmax.xlane.f32.xlu0 %v2617_v51  ;;  %v2268_v27 = vpop.f32.mrf.mxu0  ;;  %v2623_v12 = vsel %vm2224_vm1, %v4990_v18, -inf }
 0x264   : > { %v2315_v28 = vpop.f32.mrf.mxu1  ;;  %v4994_v33 = vmul.f32 0.25, %v2268_v27 }
 0x265   : > { %v4030_v46 = vpop.f32.mrf.mxu0  ;;  %v4996_v47 = vmul.f32 0.25, %v2315_v28 }
 0x266   : > { %v4036_v11 = vpop.f32.mrf.mxu1  ;;  %v2620_v35 = vsel %vm2224_vm1, %v4994_v33, -inf  ;;  %v5056_v46 = vpop.permute.xlu1 %1648 }
 0x267   : > { %2624 = vmax.xlane.f32.xlu0 %v2623_v12  ;;  %2621 = vmax.xlane.f32.xlu1 %v2620_v35  ;;  %v2626_v36 = vsel %vm2224_vm1, %v4996_v47, -inf  ;;  %v5058_v11 = vpop.permute.xlu0 %1650 }
 0x26a   : > { %v5060_v12 = vpop.permute.xlu1 %1654 }
 0x26b   : > { %2627 = vmax.xlane.f32.xlu0 %v2626_v36  ;;  %v5062_v35 = vpop.permute.xlu0 %1660 }
 0x26e   : > { %v5064_v36 = vpop.permute.xlu1 %1656 }
 0x277   : > { %v2406_v6 = vpop.f32.mrf.mxu1  ;;  %v2359_v56 = vpop.f32.mrf.mxu0 }
 0x278   : > { %v5004_v45 = vmul.f32 0.25, %v2359_v56  ;;  %v5006_v14 = vmul.f32 0.25, %v2406_v6 }
 0x279   : > { %v4041_v24 = vpop.f32.mrf.mxu0  ;;  %v4047_v25 = vpop.f32.mrf.mxu1 }
 0x27a   : > { %v2629_v40 = vsel %vm2224_vm1, %v5004_v45, -inf  ;;  %v2635_v37 = vsel %vm2224_vm1, %v5006_v14, -inf }
 0x27b   : > { %v2409_v41 = vpop.f32.mrf.mxu1  ;;  %2630 = vmax.xlane.f32.xlu1 %v2629_v40  ;;  %v2362_v42 = vpop.f32.mrf.mxu0 }
 0x27c   : > { %v5010_v44 = vmul.f32 0.25, %v2362_v42  ;;  %v5012_v19 = vmul.f32 0.25, %v2409_v41 }
 0x27d   : > { %v4042_v29 = vpop.f32.mrf.mxu0  ;;  %v4048_v32 = vpop.f32.mrf.mxu1 }
 0x27e   : > { %v2632_v43 = vsel %vm2224_vm1, %v5010_v44, -inf  ;;  %v2638_v26 = vsel %vm2224_vm1, %v5012_v19, -inf }
 0x27f   : > { %2636 = vmax.xlane.f32.xlu1 %v2635_v37  ;;  %2633 = vmax.xlane.f32.xlu0 %v2632_v43  ;;  %v2453_v30 = vpop.f32.mrf.mxu0  ;;  %v2500_v38 = vpop.f32.mrf.mxu1 }
 0x280   : > { %v5018_v49 = vmul.f32 0.25, %v2453_v30  ;;  %v5020_v34 = vmul.f32 0.25, %v2500_v38 }
 0x281   : > { %v4053_v63 = vpop.f32.mrf.mxu0  ;;  %v4059_v22 = vpop.f32.mrf.mxu1 }
 0x282   : > { %v2641_v39 = vsel %vm2224_vm1, %v5018_v49, -inf  ;;  %v2647_v58 = vsel %vm2224_vm1, %v5020_v34, -inf }
 0x283   : > { %2639 = vmax.xlane.f32.xlu0 %v2638_v26  ;;  %v2503_v7 = vpop.f32.mrf.mxu1  ;;  %2642 = vmax.xlane.f32.xlu1 %v2641_v39  ;;  %v2456_v52 = vpop.f32.mrf.mxu0 }
 0x284   : > { %v5026_v54 = vmul.f32 0.25, %v2456_v52  ;;  %v5028_v60 = vmul.f32 0.25, %v2503_v7 }
 0x285   : > { %v4054_v15 = vpop.f32.mrf.mxu0  ;;  %v4060_v17 = vpop.f32.mrf.mxu1 }
 0x286   : > { %v2644_v59 = vsel %vm2224_vm1, %v5026_v54, -inf  ;;  %v2650_v13 = vsel %vm2224_vm1, %v5028_v60, -inf }
 0x287   : > { %v2594_v2 = vpop.f32.mrf.mxu1  ;;  %2648 = vmax.xlane.f32.xlu1 %v2647_v58  ;;  %2645 = vmax.xlane.f32.xlu0 %v2644_v59  ;;  %v2547_v3 = vpop.f32.mrf.mxu0 }
 0x288   : > { %v5034_v55 = vmul.f32 0.25, %v2547_v3  ;;  %v5036_v53 = vmul.f32 0.25, %v2594_v2 }
 0x289   : > { %v4065_v62 = vpop.f32.mrf.mxu0  ;;  %v4071_v8 = vpop.f32.mrf.mxu1 }
 0x28a   : > { %v2653_v31 = vsel %vm2224_vm1, %v5034_v55, -inf  ;;  %v2659_v51 = vsel %vm2224_vm1, %v5036_v53, -inf }
 0x28b   : > { %v2597_v9 = vpop.f32.mrf.mxu1  ;;  %2651 = vmax.xlane.f32.xlu0 %v2650_v13  ;;  %2654 = vmax.xlane.f32.xlu1 %v2653_v31  ;;  %v2550_v0 = vpop.f32.mrf.mxu0 }
 0x28c   : > { %v5042_v21 = vmul.f32 0.25, %v2550_v0  ;;  %v5044_v61 = vmul.f32 0.25, %v2597_v9 }
 0x28d   : > { %v4066_v57 = vpop.f32.mrf.mxu0  ;;  %v4072_v16 = vpop.f32.mrf.mxu1 }
 0x28e   : > { %v2656_v27 = vsel %vm2224_vm1, %v5042_v21, -inf  ;;  %v2662_v28 = vsel %vm2224_vm1, %v5044_v61, -inf }
 0x28f   : > { %2660 = vmax.xlane.f32.xlu1 %v2659_v51  ;;  %2657 = vmax.xlane.f32.xlu0 %v2656_v27 }
 0x293   : > { %2663 = vmax.xlane.f32.xlu0 %v2662_v28 }
 0x2a0   : > { %1662 = vrot.lane.b32.xlu1 %v4494_v50, %s4288_s23 }
 0x2a9   : > { %1666 = vrot.lane.b32.xlu0 %v4490_v48, %s4289_s24 }
 0x2ec   : > { %v2619_v6 = vpop.xlane.xlu0 %2618 }
 0x2ed   : > { %v2665_v56 = vsub.f32 %v4988_v23, %v2619_v6 }
 0x2ef   : > { %v2681_v24 = vmul.f32 1.442695, %v2665_v56 }
 0x2f0   : > { %v2622_v25 = vpop.xlane.xlu1 %2621  ;;  %v2625_v40 = vpop.xlane.xlu0 %2624 }
 0x2f1   : > { %4208 = vpow2.f32 %v2681_v24  ;;  %v2666_v41 = vsub.f32 %v4994_v33, %v2622_v25  ;;  %v2667_v48 = vsub.f32 %v4990_v18, %v2625_v40 }
 0x2f3   : > { %v2683_v42 = vmul.f32 1.442695, %v2666_v41  ;;  %v2685_v29 = vmul.f32 1.442695, %v2667_v48 }
 0x2f4   : > { %v2628_v32 = vpop.xlane.xlu0 %2627 }
 0x2f5   : > { %4210 = vpow2.f32 %v2683_v42  ;;  %v2668_v37 = vsub.f32 %v4996_v47, %v2628_v32 }
 0x2f6   : > { %4212 = vpow2.f32 %v2685_v29 }
 0x2f7   : > { %v2687_v43 = vmul.f32 1.442695, %v2668_v37 }
 0x2f9   : > { %4214 = vpow2.f32 %v2687_v43 }
 0x2fe   : > { %v5070_v30 = vpop.eup %4208 }
 0x2ff   : > { %v2713_v23 = vsel %vm2224_vm1, %v5070_v30, 0.0 }
 0x300   : > { %2714 = vadd.xlane.f32.xlu1 %v2713_v23 }
 0x302   : > { %v5074_v38 = vpop.eup %4210 }
 0x303   : > { %v5076_v33 = vpop.eup %4212  ;;  %v2716_v18 = vsel %vm2224_vm1, %v5074_v38, 0.0 }
 0x304   : > { %v2631_v63 = vpop.xlane.xlu1 %2630  ;;  %2717 = vadd.xlane.f32.xlu0 %v2716_v18  ;;  %v2719_v47 = vsel %vm2224_vm1, %v5076_v33, 0.0 }
 0x305   : > { %v2669_v22 = vsub.f32 %v5004_v45, %v2631_v63  ;;  %2720 = vadd.xlane.f32.xlu1 %v2719_v47 }
 0x306   : > { %v5083_v26 = vpop.eup %4214 }
 0x307   : > { %v2689_v39 = vmul.f32 1.442695, %v2669_v22  ;;  %v2722_v7 = vsel %vm2224_vm1, %v5083_v26, 0.0 }
 0x308   : > { %v2637_v52 = vpop.xlane.xlu1 %2636  ;;  %v2634_v15 = vpop.xlane.xlu0 %2633  ;;  %2723 = vadd.xlane.f32.xlu0 %v2722_v7 }
 0x309   : > { %4216 = vpow2.f32 %v2689_v39  ;;  %v2671_v17 = vsub.f32 %v5006_v14, %v2637_v52  ;;  %v2670_v58 = vsub.f32 %v5010_v44, %v2634_v15 }
 0x30b   : > { %v2693_v59 = vmul.f32 1.442695, %v2671_v17  ;;  %v2691_v2 = vmul.f32 1.442695, %v2670_v58 }
 0x30c   : > { %v2643_v3 = vpop.xlane.xlu1 %2642  ;;  %v2640_v62 = vpop.xlane.xlu0 %2639 }
 0x30d   : > { %4218 = vpow2.f32 %v2693_v59  ;;  %v2673_v45 = vsub.f32 %v5018_v49, %v2643_v3  ;;  %v2672_v8 = vsub.f32 %v5012_v19, %v2640_v62 }
 0x30e   : > { %4220 = vpow2.f32 %v2691_v2 }
 0x30f   : > { %v2697_v13 = vmul.f32 1.442695, %v2673_v45  ;;  %v2695_v31 = vmul.f32 1.442695, %v2672_v8 }
 0x310   : > { %v2649_v9 = vpop.xlane.xlu1 %2648  ;;  %v2646_v0 = vpop.xlane.xlu0 %2645 }
 0x311   : > { %4222 = vpow2.f32 %v2697_v13  ;;  %v2675_v57 = vsub.f32 %v5020_v34, %v2649_v9  ;;  %v2674_v14 = vsub.f32 %v5026_v54, %v2646_v0 }
 0x312   : > { %4224 = vpow2.f32 %v2695_v31 }
 0x313   : > { %v2701_v44 = vmul.f32 1.442695, %v2675_v57  ;;  %v2699_v16 = vmul.f32 1.442695, %v2674_v14 }
 0x314   : > { %v2655_v51 = vpop.xlane.xlu1 %2654  ;;  %v2652_v27 = vpop.xlane.xlu0 %2651 }
 0x315   : > { %4226 = vpow2.f32 %v2701_v44  ;;  %v2677_v49 = vsub.f32 %v5034_v55, %v2655_v51  ;;  %v2676_v19 = vsub.f32 %v5028_v60, %v2652_v27 }
 0x316   : > { %v5095_v28 = vpop.eup %4216  ;;  %4228 = vpow2.f32 %v2699_v16 }
 0x317   : > { %v2703_v6 = vmul.f32 1.442695, %v2676_v19  ;;  %v2725_v56 = vsel %vm2224_vm1, %v5095_v28, 0.0  ;;  %v2705_v54 = vmul.f32 1.442695, %v2677_v49 }
 0x318   : > { %v2661_v34 = vpop.xlane.xlu1 %2660  ;;  %v2658_v24 = vpop.xlane.xlu0 %2657  ;;  %2726 = vadd.xlane.f32.xlu0 %v2725_v56 }
 0x319   : > { %v2679_v25 = vsub.f32 %v5036_v53, %v2661_v34  ;;  %4230 = vpow2.f32 %v2703_v6  ;;  %v2678_v2 = vsub.f32 %v5042_v21, %v2658_v24  ;;  %v1704_v34 = vcombine.low %v5056_v46, %v5062_v35 }
 0x31a   : > { %v5100_v40 = vpop.eup %4218  ;;  %4232 = vpow2.f32 %v2705_v54 }
 0x31b   : > { %v5102_v41 = vpop.eup %4220  ;;  %v2731_v60 = vsel %vm2224_vm1, %v5100_v40, 0.0  ;;  %v2709_v42 = vmul.f32 1.442695, %v2679_v25  ;;  %v2707_v3 = vmul.f32 1.442695, %v2678_v2  ;;  %v1712_v54 = vrot.slane %v1704_v34, %v4521_v1 }
 0x31c   : > { %v2728_v55 = vsel %vm2224_vm1, %v5102_v41, 0.0  ;;  %v2664_v48 = vpop.xlane.xlu0 %2663  ;;  %2732 = vadd.xlane.f32.xlu0 %v2731_v60  ;;  %v5148_v8 = vpop.permute.xlu1 %1662 }
 0x31d   : > { %2729 = vadd.xlane.f32.xlu1 %v2728_v55  ;;  %v2680_v29 = vsub.f32 %v5044_v61, %v2664_v48  ;;  %4234 = vpow2.f32 %v2709_v42 }
 0x31e   : > { %v5109_v32 = vpop.eup %4222 }
 0x31f   : > { %v5111_v53 = vpop.eup %4224  ;;  %v2737_v37 = vsel %vm2224_vm1, %v5109_v32, 0.0  ;;  %v2711_v23 = vmul.f32 1.442695, %v2680_v29 }
 0x320   : > { %v2734_v43 = vsel %vm2224_vm1, %v5111_v53, 0.0  ;;  %v1667_v13 = vpop.permute.xlu0 %1666 }
 0x321   : > { %2738 = vadd.xlane.f32.xlu1 %v2737_v37  ;;  %2735 = vadd.xlane.f32.xlu0 %v2734_v43  ;;  %4236 = vpow2.f32 %v2711_v23  ;;  %v1720_v6 = vcombine.low %v5060_v12, %v1667_v13 }
 0x322   : > { %v5117_v18 = vpop.eup %4226  ;;  %4238 = vpow2.f32 %v2707_v3 }
 0x323   : > { %v5119_v63 = vpop.eup %4228  ;;  %v2743_v61 = vsel %vm2224_vm1, %v5117_v18, 0.0 }
 0x324   : > { %v2740_v47 = vsel %vm2224_vm1, %v5119_v63, 0.0 }
 0x325   : > { %2744 = vadd.xlane.f32.xlu1 %v2743_v61  ;;  %2741 = vadd.xlane.f32.xlu0 %v2740_v47  ;;  %v1840_v47 = vcombine.low %v5058_v11, %v5148_v8 }
 0x326   : > { %v5125_v22 = vpop.eup %4230 }
 0x327   : > { %v2746_v39 = vsel %vm2224_vm1, %v5125_v22, 0.0  ;;  %v5129_v7 = vpop.eup %4232 }
 0x328   : > { %v2749_v52 = vsel %vm2224_vm1, %v5129_v7, 0.0 }
 0x329   : > { %2747 = vadd.xlane.f32.xlu0 %v2746_v39  ;;  %v1841_v39 = vcombine.high %v5058_v11, %v5148_v8 }
 0x32a   : > { %v5133_v15 = vpop.eup %4234 }
 0x32b   : > { %v2755_v17 = vsel %vm2224_vm1, %v5133_v15, 0.0 }
 0x32d   : > { %2750 = vadd.xlane.f32.xlu0 %v2749_v52 }
 0x32e   : > { %v5137_v58 = vpop.eup %4236 }
 0x32f   : > { %v2758_v59 = vsel %vm2224_vm1, %v5137_v58, 0.0  ;;  %v5144_v62 = vpop.eup %4238 }
 0x330   : > { %v2752_v45 = vsel %vm2224_vm1, %v5144_v62, 0.0 }
 0x331   : > { %2756 = vadd.xlane.f32.xlu0 %v2755_v17 }
 0x335   : > { %2759 = vadd.xlane.f32.xlu0 %v2758_v59 }
 0x336   : > { %1668 = vrot.lane.b32.xlu1 %v4494_v50, %s4289_s24 }
 0x35a   : > { %2753 = vadd.xlane.f32.xlu1 %v2752_v45 }
 0x389   : > { %v2715_v31 = vpop.xlane.xlu1 %2714 }
 0x38a   : > { %4240 = vrcp.f32 %v2715_v31 }
 0x38d   : > { %v2718_v9 = vpop.xlane.xlu0 %2717 }
 0x38e   : > { %v2721_v0 = vpop.xlane.xlu1 %2720  ;;  %4242 = vrcp.f32 %v2718_v9 }
 0x38f   : > { %4244 = vrcp.f32 %v2721_v0 }
 0x391   : > { %v2724_v50 = vpop.xlane.xlu0 %2723 }
 0x392   : > { %4246 = vrcp.f32 %v2724_v50  ;;  %v1848_v50 = vrot.slane %v1840_v47, %v4521_v1 }
 0x397   : > { %v4241_v21 = vpop.eup %4240 }
 0x398   : > { %v2762_v14 = vmul.f32 %v4241_v21, %v5070_v30  ;;  %v1721_v30 = vcombine.high %v5060_v12, %v1667_v13  ;;  %v1855_v21 = vrot.slane %v1841_v39, %v4521_v1 }
 0x39a   : > { %v1735_v12 = vrot.slane %v1721_v30, %v4521_v1 }
 0x39b   : > { %v4243_v57 = vpop.eup %4242 }
 0x39c   : > { %v2764_v44 = vmul.f32 %v4243_v57, %v5074_v38  ;;  %v4245_v16 = vpop.eup %4244 }
 0x39d   : > { %v2766_v49 = vmul.f32 %v4245_v16, %v5076_v33  ;;  %v1705_v33 = vcombine.high %v5056_v46, %v5062_v35 }
 0x39e   : > { %v2793_v51 = vpack.c.bf16 %v2764_v44, %v2762_v14 }
 0x39f   : > { %v4247_v27 = vpop.eup %4246  ;;  %v1719_v46 = vrot.slane %v1705_v33, %v4521_v1 }
 0x3a0   : > { %4076 = vmatmul.mubr.msk.bf16.vlgmr.msra.gmra.mxu0 %vm2224_vm1, %v2793_v51  ;;  %v2768_v19 = vmul.f32 %v4247_v27, %v5083_v26  ;;  %v1728_v26 = vrot.slane %v1720_v6, %v4521_v1 }
 0x3a1   : > { %v2727_v56 = vpop.xlane.xlu0 %2726  ;;  %4086 = vmatpush3.bf16.msra.mxu0 %v4984_v10  ;;  %4087 = vmatprep.mubr.msk.bf16.mxu0 %vm4282_vm0, %v4281_v4  ;;  %v1784_v60 = vcombine.low %v1719_v46, %v1735_v12  ;;  %v1785_v55 = vcombine.high %v1719_v46, %v1735_v12 }
 0x3a2   : > { %v2794_v38 = vpack.c.bf16 %v2768_v19, %v2766_v49  ;;  %4097 = vmatprep.subr.bf16.mxu0 %v4281_v4  ;;  %4248 = vrcp.f32 %v2727_v56  ;;  %v1768_v35 = vcombine.low %v1712_v54, %v1728_v26  ;;  %v1769_v25 = vcombine.high %v1712_v54, %v1728_v26 }
 0x3a3   : > { %v1792_v37 = vrot.slane %v1784_v60, %v4524_v5  ;;  %v1799_v43 = vrot.slane %v1785_v55, %v4524_v5 }
 0x3a4   : > { %4082 = vmatmul.mubr.msk.bf16.vlgmr.msra.gmra.mxu1 %vm2224_vm1, %v2794_v38  ;;  %v1776_v42 = vrot.slane %v1768_v35, %v4524_v5  ;;  %v1783_v29 = vrot.slane %v1769_v25, %v4524_v5 }
 0x3a5   : > { %v2733_v10 = vpop.xlane.xlu0 %2732  ;;  %4092 = vmatpush3.bf16.msra.mxu1 %v4986_v20  ;;  %4093 = vmatprep.mubr.msk.bf16.mxu1 %vm4282_vm0, %v4281_v4  ;;  %v3908_v2 = vcombine.low %v1792_v37, %v1799_v43  ;;  %v3910_v3 = vcombine.high %v1792_v37, %v1799_v43 }
 0x3a6   : > { %v2730_v24 = vpop.xlane.xlu1 %2729  ;;  %4103 = vmatprep.subr.bf16.mxu1 %v4281_v4  ;;  %v3904_v17 = vcombine.low %v1776_v42, %v1783_v29  ;;  %v3906_v59 = vcombine.high %v1776_v42, %v1783_v29 }
 0x3a7   : > { %4250 = vrcp.f32 %v2730_v24  ;;  %v1991_v16 = vrot.slane %v3908_v2, %v4521_v1  ;;  %v2007_v51 = vrot.slane %v3910_v3, %v4521_v1 }
 0x3a8   : > { %4252 = vrcp.f32 %v2733_v10  ;;  %v1959_v8 = vrot.slane %v3904_v17, %v4521_v1 }
 0x3a9   : > { %v2056_v54 = vcombine.low %v1991_v16, %v2007_v51 }
 0x3aa   : > { %v2739_v48 = vpop.xlane.xlu1 %2738  ;;  %v2736_v20 = vpop.xlane.xlu0 %2735 }
 0x3ab   : > { %4254 = vrcp.f32 %v2736_v20  ;;  %v2064_v43 = vrot.slane %v2056_v54, %v4524_v5 }
 0x3ae   : > { %v2745_v23 = vpop.xlane.xlu1 %2744  ;;  %v2742_v61 = vpop.xlane.xlu0 %2741 }
 0x3af   : > { %v4249_v52 = vpop.eup %4248  ;;  %4256 = vrcp.f32 %v2745_v23  ;;  %v2057_v23 = vcombine.high %v1991_v16, %v2007_v51 }
 0x3b0   : > { %4258 = vrcp.f32 %v2742_v61  ;;  %v2770_v11 = vmul.f32 %v4249_v52, %v5095_v28 }
 0x3b2   : > { %v1669_v45 = vpop.permute.xlu1 %1668  ;;  %v2748_v9 = vpop.xlane.xlu0 %2747 }
 0x3b3   : > { %v1856_v13 = vcombine.low %v5064_v36, %v1669_v45  ;;  %v1857_v31 = vcombine.high %v5064_v36, %v1669_v45  ;;  %4260 = vrcp.f32 %v2748_v9  ;;  %v1975_v36 = vrot.slane %v3906_v59, %v4521_v1 }
 0x3b4   : > { %v4251_v0 = vpop.eup %4250  ;;  %4262 = vrcp.f32 %v2739_v48 }
 0x3b5   : > { %v1864_v57 = vrot.slane %v1856_v13, %v4521_v1  ;;  %v1871_v14 = vrot.slane %v1857_v31, %v4521_v1  ;;  %v2772_v44 = vmul.f32 %v4251_v0, %v5102_v41  ;;  %v4253_v27 = vpop.eup %4252  ;;  %v2024_v24 = vcombine.low %v1959_v8, %v1975_v36 }
 0x3b6   : > { %v5194_v56 = vpop.xlane.xlu0 %2750  ;;  %v2774_v10 = vmul.f32 %v4253_v27, %v5100_v40  ;;  %v2025_v20 = vcombine.high %v1959_v8, %v1975_v36 }
 0x3b7   : > { %v1904_v49 = vcombine.low %v1848_v50, %v1864_v57  ;;  %v1905_v19 = vcombine.high %v1848_v50, %v1864_v57  ;;  %v1920_v6 = vcombine.low %v1855_v21, %v1871_v14  ;;  %v1921_v28 = vcombine.high %v1855_v21, %v1871_v14 }
 0x3b8   : > { %v2795_v30 = vpack.c.bf16 %v2772_v44, %v2770_v11  ;;  %v4255_v38 = vpop.eup %4254  ;;  %v2032_v37 = vrot.slane %v2024_v24, %v4524_v5  ;;  %v2039_v50 = vrot.slane %v2025_v20, %v4524_v5  ;;  %v2071_v21 = vrot.slane %v2057_v23, %v4524_v5 }
 0x3b9   : > { %v1912_v34 = vrot.slane %v1904_v49, %v4524_v5  ;;  %v1919_v41 = vrot.slane %v1905_v19, %v4524_v5  ;;  %v1928_v33 = vrot.slane %v1920_v6, %v4524_v5  ;;  %v1935_v26 = vrot.slane %v1921_v28, %v4524_v5 }
 0x3ba   : > { %4088 = vmatmul.mubr.msk.bf16.vlgmr.msra.gmra.mxu0 %vm2224_vm1, %v2795_v30  ;;  %v2776_v12 = vmul.f32 %v4255_v38, %v5111_v53  ;;  %v2757_v55 = vpop.xlane.xlu0 %2756  ;;  %v2076_v8 = vcombine.low %v2032_v37, %v2064_v43  ;;  %v2077_v14 = vcombine.high %v2032_v37, %v2064_v43  ;;  %v2078_v28 = vcombine.low %v2039_v50, %v2071_v21 }
 0x3bb   : > { %v3912_v46 = vcombine.low %v1912_v34, %v1919_v41  ;;  %v3914_v35 = vcombine.high %v1912_v34, %v1919_v41  ;;  %v3916_v25 = vcombine.low %v1928_v33, %v1935_v26  ;;  %v3918_v60 = vcombine.high %v1928_v33, %v1935_v26  ;;  %4099 = vmatprep.mubr.msk.bf16.mxu0 %vm4282_vm0, %v4281_v4 }
 0x3bc   : > { %v2796_v48 = vpack.c.bf16 %v2776_v12, %v2774_v10  ;;  %4264 = vrcp.f32 %v2757_v55  ;;  %v4257_v61 = vpop.eup %4256  ;;  %v2079_v30 = vcombine.high %v2039_v50, %v2071_v21 }
 0x3bd   : > { %v2095_v42 = vrot.slane %v3912_v46, %v4521_v1  ;;  %v2111_v29 = vrot.slane %v3914_v35, %v4521_v1  ;;  %v2127_v40 = vrot.slane %v3916_v25, %v4521_v1  ;;  %v2143_v53 = vrot.slane %v3918_v60, %v4521_v1  ;;  %v4259_v2 = vpop.eup %4258 }
 0x3be   : > { %4094 = vmatmul.mubr.msk.bf16.vlgmr.msra.gmra.mxu1 %vm2224_vm1, %v2796_v48  ;;  %v2760_v47 = vpop.xlane.xlu0 %2759  ;;  %v2780_v36 = vmul.f32 %v4259_v2, %v5119_v63  ;;  %v2782_v16 = vmul.f32 %v4257_v61, %v5117_v18 }
 0x3bf   : > { %v2160_v39 = vcombine.low %v2095_v42, %v2111_v29  ;;  %v2192_v52 = vcombine.low %v2127_v40, %v2143_v53  ;;  %4105 = vmatprep.mubr.msk.bf16.mxu1 %vm4282_vm0, %v4281_v4  ;;  %v2161_v17 = vcombine.high %v2095_v42, %v2111_v29  ;;  %v2193_v59 = vcombine.high %v2127_v40, %v2143_v53 }
 0x3c0   : > { %4266 = vrcp.f32 %v2760_v47  ;;  %v4261_v3 = vpop.eup %4260 }
 0x3c1   : > { %v2168_v45 = vrot.slane %v2160_v39, %v4524_v5  ;;  %v2200_v13 = vrot.slane %v2192_v52, %v4524_v5  ;;  %v2175_v31 = vrot.slane %v2161_v17, %v4524_v5  ;;  %v2207_v9 = vrot.slane %v2193_v59, %v4524_v5  ;;  %v4263_v11 = vpop.eup %4262 }
 0x3c2   : > { %v2784_v0 = vmul.f32 %v4261_v3, %v5125_v22  ;;  %v2778_v6 = vmul.f32 %v4263_v11, %v5109_v32  ;;  %4268 = vrcp.f32 %v5194_v56 }
 0x3c3   : > { %v2212_v57 = vcombine.low %v2168_v45, %v2200_v13  ;;  %v2213_v44 = vcombine.high %v2168_v45, %v2200_v13  ;;  %v2214_v49 = vcombine.low %v2175_v31, %v2207_v9  ;;  %v2215_v19 = vcombine.high %v2175_v31, %v2207_v9 }
 0x3c4   : > { %v2798_v22 = vpack.c.bf16 %v2784_v0, %v2782_v16  ;;  %v2797_v38 = vpack.c.bf16 %v2780_v36, %v2778_v6 }
 0x3c5   : > { %v2220_v51 = vpack.c.bf16 %v2212_v57, %v2076_v8  ;;  %v2221_v27 = vpack.c.bf16 %v2213_v44, %v2077_v14  ;;  %v2222_v34 = vpack.c.bf16 %v2214_v49, %v2078_v28  ;;  %v2223_v63 = vpack.c.bf16 %v2215_v19, %v2079_v30 }
 0x3c7   : > { %4098 = vmatpush3.bf16.msra.mxu0 %v2220_v51  ;;  %4104 = vmatpush3.bf16.msra.mxu1 %v2221_v27 }
 0x3c8   : > { %4109 = vmatprep.subr.bf16.mxu0 %v4281_v4  ;;  %4115 = vmatprep.subr.bf16.mxu1 %v4281_v4 }
 0x3c9   : > { %v4265_v18 = vpop.eup %4264 }
 0x3ca   : > { %4100 = vmatmul.mubr.msk.bf16.vlgmr.msra.gmra.mxu0 %vm2224_vm1, %v2797_v38  ;;  %4106 = vmatmul.mubr.msk.bf16.vlgmr.msra.gmra.mxu1 %vm2224_vm1, %v2798_v22  ;;  %v2790_v41 = vmul.f32 %v4265_v18, %v5133_v15 }
 0x3cb   : > { %4110 = vmatpush3.bf16.msra.mxu0 %v2222_v34  ;;  %4116 = vmatpush3.bf16.msra.mxu1 %v2223_v63 }
 0x3cc   : > { %4117 = vmatprep.mubr.msk.bf16.mxu1 %vm4282_vm0, %v4281_v4  ;;  %4111 = vmatprep.mubr.msk.bf16.mxu0 %vm4282_vm0, %v4281_v4 }
 0x3cd   : > { %v4267_v32 = vpop.eup %4266 }
 0x3ce   : > { %v2792_v33 = vmul.f32 %v4267_v32, %v5137_v58 }
 0x3cf   : > { %v4269_v12 = vpop.eup %4268 }
 0x3d0   : > { %v2800_v26 = vpack.c.bf16 %v2792_v33, %v2790_v41  ;;  %v2786_v54 = vmul.f32 %v4269_v12, %v5129_v7 }
 0x3d2   : > { %4118 = vmatmul.mubr.msk.bf16.vlgmr.msra.gmra.mxu1 %vm2224_vm1, %v2800_v26 }
 0x3e3   : > { %v2754_v10 = vpop.xlane.xlu1 %2753 }
 0x3e4   : > { %4270 = vrcp.f32 %v2754_v10 }
 0x3f1   : > { %v4271_v24 = vpop.eup %4270 }
 0x3f2   : > { %v2788_v46 = vmul.f32 %v4271_v24, %v5144_v62 }
 0x3f4   : > { %v2799_v35 = vpack.c.bf16 %v2788_v46, %v2786_v54 }
 0x3f6   : > { %4112 = vmatmul.mubr.msk.bf16.vlgmr.msra.gmra.mxu0 %vm2224_vm1, %v2799_v35 }
 0x460   : > { %v2838_v4 = vpop.f32.mrf.mxu0 }
 0x462   : > { %v4077_v15 = vpop.f32.mrf.mxu0 }
 0x464   : > { %v2841_v25 = vpop.f32.mrf.mxu0  ;;  %v2882_v58 = vpop.f32.mrf.mxu1 }
 0x466   : > { %v4078_v60 = vpop.f32.mrf.mxu0  ;;  %v4083_v55 = vpop.f32.mrf.mxu1 }
 0x468   : > { %v2885_v48 = vpop.f32.mrf.mxu1 }
 0x46a   : > { %v4084_v20 = vpop.f32.mrf.mxu1 }
 0x47a   : > { %v2926_v56 = vpop.f32.mrf.mxu0 }
 0x47b   : > { %v3153_v29 = vcombine.low %v2838_v4, %v2926_v56  ;;  %v3154_v40 = vcombine.high %v2838_v4, %v2926_v56 }
 0x47c   : > { %v4089_v42 = vpop.f32.mrf.mxu0 }
 0x47d   : > { %v3161_v61 = vrot.slane %v3153_v29, %v4521_v1  ;;  %v3168_v47 = vrot.slane %v3154_v40, %v4521_v1 }
 0x47e   : > { %v2929_v53 = vpop.f32.mrf.mxu0  ;;  %v2970_v37 = vpop.f32.mrf.mxu1 }
 0x47f   : > { %v3169_v7 = vcombine.low %v2882_v58, %v2970_v37  ;;  %v3170_v43 = vcombine.high %v2882_v58, %v2970_v37  ;;  %v3289_v17 = vcombine.low %v2841_v25, %v2929_v53  ;;  %v3290_v59 = vcombine.high %v2841_v25, %v2929_v53 }
 0x480   : > { %v4090_v62 = vpop.f32.mrf.mxu0  ;;  %v4095_v23 = vpop.f32.mrf.mxu1 }
 0x481   : > { %v3177_v39 = vrot.slane %v3169_v7, %v4521_v1  ;;  %v3184_v52 = vrot.slane %v3170_v43, %v4521_v1  ;;  %v3297_v14 = vrot.slane %v3289_v17, %v4521_v1  ;;  %v3304_v44 = vrot.slane %v3290_v59, %v4521_v1 }
 0x482   : > { %v2973_v2 = vpop.f32.mrf.mxu1 }
 0x483   : > { %v3217_v3 = vcombine.low %v3161_v61, %v3177_v39  ;;  %v3218_v45 = vcombine.high %v3161_v61, %v3177_v39  ;;  %v3233_v13 = vcombine.low %v3168_v47, %v3184_v52  ;;  %v3234_v31 = vcombine.high %v3168_v47, %v3184_v52 }
 0x484   : > { %v3305_v9 = vcombine.low %v2885_v48, %v2973_v2  ;;  %v3306_v0 = vcombine.high %v2885_v48, %v2973_v2  ;;  %v4096_v50 = vpop.f32.mrf.mxu1 }
 0x485   : > { %v3225_v21 = vrot.slane %v3217_v3, %v4524_v5  ;;  %v3232_v11 = vrot.slane %v3218_v45, %v4524_v5  ;;  %v3241_v8 = vrot.slane %v3233_v13, %v4524_v5  ;;  %v3248_v57 = vrot.slane %v3234_v31, %v4524_v5 }
 0x486   : > { %v3313_v36 = vrot.slane %v3305_v9, %v4521_v1  ;;  %v3320_v16 = vrot.slane %v3306_v0, %v4521_v1 }
 0x487   : > { %v3935_v51 = vcombine.low %v3225_v21, %v3232_v11  ;;  %v3937_v27 = vcombine.high %v3225_v21, %v3232_v11  ;;  %v3939_v49 = vcombine.low %v3241_v8, %v3248_v57  ;;  %v3941_v19 = vcombine.high %v3241_v8, %v3248_v57 }
 0x488   : > { %v3353_v6 = vcombine.low %v3297_v14, %v3313_v36  ;;  %v3354_v22 = vcombine.high %v3297_v14, %v3313_v36  ;;  %v3369_v28 = vcombine.low %v3304_v44, %v3320_v16  ;;  %v3370_v30 = vcombine.high %v3304_v44, %v3320_v16 }
 0x489   : > { %v3433_v38 = vrot.slane %v3935_v51, %v4521_v1  ;;  %v3449_v34 = vrot.slane %v3937_v27, %v4521_v1  ;;  %v3465_v63 = vrot.slane %v3939_v49, %v4521_v1  ;;  %v3481_v18 = vrot.slane %v3941_v19, %v4521_v1 }
 0x48a   : > { %v3361_v32 = vrot.slane %v3353_v6, %v4524_v5  ;;  %v3368_v41 = vrot.slane %v3354_v22, %v4524_v5  ;;  %v3377_v33 = vrot.slane %v3369_v28, %v4524_v5  ;;  %v3384_v26 = vrot.slane %v3370_v30, %v4524_v5  ;;  %v3014_v10 = vpop.f32.mrf.mxu0  ;;  %v3058_v12 = vpop.f32.mrf.mxu1 }
 0x48b   : > { %v3490_v24 = vcombine.high %v3433_v38, %v3449_v34  ;;  %v3522_v54 = vcombine.high %v3465_v63, %v3481_v18  ;;  %v3489_v46 = vcombine.low %v3433_v38, %v3449_v34  ;;  %v3521_v35 = vcombine.low %v3465_v63, %v3481_v18 }
 0x48c   : > { %v3943_v4 = vcombine.low %v3361_v32, %v3368_v41  ;;  %v3945_v15 = vcombine.high %v3361_v32, %v3368_v41  ;;  %v3947_v25 = vcombine.low %v3377_v33, %v3384_v26  ;;  %v3949_v58 = vcombine.high %v3377_v33, %v3384_v26  ;;  %v4101_v60 = vpop.f32.mrf.mxu0  ;;  %v4107_v55 = vpop.f32.mrf.mxu1 }
 0x48d   : > { %v5260_v48 = vrot.slane %v3489_v46, %v4524_v5  ;;  %v5263_v20 = vrot.slane %v3521_v35, %v4524_v5  ;;  %v3504_v7 = vrot.slane %v3490_v24, %v4524_v5  ;;  %v3536_v43 = vrot.slane %v3522_v54, %v4524_v5 }
 0x48e   : > { %v3569_v56 = vrot.slane %v3943_v4, %v4521_v1  ;;  %v3585_v42 = vrot.slane %v3945_v15, %v4521_v1  ;;  %v3601_v29 = vrot.slane %v3947_v25, %v4521_v1  ;;  %v3617_v40 = vrot.slane %v3949_v58, %v4521_v1  ;;  %v3017_v53 = vpop.f32.mrf.mxu0  ;;  %v3061_v37 = vpop.f32.mrf.mxu1 }
 0x48f   : > { %v3553_v62 = vcombine.low %v5260_v48, %v5263_v20  ;;  %v3555_v31 = vcombine.low %v3504_v7, %v3536_v43  ;;  %v3554_v50 = vcombine.high %v5260_v48, %v5263_v20  ;;  %v3556_v16 = vcombine.high %v3504_v7, %v3536_v43 }
 0x490   : > { %v4102_v23 = vpop.f32.mrf.mxu0  ;;  %v4108_v61 = vpop.f32.mrf.mxu1  ;;  %v3626_v47 = vcombine.high %v3569_v56, %v3585_v42  ;;  %v3658_v39 = vcombine.high %v3601_v29, %v3617_v40  ;;  %v3625_v52 = vcombine.low %v3569_v56, %v3585_v42  ;;  %v3657_v17 = vcombine.low %v3601_v29, %v3617_v40 }
 0x492   : > { %v3146_v59 = vpop.f32.mrf.mxu1  ;;  %v3640_v2 = vrot.slane %v3626_v47, %v4524_v5  ;;  %v3672_v3 = vrot.slane %v3658_v39, %v4524_v5  ;;  %v5276_v45 = vrot.slane %v3625_v52, %v4524_v5  ;;  %v5279_v13 = vrot.slane %v3657_v17, %v4524_v5 }
 0x493   : > { %v3201_v27 = vcombine.low %v3058_v12, %v3146_v59  ;;  %v3202_v49 = vcombine.high %v3058_v12, %v3146_v59 }
 0x494   : > { %v4119_v9 = vpop.f32.mrf.mxu1  ;;  %v3691_v0 = vcombine.low %v3640_v2, %v3672_v3  ;;  %v3690_v21 = vcombine.high %v5276_v45, %v5279_v13  ;;  %v3689_v11 = vcombine.low %v5276_v45, %v5279_v13  ;;  %v3692_v44 = vcombine.high %v3640_v2, %v3672_v3 }
 0x495   : > { %v3209_v30 = vrot.slane %v3201_v27, %v4521_v1  ;;  %v3216_v38 = vrot.slane %v3202_v49, %v4521_v1 }
 0x496   : > { %v3149_v8 = vpop.f32.mrf.mxu1  ;;  %v4146_v57 = vpack.i.bf16 %v3691_v0, %v3555_v31  ;;  %v4141_v14 = vpack.i.bf16 %v3690_v21, %v3554_v50  ;;  %v4151_v51 = vpack.i.bf16 %v3692_v44, %v3556_v16 }
 0x497   : > { %v3337_v18 = vcombine.low %v3061_v37, %v3149_v8  ;;  %v3338_v32 = vcombine.high %v3061_v37, %v3149_v8 }
 0x498   : > { %4147 = vrot.lane.b32.xlu0 %v4146_v57, %s4288_s23  ;;  %4142 = vrot.lane.b32.xlu1 %v4141_v14, %s4289_s24  ;;  %v4120_v36 = vpop.f32.mrf.mxu1 }
 0x499   : > { %v3345_v58 = vrot.slane %v3337_v18, %v4521_v1  ;;  %v3352_v60 = vrot.slane %v3338_v32, %v4521_v1 }
 0x49c   : > { %4152 = vrot.lane.b32.xlu1 %v4151_v51, %s4287_s22 }
 0x4b6   : > { %v3102_v19 = vpop.f32.mrf.mxu0 }
 0x4b7   : > { %v3185_v6 = vcombine.low %v3014_v10, %v3102_v19  ;;  %v3186_v22 = vcombine.high %v3014_v10, %v3102_v19 }
 0x4b8   : > { %v4113_v28 = vpop.f32.mrf.mxu0 }
 0x4b9   : > { %v3193_v34 = vrot.slane %v3185_v6, %v4521_v1  ;;  %v3200_v63 = vrot.slane %v3186_v22, %v4521_v1 }
 0x4ba   : > { %v3105_v41 = vpop.f32.mrf.mxu0 }
 0x4bb   : > { %v3249_v33 = vcombine.low %v3193_v34, %v3209_v30  ;;  %v3250_v26 = vcombine.high %v3193_v34, %v3209_v30  ;;  %v3265_v24 = vcombine.low %v3200_v63, %v3216_v38  ;;  %v3266_v54 = vcombine.high %v3200_v63, %v3216_v38 }
 0x4bc   : > { %v3321_v12 = vcombine.low %v3017_v53, %v3105_v41  ;;  %v3322_v46 = vcombine.high %v3017_v53, %v3105_v41  ;;  %v4114_v35 = vpop.f32.mrf.mxu0 }
 0x4bd   : > { %v3257_v10 = vrot.slane %v3249_v33, %v4524_v5  ;;  %v3264_v4 = vrot.slane %v3250_v26, %v4524_v5  ;;  %v3273_v15 = vrot.slane %v3265_v24, %v4524_v5  ;;  %v3280_v25 = vrot.slane %v3266_v54, %v4524_v5 }
 0x4be   : > { %v3329_v55 = vrot.slane %v3321_v12, %v4521_v1  ;;  %v3336_v56 = vrot.slane %v3322_v46, %v4521_v1 }
 0x4bf   : > { %v3936_v42 = vcombine.low %v3257_v10, %v3264_v4  ;;  %v3938_v29 = vcombine.high %v3257_v10, %v3264_v4  ;;  %v3940_v40 = vcombine.low %v3273_v15, %v3280_v25  ;;  %v3942_v53 = vcombine.high %v3273_v15, %v3280_v25 }
 0x4c0   : > { %v3385_v37 = vcombine.low %v3329_v55, %v3345_v58  ;;  %v3386_v7 = vcombine.high %v3329_v55, %v3345_v58  ;;  %v3401_v43 = vcombine.low %v3336_v56, %v3352_v60  ;;  %v3402_v23 = vcombine.high %v3336_v56, %v3352_v60 }
 0x4c1   : > { %v3440_v61 = vrot.slane %v3936_v42, %v4521_v1  ;;  %v3456_v47 = vrot.slane %v3938_v29, %v4521_v1  ;;  %v3472_v39 = vrot.slane %v3940_v40, %v4521_v1  ;;  %v3488_v52 = vrot.slane %v3942_v53, %v4521_v1 }
 0x4c2   : > { %v3393_v17 = vrot.slane %v3385_v37, %v4524_v5  ;;  %v3400_v59 = vrot.slane %v3386_v7, %v4524_v5  ;;  %v3409_v2 = vrot.slane %v3401_v43, %v4524_v5  ;;  %v3416_v3 = vrot.slane %v3402_v23, %v4524_v5 }
 0x4c3   : > { %v3505_v31 = vcombine.low %v3440_v61, %v3456_v47  ;;  %v3537_v9 = vcombine.low %v3472_v39, %v3488_v52  ;;  %v3506_v27 = vcombine.high %v3440_v61, %v3456_v47  ;;  %v3538_v49 = vcombine.high %v3472_v39, %v3488_v52 }
 0x4c4   : > { %v3944_v0 = vcombine.low %v3393_v17, %v3400_v59  ;;  %v3946_v50 = vcombine.high %v3393_v17, %v3400_v59  ;;  %v3948_v21 = vcombine.low %v3409_v2, %v3416_v3  ;;  %v3950_v8 = vcombine.high %v3409_v2, %v3416_v3 }
 0x4c5   : > { %v3513_v16 = vrot.slane %v3505_v31, %v4524_v5  ;;  %v3545_v51 = vrot.slane %v3537_v9, %v4524_v5  ;;  %v3552_v18 = vrot.slane %v3538_v49, %v4524_v5 }
 0x4c6   : > { %v3576_v57 = vrot.slane %v3944_v0, %v4521_v1  ;;  %v3592_v14 = vrot.slane %v3946_v50, %v4521_v1  ;;  %v3608_v44 = vrot.slane %v3948_v21, %v4521_v1  ;;  %v3624_v36 = vrot.slane %v3950_v8, %v4521_v1 }
 0x4c7   : > { %v3520_v1 = vrot.slane %v3506_v27, %v4524_v5  ;;  %v3558_v32 = vcombine.high %v3513_v16, %v3545_v51  ;;  %v3557_v33 = vcombine.low %v3513_v16, %v3545_v51 }
 0x4c8   : > { %v3641_v19 = vcombine.low %v3576_v57, %v3592_v14  ;;  %v3673_v6 = vcombine.low %v3608_v44, %v3624_v36  ;;  %v3642_v22 = vcombine.high %v3576_v57, %v3592_v14  ;;  %v3674_v28 = vcombine.high %v3608_v44, %v3624_v36 }
 0x4c9   : > { %v3560_v35 = vcombine.high %v3520_v1, %v3552_v18  ;;  %v3559_v10 = vcombine.low %v3520_v1, %v3552_v18 }
 0x4ca   : > { %v3649_v30 = vrot.slane %v3641_v19, %v4524_v5  ;;  %v3681_v38 = vrot.slane %v3673_v6, %v4524_v5  ;;  %v3656_v34 = vrot.slane %v3642_v22, %v4524_v5  ;;  %v3688_v63 = vrot.slane %v3674_v28, %v4524_v5 }
 0x4cc   : > { %v3694_v41 = vcombine.high %v3649_v30, %v3681_v38  ;;  %v3693_v26 = vcombine.low %v3649_v30, %v3681_v38  ;;  %v3696_v12 = vcombine.high %v3656_v34, %v3688_v63  ;;  %v3695_v46 = vcombine.low %v3656_v34, %v3688_v63 }
 0x4ce   : > { %v4161_v24 = vpack.i.bf16 %v3694_v41, %v3558_v32  ;;  %v4156_v54 = vpack.i.bf16 %v3693_v26, %v3557_v33  ;;  %v4171_v4 = vpack.i.bf16 %v3696_v12, %v3560_v35  ;;  %v4166_v15 = vpack.i.bf16 %v3695_v46, %v3559_v10 }
 0x4d0   : > { %4162 = vrot.lane.b32.xlu0 %v4161_v24, %s4285_s20  ;;  %4157 = vrot.lane.b32.xlu1 %v4156_v54, %s4286_s21 }
 0x4d4   : > { %4172 = vrot.lane.b32.xlu0 %v4171_v4, %s4283_s18  ;;  %4167 = vrot.lane.b32.xlu1 %v4166_v15, %s4284_s19 }
 0x50a   : > { %v4143_v5 = vpop.permute.xlu1 %4142  ;;  %v4148_v60 = vpop.permute.xlu0 %4147 }
 0x50b   : > { %v4145_v25 = vunpack.i.h.bf16 %v4143_v5  ;;  %v4144_v58 = vunpack.i.l.bf16 %v4143_v5  ;;  %v4150_v56 = vunpack.i.h.bf16 %v4148_v60  ;;  %v4149_v42 = vunpack.i.l.bf16 %v4148_v60 }
 0x50d   : > { %v3753_v29 = vsel %vm2224_vm1, %v3553_v62, %v4144_v58  ;;  %v3754_v40 = vsel %vm2224_vm1, %v3689_v11, %v4145_v25 }
 0x50e   : > { %v4153_v55 = vpop.permute.xlu1 %4152  ;;  %v3757_v23 = vsel %vm3755_vm2, %v3754_v40, %v4150_v56  ;;  %v3756_v61 = vsel %vm3755_vm2, %v3753_v29, %v4149_v42 }
 0x50f   : > { %v4155_v53 = vunpack.i.h.bf16 %v4153_v55  ;;  %v4154_v37 = vunpack.i.l.bf16 %v4153_v55 }
 0x511   : > { %v3759_v52 = vsel %vm3758_vm3, %v3756_v61, %v4154_v37  ;;  %v3760_v48 = vsel %vm3758_vm3, %v3757_v23, %v4155_v53 }
 0x542   : > { %v4158_v7 = vpop.permute.xlu1 %4157  ;;  %v4163_v43 = vpop.permute.xlu0 %4162 }
 0x543   : > { %v4160_v47 = vunpack.i.h.bf16 %v4158_v7  ;;  %v4159_v39 = vunpack.i.l.bf16 %v4158_v7  ;;  %v4165_v20 = vunpack.i.h.bf16 %v4163_v43  ;;  %v4164_v62 = vunpack.i.l.bf16 %v4163_v43 }
 0x545   : > { %v3762_v17 = vsel %vm3761_vm4, %v3759_v52, %v4159_v39  ;;  %v3763_v59 = vsel %vm3761_vm4, %v3760_v48, %v4160_v47 }
 0x546   : > { %v4168_v45 = vpop.permute.xlu1 %4167  ;;  %v4173_v13 = vpop.permute.xlu0 %4172  ;;  %v3765_v9 = vsel %vm3764_vm5, %v3762_v17, %v4164_v62  ;;  %v3766_v0 = vsel %vm3764_vm5, %v3763_v59, %v4165_v20 }
 0x547   : > { %v4170_v11 = vunpack.i.h.bf16 %v4168_v45  ;;  %v4169_v2 = vunpack.i.l.bf16 %v4168_v45  ;;  %v4175_v3 = vunpack.i.h.bf16 %v4173_v13  ;;  %v4174_v31 = vunpack.i.l.bf16 %v4173_v13 }
 0x549   : > { %v3768_v50 = vsel %vm3767_vm6, %v3765_v9, %v4169_v2  ;;  %v3769_v21 = vsel %vm3767_vm6, %v3766_v0, %v4170_v11 }
 0x54a   : > { %v3771_v8 = vsel %vm3770_vm7, %v3768_v50, %v4174_v31  ;;  %v3772_v57 = vsel %vm3770_vm7, %v3769_v21, %v4175_v3 }
 0x54b   : > { %v3962_v14 = vpack.c.bf16 %v3772_v57, %v3771_v8 }
 0x54d   : > { %3963 = vst [vmem:[%s170_s28] sm:$0xff] %v3962_v14  }
 0x54e PF: > { %s13_s12 = sadd.s32 1, %s4278_s12  }
 0x54f   : > { %p10_p4 = scmp.ge.s32.totalorder %s13_s12, 4  }
 0x551   :  { %12 = sbr.rel (!%p10_p4) target bundleno = 1 (0x1), region = 62 }

// kernel: tds_transformer.13
= control target key start
LH: loop header
LB: loop body
LE: loop exit
PB: predicated region body
PF: predicated region fallthrough
CT: control target
= control target key end

     0   :  { %s1308_s24 = smov 0   ;;  %s1546_s0 = inlined_call_operand.vmem [shape: f32[32,128], index: 0, kind: input, shape index: {}, may-alias: {0,7}]   ;;  %s1547_s1 = inlined_call_operand.vmem [shape: bf16[128,512], index: 1, kind: input, shape index: {}]   ;;  %s1548_s2 = inlined_call_operand.vmem [shape: f32[1,512], index: 2, kind: input, shape index: {}]   ;;  %s1549_s3 = inlined_call_operand.vmem [shape: bf16[512,128], index: 3, kind: input, shape index: {}]   ;;  %s1550_s4 = inlined_call_operand.vmem [shape: f32[1,128], index: 4, kind: input, shape index: {}]   ;;  %s1551_s5 = inlined_call_operand.vmem [shape: f32[1,128], index: 5, kind: input, shape index: {}]   ;;  %s1552_s6 = inlined_call_operand.vmem [shape: f32[1,128], index: 6, kind: input, shape index: {}]   ;;  %s1553_s7 = inlined_call_operand.vmem [shape: f32[32,128], index: 7, kind: output, shape index: {}, may-alias: {0,7}]  }
   0x1 LB: > { %s1044_s25 = sadd.s32 4294967295, %s1265_s24   ;;  %p1048_p0 = scmp.ge.s32.totalorder %s1265_s24, 1  ;;  %s1265_s24 = sphi %s1308_s24, %s17_s24  }
   0x2   : > { %p238_p1 = scmp.lt.s32.totalorder %s1265_s24, 3 }
   0x4   : > { %p239_p2 = pnand %p1048_p0, %p238_p1 }
   0x5   : > { %s1049_s10 = sshll.u32 (!%p239_p2), %s1044_s25, 1 }
   0x6   : > { %242 = sbr.rel (%p239_p2) target bundleno = 765 (0x2fd), region = 48  ;;  %p271_p3 = scmp.lt.s32.totalorder (!%p239_p2), %s1049_s10, 3 }
   0xb   : > { %v1175_v0 = vld [vmem:[%s1547_s1 + $0xe4] ss:$16 sps:$4 sm:$0xff]   ;;  %v1177_v1 = vld [vmem:[%s1547_s1 + $0xec] ss:$16 sps:$4 sm:$0xff]   ;;  %v1267_v2 = vmov 0   ;;  %s1555_s10 = smov (!%p271_p3, %s1049_s10), 3 }
   0xc   : > { %532 = vmatprep.mubr.bf16.mxu0 %v1267_v2  ;;  %575 = vmatprep.mubr.bf16.mxu1 %v1267_v2  ;;  %v1179_v3 = vld [vmem:[%s1547_s1 + $0xe0] ss:$16 sps:$4 sm:$0xff]   ;;  %v1180_v4 = vld [vmem:[%s1547_s1 + $0xe8] ss:$16 sps:$4 sm:$0xff]   ;;  %v1181_v5 = vld [vmem:[%s1547_s1 + $0xc4] ss:$16 sps:$4 sm:$0xff]  }
   0xd   : > { %500 = vmatprep.subr.bf16.mxu0 %v1175_v0  ;;  %543 = vmatprep.subr.bf16.mxu1 %v1177_v1  ;;  %v1183_v6 = vld [vmem:[%s1547_s1 + $0xcc] ss:$16 sps:$4 sm:$0xff]   ;;  %v1185_v7 = vld [vmem:[%s1547_s1 + $0xc0] ss:$16 sps:$4 sm:$0xff]   ;;  %v1186_v8 = vld [vmem:[%s1547_s1 + $0xc8] ss:$16 sps:$4 sm:$0xff]  }
   0xe   : > { %501 = vmatpush1.bf16.msra.mxu0 %v1179_v3  ;;  %544 = vmatpush1.bf16.msra.mxu1 %v1180_v4  ;;  %v1187_v9 = vld [vmem:[%s1547_s1 + $0xa4] ss:$16 sps:$4 sm:$0xff]   ;;  %v1189_v10 = vld [vmem:[%s1547_s1 + $0xac] ss:$16 sps:$4 sm:$0xff]   ;;  %v1191_v11 = vld [vmem:[%s1547_s1 + $0xa0] ss:$16 sps:$4 sm:$0xff]   ;;  %v320_v4 = vlaneseq }
   0xf   : > { %502 = vmatprep.subr.bf16.mxu0 %v1181_v5  ;;  %545 = vmatprep.subr.bf16.mxu1 %v1183_v6  ;;  %v1192_v12 = vld [vmem:[%s1547_s1 + $0xa8] ss:$16 sps:$4 sm:$0xff]   ;;  %v1193_v13 = vld [vmem:[%s1547_s1 + $0x84] ss:$16 sps:$4 sm:$0xff]   ;;  %v1195_v14 = vld [vmem:[%s1547_s1 + $0x8c] ss:$16 sps:$4 sm:$0xff]  }
  0x10   : > { %v1197_v15 = vld [vmem:[%s1547_s1 + $0x80] ss:$16 sps:$4 sm:$0xff]   ;;  %v1198_v16 = vld [vmem:[%s1547_s1 + $0x88] ss:$16 sps:$4 sm:$0xff]   ;;  %v1199_v17 = vld [vmem:[%s1547_s1 + $0x64] ss:$16 sps:$4 sm:$0xff]  }
  0x11   : > { %v1201_v18 = vld [vmem:[%s1547_s1 + $0x6c] ss:$16 sps:$4 sm:$0xff]   ;;  %v1203_v19 = vld [vmem:[%s1547_s1 + $0x60] ss:$16 sps:$4 sm:$0xff]   ;;  %v1204_v20 = vld [vmem:[%s1547_s1 + $0x68] ss:$16 sps:$4 sm:$0xff]  }
  0x12   : > { %503 = vmatpush1.bf16.msra.mxu0 %v1185_v7  ;;  %546 = vmatpush1.bf16.msra.mxu1 %v1186_v8  ;;  %v1205_v21 = vld [vmem:[%s1547_s1 + $0x44] ss:$16 sps:$4 sm:$0xff]   ;;  %v1207_v22 = vld [vmem:[%s1547_s1 + $0x4c] ss:$16 sps:$4 sm:$0xff]   ;;  %v1209_v23 = vld [vmem:[%s1547_s1 + $0x40] ss:$16 sps:$4 sm:$0xff]  }
  0x13   : > { %504 = vmatprep.subr.bf16.mxu0 %v1187_v9  ;;  %547 = vmatprep.subr.bf16.mxu1 %v1189_v10  ;;  %v1210_v24 = vld [vmem:[%s1547_s1 + $0x48] ss:$16 sps:$4 sm:$0xff]   ;;  %s1050_s9 = sshll.u32 %s1555_s10, 3  ;;  %v1211_v25 = vld [vmem:[%s1547_s1 + $0x24] ss:$16 sps:$4 sm:$0xff]   ;;  %v321_v5 = vshrl.u32 %v320_v4, 7 }
  0x14   : > { %v1213_v26 = vld [vmem:[%s1547_s1 + $0x2c] ss:$16 sps:$4 sm:$0xff]   ;;  %v1215_v27 = vld [vmem:[%s1547_s1 + $0x20] ss:$16 sps:$4 sm:$0xff]   ;;  %v1216_v28 = vld [vmem:[%s1547_s1 + $0x28] ss:$16 sps:$4 sm:$0xff]   ;;  %s274_s20 = scalar_lea.vmem %s1546_s0, %s1050_s9  ;;  %s280_s23 = scalar_lea.vmem %s1553_s7, %s1050_s9 }
  0x15   : > { %v1217_v29 = vld [vmem:[%s1547_s1 + $0x4] ss:$16 sps:$4 sm:$0xff]   ;;  %v1219_v30 = vld [vmem:[%s1547_s1 + $0xc] ss:$16 sps:$4 sm:$0xff]   ;;  %v1221_v31 = vld [vmem:[%s1547_s1] ss:$16 sps:$4 sm:$0xff]  }
  0x16   : > { %505 = vmatpush1.bf16.msra.mxu0 %v1191_v11  ;;  %548 = vmatpush1.bf16.msra.mxu1 %v1192_v12  ;;  %v1222_v32 = vld [vmem:[%s1547_s1 + $0x8] ss:$16 sps:$4 sm:$0xff]   ;;  %v1422_v33 = vld [vmem:[%s274_s20] sm:$0xff]  ;;  %v1227_v40 = vld [vmem:[%s1549_s3 + $0x70] sm:$0xff]   ;;  %v326_v6 = vsub.s32 1, %v321_v5  ;;  %v334_v7 = vsub.s32 3, %v321_v5 }
  0x17   : > { %506 = vmatprep.subr.bf16.mxu0 %v1193_v13  ;;  %549 = vmatprep.subr.bf16.mxu1 %v1195_v14  ;;  %v1424_v34 = vld [vmem:[%s274_s20 + $0x8] sm:$0xff]  ;;  %v1223_v35 = vld [vmem:[%s1549_s3 + $0x78] sm:$0xff]   ;;  %v1228_v41 = vld [vmem:[%s1549_s3 + $0xf0] sm:$0xff]   ;;  %v322_v8 = vsub.s32 0, %v321_v5  ;;  %v330_v9 = vsub.s32 2, %v321_v5 }
  0x18   : > { %v1224_v36 = vld [vmem:[%s1549_s3 + $0xf8] sm:$0xff]   ;;  %v285_v38 = vpack.c.bf16 %v1424_v34, %v1422_v33  ;;  %v1229_v42 = vld [vmem:[%s1549_s3 + $0x30] sm:$0xff]   ;;  %v1231_v44 = vld [vmem:[%s1549_s3 + $0x68] sm:$0xff]  }
  0x19   : > { %v1225_v37 = vld [vmem:[%s1549_s3 + $0x38] sm:$0xff]   ;;  %v1230_v43 = vld [vmem:[%s1549_s3 + $0xb0] sm:$0xff]   ;;  %v1232_v45 = vld [vmem:[%s1549_s3 + $0xe8] sm:$0xff]  }
  0x1a   : > { %507 = vmatpush1.bf16.msra.mxu0 %v1197_v15  ;;  %550 = vmatpush1.bf16.msra.mxu1 %v1198_v16  ;;  %v1226_v39 = vld [vmem:[%s1549_s3 + $0xb8] sm:$0xff]   ;;  %v1233_v46 = vld [vmem:[%s1549_s3 + $0x28] sm:$0xff]   ;;  %v1235_v48 = vld [vmem:[%s1549_s3 + $0x60] sm:$0xff]  }
  0x1b   : > { %508 = vmatprep.subr.bf16.mxu0 %v1199_v17  ;;  %551 = vmatprep.subr.bf16.mxu1 %v1201_v18  ;;  %v1234_v47 = vld [vmem:[%s1549_s3 + $0xa8] sm:$0xff]   ;;  %v1236_v49 = vld [vmem:[%s1549_s3 + $0xe0] sm:$0xff]   ;;  %v1239_v52 = vld [vmem:[%s1549_s3 + $0x58] sm:$0xff]  }
  0x1c   : > { %v1237_v50 = vld [vmem:[%s1549_s3 + $0x20] sm:$0xff]   ;;  %v1240_v53 = vld [vmem:[%s1549_s3 + $0xd8] sm:$0xff]   ;;  %v1243_v56 = vld [vmem:[%s1549_s3 + $0x50] sm:$0xff]  }
  0x1d   : > { %v1238_v51 = vld [vmem:[%s1549_s3 + $0xa0] sm:$0xff]   ;;  %v1241_v54 = vld [vmem:[%s1549_s3 + $0x18] sm:$0xff]   ;;  %v1244_v57 = vld [vmem:[%s1549_s3 + $0xd0] sm:$0xff]  }
  0x1e   : > { %509 = vmatpush1.bf16.msra.mxu0 %v1203_v19  ;;  %552 = vmatpush1.bf16.msra.mxu1 %v1204_v20  ;;  %v1242_v55 = vld [vmem:[%s1549_s3 + $0x98] sm:$0xff]   ;;  %v1245_v58 = vld [vmem:[%s1549_s3 + $0x10] sm:$0xff]   ;;  %v1247_v60 = vld [vmem:[%s1549_s3 + $0x48] sm:$0xff]  }
  0x1f   : > { %510 = vmatprep.subr.bf16.mxu0 %v1205_v21  ;;  %553 = vmatprep.subr.bf16.mxu1 %v1207_v22  ;;  %v1246_v59 = vld [vmem:[%s1549_s3 + $0x90] sm:$0xff]   ;;  %v1248_v61 = vld [vmem:[%s1549_s3 + $0xc8] sm:$0xff]   ;;  %v1251_v0 = vld [vmem:[%s1549_s3 + $0x40] sm:$0xff]  }
  0x20   : > { %v1249_v62 = vld [vmem:[%s1549_s3 + $0x8] sm:$0xff]   ;;  %v1252_v1 = vld [vmem:[%s1549_s3 + $0xc0] sm:$0xff]  }
  0x21   : > { %v1250_v63 = vld [vmem:[%s1549_s3 + $0x88] sm:$0xff]   ;;  %v1253_v2 = vld [vmem:[%s1549_s3] sm:$0xff]  }
  0x22   : > { %511 = vmatpush1.bf16.msra.mxu0 %v1209_v23  ;;  %554 = vmatpush1.bf16.msra.mxu1 %v1210_v24  ;;  %v1254_v3 = vld [vmem:[%s1549_s3 + $0x80] sm:$0xff]  }
  0x23   : > { %512 = vmatprep.subr.bf16.mxu0 %v1211_v25  ;;  %555 = vmatprep.subr.bf16.mxu1 %v1213_v26  ;;  %v318_v10 = vld [vmem:[%s1548_s2] sm:$0xf] }
  0x24   : > { %v327_v13 = vrot.slane %v318_v10, %v326_v6  ;;  %v335_v14 = vrot.slane %v318_v10, %v334_v7  ;;  %v323_v15 = vrot.slane %v318_v10, %v322_v8  ;;  %v331_v16 = vrot.slane %v318_v10, %v330_v9 }
  0x26   : > { %513 = vmatpush1.bf16.msra.mxu0 %v1215_v27  ;;  %556 = vmatpush1.bf16.msra.mxu1 %v1216_v28 }
  0x27   : > { %514 = vmatprep.subr.bf16.mxu0 %v1217_v29  ;;  %557 = vmatprep.subr.bf16.mxu1 %v1219_v30 }
  0x2a   : > { %515 = vmatpush1.bf16.msra.mxu0 %v1221_v31  ;;  %558 = vmatpush1.bf16.msra.mxu1 %v1222_v32 }
  0x2b   : > { %1122 = vmatprep.subr.bf16.mxu0 %v1223_v35  ;;  %1144 = vmatprep.subr.bf16.mxu1 %v1224_v36 }
  0x2d   : > { %533 = vmatmul.mubr.bf16.vlgmr.msra.gmra.mxu0 %v285_v38  ;;  %576 = vmatmul.mubr.bf16.vlgmr.msra.gmra.mxu1 %v285_v38 }
  0x2e   : > { %1123 = vmatpush3.bf16.msra.mxu0 %v1225_v37  ;;  %1145 = vmatpush3.bf16.msra.mxu1 %v1226_v39 }
  0x2f   : > { %1124 = vmatprep.subr.bf16.mxu0 %v1227_v40  ;;  %1146 = vmatprep.subr.bf16.mxu1 %v1228_v41 }
  0x32   : > { %1125 = vmatpush3.bf16.msra.mxu0 %v1229_v42  ;;  %1147 = vmatpush3.bf16.msra.mxu1 %v1230_v43 }
  0x33   : > { %1126 = vmatprep.subr.bf16.mxu0 %v1231_v44  ;;  %1148 = vmatprep.subr.bf16.mxu1 %v1232_v45 }
  0x36   : > { %1127 = vmatpush3.bf16.msra.mxu0 %v1233_v46  ;;  %1149 = vmatpush3.bf16.msra.mxu1 %v1234_v47  ;;  %v1085_v47 = vld [vmem:[%s1550_s4] ss:$0 sm:$0xff] }
  0x37   : > { %1128 = vmatprep.subr.bf16.mxu0 %v1235_v48  ;;  %1150 = vmatprep.subr.bf16.mxu1 %v1236_v49 }
  0x3a   : > { %1129 = vmatpush3.bf16.msra.mxu0 %v1237_v50  ;;  %1151 = vmatpush3.bf16.msra.mxu1 %v1238_v51 }
  0x3b   : > { %1130 = vmatprep.subr.bf16.mxu0 %v1239_v52  ;;  %1152 = vmatprep.subr.bf16.mxu1 %v1240_v53 }
  0x3e   : > { %1131 = vmatpush3.bf16.msra.mxu0 %v1241_v54  ;;  %1153 = vmatpush3.bf16.msra.mxu1 %v1242_v55 }
  0x3f   : > { %1132 = vmatprep.subr.bf16.mxu0 %v1243_v56  ;;  %1154 = vmatprep.subr.bf16.mxu1 %v1244_v57 }
  0x42   : > { %1133 = vmatpush3.bf16.msra.mxu0 %v1245_v58  ;;  %1155 = vmatpush3.bf16.msra.mxu1 %v1246_v59 }
  0x43   : > { %1134 = vmatprep.subr.bf16.mxu0 %v1247_v60  ;;  %1156 = vmatprep.subr.bf16.mxu1 %v1248_v61 }
  0x46   : > { %1135 = vmatpush3.bf16.msra.mxu0 %v1249_v62  ;;  %1157 = vmatpush3.bf16.msra.mxu1 %v1250_v63 }
  0x47   : > { %1136 = vmatprep.subr.bf16.mxu0 %v1251_v0  ;;  %1158 = vmatprep.subr.bf16.mxu1 %v1252_v1 }
  0x4a   : > { %1137 = vmatpush3.bf16.msra.mxu0 %v1253_v2  ;;  %1159 = vmatpush3.bf16.msra.mxu1 %v1254_v3 }
  0xed   : > { %v534_v11 = vpop.f32.mrf.mxu0  ;;  %v577_v12 = vpop.f32.mrf.mxu1 }
  0xee   : > { %v535_v25 = vadd.f32 %v534_v11, %v323_v15  ;;  %v578_v26 = vadd.f32 %v577_v12, %v331_v16 }
  0xef   : > { %v536_v17 = vpop.f32.mrf.mxu0  ;;  %v579_v18 = vpop.f32.mrf.mxu1 }
  0xf0   : > { %v537_v21 = vadd.f32 %v536_v17, %v327_v13  ;;  %v580_v22 = vadd.f32 %v579_v18, %v335_v14  ;;  %v586_v39 = vmax.f32 %v535_v25, 0.0  ;;  %v588_v40 = vmax.f32 %v578_v26, 0.0 }
  0xf1   : > { %v538_v19 = vpop.f32.mrf.mxu0  ;;  %v581_v20 = vpop.f32.mrf.mxu1 }
  0xf2   : > { %v539_v23 = vadd.f32 %v538_v19, %v323_v15  ;;  %v582_v24 = vadd.f32 %v581_v20, %v331_v16  ;;  %v587_v35 = vmax.f32 %v537_v21, 0.0  ;;  %v589_v36 = vmax.f32 %v580_v22, 0.0  ;;  %v1119_v15 = vld [vmem:[%s1552_s6] ss:$0 sm:$0xff] }
  0xf3   : > { %v540_v27 = vpop.f32.mrf.mxu0  ;;  %v583_v28 = vpop.f32.mrf.mxu1 }
  0xf4   : > { %v541_v29 = vadd.f32 %v540_v27, %v327_v13  ;;  %v584_v30 = vadd.f32 %v583_v28, %v335_v14  ;;  %v590_v31 = vmax.f32 %v539_v23, 0.0  ;;  %v592_v32 = vmax.f32 %v582_v24, 0.0  ;;  %v1118_v13 = vld [vmem:[%s1551_s5] ss:$0 sm:$0xff] }
  0xf6   : > { %v591_v37 = vmax.f32 %v541_v29, 0.0  ;;  %v593_v38 = vmax.f32 %v584_v30, 0.0  ;;  %v594_v43 = vpack.c.bf16 %v590_v31, %v586_v39  ;;  %v596_v44 = vpack.c.bf16 %v592_v32, %v588_v40 }
  0xf8   : > { %v595_v41 = vpack.c.bf16 %v591_v37, %v587_v35  ;;  %v597_v42 = vpack.c.bf16 %v593_v38, %v589_v36 }
  0xfa   : > { %893 = vmatprep.mubr.bf16.mxu0 %v595_v41  ;;  %934 = vmatprep.mubr.bf16.mxu1 %v597_v42 }
  0xfb   : > { %894 = vmatmul.mubr.bf16.vlgmr.msra.gmra.mxu0 %v594_v43  ;;  %935 = vmatmul.mubr.bf16.vlgmr.msra.gmra.mxu1 %v596_v44 }
 0x1bb   : > { %v1138_v45 = vpop.f32.mrf.mxu0  ;;  %v1160_v46 = vpop.f32.mrf.mxu1 }
 0x1bd   : > { %v1139_v48 = vpop.f32.mrf.mxu0  ;;  %v1161_v49 = vpop.f32.mrf.mxu1 }
 0x1be   : > { %v1140_v50 = vadd.f32 %v1139_v48, %v1138_v45  ;;  %v1162_v54 = vadd.f32 %v1161_v49, %v1160_v46 }
 0x1bf   : > { %v1141_v51 = vpop.f32.mrf.mxu0  ;;  %v1163_v52 = vpop.f32.mrf.mxu1 }
 0x1c0   : > { %v896_v53 = vadd.f32 %v1140_v50, %v1085_v47 }
 0x1c1   : > { %v1142_v55 = vpop.f32.mrf.mxu0  ;;  %v1164_v56 = vpop.f32.mrf.mxu1 }
 0x1c2   : > { %v937_v57 = vadd.f32 %v1162_v54, %v896_v53  ;;  %v1143_v58 = vadd.f32 %v1142_v55, %v1141_v51  ;;  %v1165_v60 = vadd.f32 %v1164_v56, %v1163_v52 }
 0x1c4   : > { %v899_v59 = vadd.f32 %v1143_v58, %v1085_v47  ;;  %v943_v61 = vadd.f32 %v937_v57, %v1422_v33 }
 0x1c6   : > { %v940_v62 = vadd.f32 %v1165_v60, %v899_v59  ;;  %947 = vadd.xlane.f32.xlu0 %v943_v61 }
 0x1c8   : > { %v944_v63 = vadd.f32 %v940_v62, %v1424_v34 }
 0x1ca   : > { %949 = vadd.xlane.f32.xlu0 %v944_v63 }
 0x24f   : > { %v948_v0 = vpop.xlane.xlu0 %947 }
 0x250   : > { %v952_v1 = vmul.f32 0.0078125, %v948_v0 }
 0x252   : > { %v954_v2 = vsub.f32 %v943_v61, %v952_v1 }
 0x253   : > { %v950_v3 = vpop.xlane.xlu0 %949 }
 0x254   : > { %v953_v4 = vmul.f32 0.0078125, %v950_v3  ;;  %v956_v5 = vmul.f32 %v954_v2, %v954_v2 }
 0x256   : > { %v955_v6 = vsub.f32 %v944_v63, %v953_v4  ;;  %958 = vadd.xlane.f32.xlu1 %v956_v5 }
 0x258   : > { %v957_v7 = vmul.f32 %v955_v6, %v955_v6 }
 0x25a   : > { %960 = vadd.xlane.f32.xlu1 %v957_v7 }
 0x2df   : > { %v959_v8 = vpop.xlane.xlu1 %958 }
 0x2e0   : > { %v962_v9 = vmul.f32 0.0078125, %v959_v8 }
 0x2e2   : > { %v964_v10 = vadd.f32 1e-05, %v962_v9 }
 0x2e3   : > { %v961_v33 = vpop.xlane.xlu1 %960 }
 0x2e4   : > { %1255 = vrsqrt.f32 %v964_v10  ;;  %v963_v11 = vmul.f32 0.0078125, %v961_v33 }
 0x2e6   : > { %v965_v12 = vadd.f32 1e-05, %v963_v11 }
 0x2e8   : > { %1257 = vrsqrt.f32 %v965_v12 }
 0x2f1   : > { %v1256_v34 = vpop.eup %1255 }
 0x2f2   : > { %v968_v14 = vmul.f32 %v1256_v34, %v954_v2 }
 0x2f4   : > { %v976_v16 = vmul.f32 %v1118_v13, %v968_v14 }
 0x2f5   : > { %v1258_v17 = vpop.eup %1257 }
 0x2f6   : > { %v984_v18 = vadd.f32 %v1119_v15, %v976_v16  ;;  %v969_v19 = vmul.f32 %v1258_v17, %v955_v6 }
 0x2f8   : > { %986 = vst [vmem:[%s280_s23] sm:$0xff] %v984_v18  ;;  %v977_v20 = vmul.f32 %v1118_v13, %v969_v19 }
 0x2fa   : > { %v985_v21 = vadd.f32 %v1119_v15, %v977_v20 }
 0x2fc   : > { %987 = vst [vmem:[%s280_s23 + $0x8] sm:$0xff] %v985_v21 }
 0x2fd PF: > { %s17_s24 = sadd.s32 1, %s1265_s24  }
 0x2fe   : > { %p14_p4 = scmp.ge.s32.totalorder %s17_s24, 4  }
 0x300   :  { %16 = sbr.rel (!%p14_p4) target bundleno = 1 (0x1), region = 78 }

</bundles_post_ra>
